<compile_context>
chip_gen: v6e
topology: v6e:2x2x1
jax: 0.10.0
libtpu: 0.0.40
codegen_flags: <defaults>
</compile_context>

<pallas_src>
import functools

import jax
import jax.numpy as jnp
from jax import lax
from jax.experimental import pallas as pl
from jax.experimental.pallas import tpu as pltpu


# ----------------------------------------------------------------------------
# Fused kernel: conv1(1x1)+BN+ReLU -> conv2(3x3 as one im2col matmul)+BN+ReLU
#               -> conv3(1x1)+BN -> +identity -> ReLU, one image per grid step.
# ----------------------------------------------------------------------------
def _bottleneck_kernel(x_ref, w1_ref, b1_ref, w2_ref, b2_ref, w3_ref, b3_ref,
                       o_ref, out1p_ref, *, H, W, pad_rows):
    HW = H * W
    planes = w1_ref.shape[1]

    x_bf = x_ref[0]                                        # (HW, Cin) bf16

    # ---- conv1 (1x1) + folded BN + ReLU --------------------------------
    y1 = jnp.dot(x_bf, w1_ref[...], preferred_element_type=jnp.float32)
    y1 = jnp.maximum(y1 + b1_ref[...], 0.0)                # (HW, planes) f32

    # Write out1 into a flat bf16 scratch with zero halo rows (in-kernel
    # "padding").  Halos are re-zeroed every step: the scratch is per-core
    # VMEM, so a program_id==0 guard would leave the second TensorCore's
    # halos uninitialized on multi-TC chips (v7x); the cost is 2 tiny stores.
    halo_zeros = jnp.zeros((pad_rows, planes), jnp.bfloat16)
    out1p_ref[0:pad_rows, :] = halo_zeros
    out1p_ref[pad_rows + HW:pad_rows + HW + pad_rows, :] = halo_zeros
    out1p_ref[pad_rows:pad_rows + HW, :] = y1.astype(jnp.bfloat16)

    # ---- conv2 (3x3, pad=1) as a single im2col matmul ------------------
    # For a row-major flattened image, a (dh, dw) tap is a slice of the halo
    # buffer shifted by dh*W + dw rows.  Row-wrap artifacts of the dw=+-1
    # taps are killed by in-kernel column-boundary masks (iota + compare);
    # dh taps that fall outside the image land in the zeroed halo rows.
    col = lax.broadcasted_iota(jnp.int32, (HW, planes), 0) % W
    mask_l = col >= 1                                      # valid where w-1 >= 0
    mask_r = col < (W - 1)                                 # valid where w+1 <  W
    zero_patch = jnp.zeros((HW, planes), jnp.bfloat16)

    taps = []
    for dh in (-1, 0, 1):
        for dw in (-1, 0, 1):
            start = pad_rows + dh * W + dw
            patch = out1p_ref[start:start + HW, :]         # (HW, planes) bf16
            if dw == -1:
                patch = jnp.where(mask_l, patch, zero_patch)
            elif dw == 1:
                patch = jnp.where(mask_r, patch, zero_patch)
            taps.append(patch)
    patch_mat = jnp.concatenate(taps, axis=1)              # (HW, 9*planes) bf16

    y2 = jnp.dot(patch_mat, w2_ref[...],                   # K = 9*planes
                 preferred_element_type=jnp.float32)
    y2 = jnp.maximum(y2 + b2_ref[...], 0.0)                # (HW, planes) f32

    # ---- conv3 (1x1) + folded BN + residual + ReLU ---------------------
    y3 = jnp.dot(y2.astype(jnp.bfloat16), w3_ref[...],
                 preferred_element_type=jnp.float32)
    out = jnp.maximum(y3 + b3_ref[...] + x_bf.astype(jnp.float32), 0.0)
    o_ref[0] = out.astype(o_ref.dtype)                     # bf16, lane-dense


# ----------------------------------------------------------------------------
# Wrapper: NHWC bf16 in, NHWC bf16 out.  (NCHW callers transpose once outside;
# the layout conversion is deliberately NOT part of this memory-bound kernel.)
# ----------------------------------------------------------------------------
def bottleneck_forward(x_nhwc, p):
    N, H, W, Cin = x_nhwc.shape
    planes = p["w1"].shape[1]
    Cout = p["w3"].shape[1]
    # Default Bottleneck config only: stride=1, dilation=1, downsample=None,
    # which requires inplanes == planes * expansion for the identity add.
    assert Cin == Cout, "identity path requires inplanes == planes * 4 (no downsample)"
    HW = H * W

    # Halo rows (>= W+1), rounded to the bf16 sublane tile (16) so the
    # interior scratch write stays sublane-aligned.
    pad_rows = ((W + 1 + 15) // 16) * 16

    x = x_nhwc.reshape(N, HW, Cin).astype(jnp.bfloat16)       # free reshape
    w2cat = p["w2"].reshape(9 * planes, planes)               # (kh,kw,ci) -> rows

    kernel = functools.partial(_bottleneck_kernel, H=H, W=W, pad_rows=pad_rows)

    out = pl.pallas_call(
        kernel,
        out_shape=jax.ShapeDtypeStruct((N, HW, Cout), jnp.bfloat16),
        grid=(N,),
        in_specs=[
            pl.BlockSpec((1, HW, Cin), lambda n: (n, 0, 0)),           # x (bf16)
            pl.BlockSpec((Cin, planes), lambda n: (0, 0)),             # w1 (bf16)
            pl.BlockSpec((1, planes), lambda n: (0, 0)),               # b1 (f32)
            pl.BlockSpec((9 * planes, planes), lambda n: (0, 0)),      # w2cat (bf16)
            pl.BlockSpec((1, planes), lambda n: (0, 0)),               # b2 (f32)
            pl.BlockSpec((planes, Cout), lambda n: (0, 0)),            # w3 (bf16)
            pl.BlockSpec((1, Cout), lambda n: (0, 0)),                 # b3 (f32)
        ],
        out_specs=pl.BlockSpec((1, HW, Cout), lambda n: (n, 0, 0)),
        scratch_shapes=[pltpu.VMEM((HW + 2 * pad_rows, planes), jnp.bfloat16)],
        compiler_params=pltpu.CompilerParams(
            dimension_semantics=("parallel",),
            # Explicit budget (well under v7x's 64 MiB physical and above
            # v5e's 16 MiB scoped default); per-step footprint here is <1 MiB.
            vmem_limit_bytes=32 * 1024 * 1024,
        ),
    )(x, p["w1"], p["b1"], w2cat, p["b2"], p["w3"], p["b3"])

    return out.reshape(N, H, W, Cout)


# ----------------------------------------------------------------------------
# Parameter setup (deterministic, synthetic) & BN folding into weights
# ----------------------------------------------------------------------------
def fold_bn(gamma, beta, mean, var, eps=1e-5):
    scale = gamma / jnp.sqrt(var + eps)
    bias = beta - mean * scale
    return scale, bias


def init_params(key, inplanes, planes):
    expansion = 4
    ks = jax.random.split(key, 6)

    def bn(k, c):
        kg, kb, km, kv = jax.random.split(k, 4)
        gamma = 1.0 + 0.1 * jax.random.normal(kg, (c,), jnp.float32)
        beta = 0.1 * jax.random.normal(kb, (c,), jnp.float32)
        mean = 0.1 * jax.random.normal(km, (c,), jnp.float32)
        var = jax.random.uniform(kv, (c,), jnp.float32, 0.5, 1.5)
        return fold_bn(gamma, beta, mean, var)

    w1 = 0.1 * jax.random.normal(ks[0], (inplanes, planes), jnp.float32)      # 1x1
    w2 = 0.1 * jax.random.normal(ks[1], (3, 3, planes, planes), jnp.float32)  # HWIO
    w3 = 0.1 * jax.random.normal(ks[2], (planes, planes * expansion), jnp.float32)
    s1, b1 = bn(ks[3], planes)
    s2, b2 = bn(ks[4], planes)
    s3, b3 = bn(ks[5], planes * expansion)

    # Fold the BN scale into the conv weights, stored bf16 (MXU operand
    # dtype; the folded scale is thus bf16-rounded); BN bias stays f32.
    return dict(
        w1=(w1 * s1[None, :]).astype(jnp.bfloat16),
        b1=b1[None, :].astype(jnp.float32),
        w2=(w2 * s2[None, None, None, :]).astype(jnp.bfloat16),
        b2=b2[None, :].astype(jnp.float32),
        w3=(w3 * s3[None, :]).astype(jnp.bfloat16),
        b3=b3[None, :].astype(jnp.float32),
    )


# ----------------------------------------------------------------------------
# Pure-JAX reference (same folded/bf16-rounded weights & bf16 x, f32 math)
# ----------------------------------------------------------------------------
def bottleneck_reference(x_nhwc, p):
    x = x_nhwc.astype(jnp.float32)
    dn = ("NHWC", "HWIO", "NHWC")
    w1 = p["w1"].astype(jnp.float32)[None, None]
    w2 = p["w2"].astype(jnp.float32)
    w3 = p["w3"].astype(jnp.float32)[None, None]
    o = lax.conv_general_dilated(x, w1, (1, 1), "VALID", dimension_numbers=dn)
    o = jnp.maximum(o + p["b1"], 0.0)
    o = lax.conv_general_dilated(o, w2, (1, 1), ((1, 1), (1, 1)),
                                 dimension_numbers=dn)
    o = jnp.maximum(o + p["b2"], 0.0)
    o = lax.conv_general_dilated(o, w3, (1, 1), "VALID", dimension_numbers=dn)
    o = jnp.maximum(o + p["b3"] + x, 0.0)
    return o


# ----------------------------------------------------------------------------
if __name__ == "__main__":
    key = jax.random.PRNGKey(0)
    k_x, k_p = jax.random.split(key)

    # inplanes = planes * expansion so the identity path needs no downsample
    # (the module's default configuration).  Cin = Cout = 128 keeps the
    # matmuls / stores lane-dense while staying small.
    planes = 32
    inplanes = planes * 4          # 128
    N, H, W = 2, 16, 16            # even N -> even grid (both v7x TCs busy)

    # NHWC bf16 at the kernel boundary; an NCHW (PyTorch) caller would do the
    # layout conversion once outside this block.
    x = jax.random.normal(k_x, (N, H, W, inplanes), jnp.float32).astype(jnp.bfloat16)

    params = init_params(k_p, inplanes, planes)

    out = jax.block_until_ready(bottleneck_forward(x, params))
    ref = bottleneck_reference(x, params)

    assert out.shape == (N, H, W, inplanes)
    # bf16 MXU operands / bf16 I/O (f32 accumulation) -> modest tolerance.
    assert jnp.allclose(out.astype(jnp.float32), ref, atol=5e-2, rtol=5e-2)

    print("KERNEL_OK")
</pallas_src>

<mosaic_0001>
module attributes {stable_mosaic.version = 11 : i64} {
  func.func @_bottleneck_kernel(%arg0: i32, %arg1: memref<1x256x128xbf16, #tpu.memory_space<vmem>>, %arg2: memref<128x32xbf16, #tpu.memory_space<vmem>>, %arg3: memref<1x32xf32, #tpu.memory_space<vmem>>, %arg4: memref<288x32xbf16, #tpu.memory_space<vmem>>, %arg5: memref<1x32xf32, #tpu.memory_space<vmem>>, %arg6: memref<32x128xbf16, #tpu.memory_space<vmem>>, %arg7: memref<1x128xf32, #tpu.memory_space<vmem>>, %arg8: memref<1x256x128xbf16, #tpu.memory_space<vmem>>, %arg9: memref<320x32xbf16, #tpu.memory_space<vmem>>) attributes {dimension_semantics = [#tpu.dimension_semantics<parallel>], iteration_bounds = array<i64: 2>, scalar_prefetch = 0 : i64, scratch_operands = 1 : i64, tpu.core_type = #tpu.core_type<tc>, window_params = [{transform_indices = @transform_0, window_bounds = array<i64: 1, 256, 128>}, {pipeline_mode = #tpu.pipeline_mode<synchronous>, transform_indices = @transform_1, window_bounds = array<i64: 128, 32>}, {pipeline_mode = #tpu.pipeline_mode<synchronous>, transform_indices = @transform_2, window_bounds = array<i64: 1, 32>}, {pipeline_mode = #tpu.pipeline_mode<synchronous>, transform_indices = @transform_3, window_bounds = array<i64: 288, 32>}, {pipeline_mode = #tpu.pipeline_mode<synchronous>, transform_indices = @transform_4, window_bounds = array<i64: 1, 32>}, {pipeline_mode = #tpu.pipeline_mode<synchronous>, transform_indices = @transform_5, window_bounds = array<i64: 32, 128>}, {pipeline_mode = #tpu.pipeline_mode<synchronous>, transform_indices = @transform_6, window_bounds = array<i64: 1, 128>}, {transform_indices = @transform_7, window_bounds = array<i64: 1, 256, 128>}]} {
    %c0 = arith.constant 0 : index
    %c0_0 = arith.constant 0 : index
    %c0_1 = arith.constant 0 : index
    %0 = vector.load %arg1[%c0, %c0_0, %c0_1] : memref<1x256x128xbf16, #tpu.memory_space<vmem>>, vector<1x256x128xbf16>
    %1 = vector.shape_cast %0 : vector<1x256x128xbf16> to vector<256x128xbf16>
    %c0_2 = arith.constant 0 : index
    %c0_3 = arith.constant 0 : index
    %2 = vector.load %arg2[%c0_2, %c0_3] : memref<128x32xbf16, #tpu.memory_space<vmem>>, vector<128x32xbf16>
    %cst = arith.constant dense<0.000000e+00> : vector<256x32xf32>
    %3 = tpu.matmul %1, %2, %cst {dimension_numbers = #tpu.dot_dimension_numbers<[1], [0], [0], [1], [0, 0, 1, 1], [], []>} : vector<256x128xbf16>, vector<128x32xbf16>, vector<256x32xf32> -> vector<256x32xf32>
    %c0_4 = arith.constant 0 : index
    %c0_5 = arith.constant 0 : index
    %4 = vector.load %arg3[%c0_4, %c0_5] : memref<1x32xf32, #tpu.memory_space<vmem>>, vector<1x32xf32>
    %5 = vector.broadcast %4 : vector<1x32xf32> to vector<256x32xf32>
    %6 = arith.addf %3, %5 : vector<256x32xf32>
    %cst_6 = arith.constant 0.000000e+00 : f32
    %7 = vector.broadcast %cst_6 : f32 to vector<256x32xf32>
    %8 = arith.maximumf %6, %7 : vector<256x32xf32>
    %cst_7 = arith.constant 0.000000e+00 : bf16
    %9 = vector.broadcast %cst_7 : bf16 to vector<32x32xbf16>
    %c0_8 = arith.constant 0 : index
    %c0_9 = arith.constant 0 : index
    %10 = vector.load %arg9[%c0_8, %c0_9] : memref<320x32xbf16, #tpu.memory_space<vmem>>, vector<32x32xbf16>
    tpu.vector_store %arg9[%c0_8, %c0_9], %9 {strides = array<i32>} : memref<320x32xbf16, #tpu.memory_space<vmem>>, vector<32x32xbf16>,
    %c288 = arith.constant 288 : index
    %c0_10 = arith.constant 0 : index
    %11 = vector.load %arg9[%c288, %c0_10] : memref<320x32xbf16, #tpu.memory_space<vmem>>, vector<32x32xbf16>
    tpu.vector_store %arg9[%c288, %c0_10], %9 {strides = array<i32>} : memref<320x32xbf16, #tpu.memory_space<vmem>>, vector<32x32xbf16>,
    %12 = arith.truncf %8 : vector<256x32xf32> to vector<256x32xbf16>
    %c32 = arith.constant 32 : index
    %c0_11 = arith.constant 0 : index
    %13 = vector.load %arg9[%c32, %c0_11] : memref<320x32xbf16, #tpu.memory_space<vmem>>, vector<256x32xbf16>
    tpu.vector_store %arg9[%c32, %c0_11], %12 {strides = array<i32>} : memref<320x32xbf16, #tpu.memory_space<vmem>>, vector<256x32xbf16>,
    %14 = tpu.iota {dimensions = array<i32: 0>} : vector<256x32xi32>
    %c16_i32 = arith.constant 16 : i32
    %c0_i32 = arith.constant 0 : i32
    %15 = arith.cmpi eq, %c16_i32, %c0_i32 : i32
    %c1_i32 = arith.constant 1 : i32
    %16 = arith.select %15, %c1_i32, %c16_i32 : i32
    %17 = vector.broadcast %16 : i32 to vector<256x32xi32>
    %18 = arith.remsi %14, %17 : vector<256x32xi32>
    %c0_i32_12 = arith.constant 0 : i32
    %19 = vector.broadcast %c0_i32_12 : i32 to vector<256x32xi32>
    %20 = arith.cmpi ne, %18, %19 : vector<256x32xi32>
    %c0_i32_13 = arith.constant 0 : i32
    %21 = vector.broadcast %c0_i32_13 : i32 to vector<256x32xi32>
    %22 = arith.cmpi slt, %18, %21 : vector<256x32xi32>
    %c0_i32_14 = arith.constant 0 : i32
    %23 = arith.cmpi slt, %16, %c0_i32_14 : i32
    %24 = vector.broadcast %23 : i1 to vector<256x32xi1>
    %25 = vector.broadcast %24 : vector<256x32xi1> to vector<256x32xi1>
    %26 = arith.xori %22, %25 : vector<256x32xi1>
    %27 = arith.andi %26, %20 : vector<256x32xi1>
    %28 = vector.broadcast %16 : i32 to vector<256x32xi32>
    %29 = arith.addi %18, %28 : vector<256x32xi32>
    %30 = arith.select %27, %29, %18 : vector<256x32xi1>, vector<256x32xi32>
    %c1_i32_15 = arith.constant 1 : i32
    %31 = vector.broadcast %c1_i32_15 : i32 to vector<256x32xi32>
    %32 = arith.cmpi sge, %30, %31 : vector<256x32xi32>
    %c15_i32 = arith.constant 15 : i32
    %33 = vector.broadcast %c15_i32 : i32 to vector<256x32xi32>
    %34 = arith.cmpi slt, %30, %33 : vector<256x32xi32>
    %cst_16 = arith.constant 0.000000e+00 : bf16
    %35 = vector.broadcast %cst_16 : bf16 to vector<256x32xbf16>
    %c15 = arith.constant 15 : index
    %c0_17 = arith.constant 0 : index
    %36 = vector.load %arg9[%c15, %c0_17] : memref<320x32xbf16, #tpu.memory_space<vmem>>, vector<256x32xbf16>
    %37 = arith.select %32, %36, %35 : vector<256x32xi1>, vector<256x32xbf16>
    %c16 = arith.constant 16 : index
    %c0_18 = arith.constant 0 : index
    %38 = vector.load %arg9[%c16, %c0_18] : memref<320x32xbf16, #tpu.memory_space<vmem>>, vector<256x32xbf16>
    %c17 = arith.constant 17 : index
    %c0_19 = arith.constant 0 : index
    %39 = vector.load %arg9[%c17, %c0_19] : memref<320x32xbf16, #tpu.memory_space<vmem>>, vector<256x32xbf16>
    %40 = arith.select %34, %39, %35 : vector<256x32xi1>, vector<256x32xbf16>
    %c31 = arith.constant 31 : index
    %c0_20 = arith.constant 0 : index
    %41 = vector.load %arg9[%c31, %c0_20] : memref<320x32xbf16, #tpu.memory_space<vmem>>, vector<256x32xbf16>
    %42 = arith.select %32, %41, %35 : vector<256x32xi1>, vector<256x32xbf16>
    %c32_21 = arith.constant 32 : index
    %c0_22 = arith.constant 0 : index
    %43 = vector.load %arg9[%c32_21, %c0_22] : memref<320x32xbf16, #tpu.memory_space<vmem>>, vector<256x32xbf16>
    %c33 = arith.constant 33 : index
    %c0_23 = arith.constant 0 : index
    %44 = vector.load %arg9[%c33, %c0_23] : memref<320x32xbf16, #tpu.memory_space<vmem>>, vector<256x32xbf16>
    %45 = arith.select %34, %44, %35 : vector<256x32xi1>, vector<256x32xbf16>
    %c47 = arith.constant 47 : index
    %c0_24 = arith.constant 0 : index
    %46 = vector.load %arg9[%c47, %c0_24] : memref<320x32xbf16, #tpu.memory_space<vmem>>, vector<256x32xbf16>
    %47 = arith.select %32, %46, %35 : vector<256x32xi1>, vector<256x32xbf16>
    %c48 = arith.constant 48 : index
    %c0_25 = arith.constant 0 : index
    %48 = vector.load %arg9[%c48, %c0_25] : memref<320x32xbf16, #tpu.memory_space<vmem>>, vector<256x32xbf16>
    %c49 = arith.constant 49 : index
    %c0_26 = arith.constant 0 : index
    %49 = vector.load %arg9[%c49, %c0_26] : memref<320x32xbf16, #tpu.memory_space<vmem>>, vector<256x32xbf16>
    %50 = arith.select %34, %49, %35 : vector<256x32xi1>, vector<256x32xbf16>
    %51 = tpu.concatenate %37, %38, %40, %42, %43, %45, %47, %48, %50 in 1 : vector<256x32xbf16>, vector<256x32xbf16>, vector<256x32xbf16>, vector<256x32xbf16>, vector<256x32xbf16>, vector<256x32xbf16>, vector<256x32xbf16>, vector<256x32xbf16>, vector<256x32xbf16> -> vector<256x288xbf16>
    %c0_27 = arith.constant 0 : index
    %c0_28 = arith.constant 0 : index
    %52 = vector.load %arg4[%c0_27, %c0_28] : memref<288x32xbf16, #tpu.memory_space<vmem>>, vector<288x32xbf16>
    %cst_29 = arith.constant dense<0.000000e+00> : vector<256x32xf32>
    %53 = tpu.matmul %51, %52, %cst_29 {dimension_numbers = #tpu.dot_dimension_numbers<[1], [0], [0], [1], [0, 0, 1, 1], [], []>} : vector<256x288xbf16>, vector<288x32xbf16>, vector<256x32xf32> -> vector<256x32xf32>
    %c0_30 = arith.constant 0 : index
    %c0_31 = arith.constant 0 : index
    %54 = vector.load %arg5[%c0_30, %c0_31] : memref<1x32xf32, #tpu.memory_space<vmem>>, vector<1x32xf32>
    %55 = vector.broadcast %54 : vector<1x32xf32> to vector<256x32xf32>
    %56 = arith.addf %53, %55 : vector<256x32xf32>
    %cst_32 = arith.constant 0.000000e+00 : f32
    %57 = vector.broadcast %cst_32 : f32 to vector<256x32xf32>
    %58 = arith.maximumf %56, %57 : vector<256x32xf32>
    %59 = arith.truncf %58 : vector<256x32xf32> to vector<256x32xbf16>
    %c0_33 = arith.constant 0 : index
    %c0_34 = arith.constant 0 : index
    %60 = vector.load %arg6[%c0_33, %c0_34] : memref<32x128xbf16, #tpu.memory_space<vmem>>, vector<32x128xbf16>
    %cst_35 = arith.constant dense<0.000000e+00> : vector<256x128xf32>
    %61 = tpu.matmul %59, %60, %cst_35 {dimension_numbers = #tpu.dot_dimension_numbers<[1], [0], [0], [1], [0, 0, 1, 1], [], []>} : vector<256x32xbf16>, vector<32x128xbf16>, vector<256x128xf32> -> vector<256x128xf32>
    %c0_36 = arith.constant 0 : index
    %c0_37 = arith.constant 0 : index
    %62 = vector.load %arg7[%c0_36, %c0_37] : memref<1x128xf32, #tpu.memory_space<vmem>>, vector<1x128xf32>
    %63 = vector.broadcast %62 : vector<1x128xf32> to vector<256x128xf32>
    %64 = arith.addf %61, %63 : vector<256x128xf32>
    %65 = arith.extf %1 : vector<256x128xbf16> to vector<256x128xf32>
    %66 = arith.addf %64, %65 : vector<256x128xf32>
    %cst_38 = arith.constant 0.000000e+00 : f32
    %67 = vector.broadcast %cst_38 : f32 to vector<256x128xf32>
    %68 = arith.maximumf %66, %67 : vector<256x128xf32>
    %69 = arith.truncf %68 : vector<256x128xf32> to vector<256x128xbf16>
    %c0_39 = arith.constant 0 : index
    %c0_40 = arith.constant 0 : index
    %c0_41 = arith.constant 0 : index
    %70 = vector.load %arg8[%c0_39, %c0_40, %c0_41] : memref<1x256x128xbf16, #tpu.memory_space<vmem>>, vector<1x256x128xbf16>
    %71 = vector.shape_cast %70 : vector<1x256x128xbf16> to vector<256x128xbf16>
    %72 = vector.shape_cast %69 : vector<256x128xbf16> to vector<1x256x128xbf16>
    tpu.vector_store %arg8[%c0_39, %c0_40, %c0_41], %72 {strides = array<i32>} : memref<1x256x128xbf16, #tpu.memory_space<vmem>>, vector<1x256x128xbf16>,
    return
  }
  func.func @transform_0(%arg0: i32) -> (i32, i32, i32) {
    %c0_i32 = arith.constant 0 : i32
    %c0_i32_0 = arith.constant 0 : i32
    %c0_i32_1 = arith.constant 0 : i32
    return %arg0, %c0_i32, %c0_i32_0 : i32, i32, i32
  }
  func.func @transform_1(%arg0: i32) -> (i32, i32) {
    %c0_i32 = arith.constant 0 : i32
    %c0_i32_0 = arith.constant 0 : i32
    %c0_i32_1 = arith.constant 0 : i32
    return %c0_i32, %c0_i32_0 : i32, i32
  }
  func.func @transform_2(%arg0: i32) -> (i32, i32) {
    %c0_i32 = arith.constant 0 : i32
    %c0_i32_0 = arith.constant 0 : i32
    %c0_i32_1 = arith.constant 0 : i32
    return %c0_i32, %c0_i32_0 : i32, i32
  }
  func.func @transform_3(%arg0: i32) -> (i32, i32) {
    %c0_i32 = arith.constant 0 : i32
    %c0_i32_0 = arith.constant 0 : i32
    %c0_i32_1 = arith.constant 0 : i32
    return %c0_i32, %c0_i32_0 : i32, i32
  }
  func.func @transform_4(%arg0: i32) -> (i32, i32) {
    %c0_i32 = arith.constant 0 : i32
    %c0_i32_0 = arith.constant 0 : i32
    %c0_i32_1 = arith.constant 0 : i32
    return %c0_i32, %c0_i32_0 : i32, i32
  }
  func.func @transform_5(%arg0: i32) -> (i32, i32) {
    %c0_i32 = arith.constant 0 : i32
    %c0_i32_0 = arith.constant 0 : i32
    %c0_i32_1 = arith.constant 0 : i32
    return %c0_i32, %c0_i32_0 : i32, i32
  }
  func.func @transform_6(%arg0: i32) -> (i32, i32) {
    %c0_i32 = arith.constant 0 : i32
    %c0_i32_0 = arith.constant 0 : i32
    %c0_i32_1 = arith.constant 0 : i32
    return %c0_i32, %c0_i32_0 : i32, i32
  }
  func.func @transform_7(%arg0: i32) -> (i32, i32, i32) {
    %c0_i32 = arith.constant 0 : i32
    %c0_i32_0 = arith.constant 0 : i32
    %c0_i32_1 = arith.constant 0 : i32
    return %arg0, %c0_i32, %c0_i32_0 : i32, i32, i32
  }
}

</mosaic_0001>

<bundles_post_ra>
// kernel: tpu_custom_call.1
= control target key start
LH: loop header
LB: loop body
LE: loop exit
PB: predicated region body
PF: predicated region fallthrough
CT: control target
= control target key end

     0   :  { %12 = vsyncpa [#allocation4], 0  ;;  %s9351_s0 = inlined_call_operand.vmem [shape: bf16[2,256,128], index: 0, kind: input, shape index: {}]   ;;  %s9352_s1 = inlined_call_operand.vmem [shape: bf16[128,32], index: 1, kind: input, shape index: {}]   ;;  %s9353_s2 = inlined_call_operand.vmem [shape: f32[1,32], index: 2, kind: input, shape index: {}]   ;;  %s9354_s3 = inlined_call_operand.vmem [shape: bf16[288,32], index: 3, kind: input, shape index: {}]   ;;  %s9355_s4 = inlined_call_operand.vmem [shape: f32[1,32], index: 4, kind: input, shape index: {}]   ;;  %s9356_s5 = inlined_call_operand.vmem [shape: bf16[32,128], index: 5, kind: input, shape index: {}]   ;;  %s9357_s6 = inlined_call_operand.vmem [shape: f32[1,128], index: 6, kind: input, shape index: {}]   ;;  %s9358_s7 = inlined_call_operand.hbm [shape: bf16[2,256,128], index: 7, kind: output, shape index: {}]  }
   0x1   :  { %14 = vsyncpa [#allocation4 + $0x1], 0  ;;  %s6269_s24 = smov 0   ;;  %s6271_s25 = smov 0  }
   0x2   :  { %s6273_s26 = smov 0   ;;  %s6275_s27 = smov 0  }
   0x3 LB: > { %s6290_s28 = sadd.s32 4294967295, %s6220_s27   ;;  %s5250_s29 = sadd.s32 4294967294, %s6220_s27   ;;  %s6220_s27 = sphi %s6275_s27, %s10201_s27   ;;  %s6216_s26 = sphi %s6273_s26, %s10200_s26   ;;  %s6212_s25 = sphi %s6271_s25, %s10199_s25   ;;  %s6208_s24 = sphi %s6269_s24, %s10198_s24  }
   0x4   : > { %s6294_s30 = sadd.s32 1, %s6220_s27   ;;  %s179_s8 = sadd.s32 1, %s6216_s26 }
   0x5   : > { %s176_s9 = ssub.s32 %s6220_s27, %s6294_s30  ;;  %p189_p0 = scmp.ne.s32.totalorder %s6216_s26, %s6212_s25 }
   0x6   : > { %p177_p1 = scmp.eq.s32.totalorder %s176_s9, 0  ;;  %p190_p2 = scmp.eq.s32.totalorder %s6290_s28, 1 }
   0x7   : > { %p195_p3 = scmp.ne.s32.totalorder %s6212_s25, %s6208_s24  ;;  %p196_p4 = scmp.eq.s32.totalorder %s5250_s29, 1 }
   0x8   : > { %s6305_s10 = scalar_select %p177_p1, %s6216_s26, %s179_s8  }
   0x9   : > { %p6307_p5 = por %p190_p2, %p189_p0  ;;  %p6311_p6 = por %p196_p4, %p195_p3 }
   0xa   : > { %p5253_p7 = scmp.ge.s32.totalorder %s6220_s27, 1  ;;  %p240_p8 = scmp.lt.s32.totalorder %s6220_s27, 3 }
   0xc   : > { %p241_p9 = pnand %p5253_p7, %p240_p8 }
   0xe   : > { %244 = sbr.rel (%p241_p9) target bundleno = 1094 (0x446), region = 48 }
  0x13   : > { %v6039_v0 = vld [vmem:[%s9352_s1 + $0x38] sm:$0xff]   ;;  %p272_p10 = scmp.lt.s32.totalorder %s6290_s28, 1  ;;  %v6040_v1 = vld [vmem:[%s9352_s1 + $0x30] sm:$0xff]   ;;  %v6041_v2 = vld [vmem:[%s9352_s1 + $0x28] sm:$0xff]   ;;  %v841_v24 = vlaneseq  ;;  %vm9392_vm0 = vcmask 257024   ;;  %vm6222_vm2 = vmmov 1  }
  0x14   : > { %5858 = vmatprep.subr.bf16.mxu0 %v6039_v0  ;;  %5978 = vmatprep.subr.bf16.mxu1 %v6039_v0  ;;  %v6042_v3 = vld [vmem:[%s9352_s1 + $0x20] sm:$0xff]   ;;  %v6043_v6 = vld [vmem:[%s9352_s1 + $0x18] sm:$0xff]   ;;  %v6044_v7 = vld [vmem:[%s9352_s1 + $0x10] sm:$0xff]   ;;  %v9362_v28 = vmov 0   ;;  %vm1872_vm5 = vsmask.f32 256 }
  0x15   : > { %s273_s17 = scalar_select %p272_p10, %s6290_s28, 1  ;;  %5859 = vmatpush3.bf16.msra.mxu0 %v6039_v0  ;;  %5986 = vmatpush3.bf16.msra.mxu1 %v6039_v0  ;;  %v6045_v8 = vld [vmem:[%s9352_s1 + $0x8] sm:$0xff]   ;;  %v6046_v9 = vld [vmem:[%s9352_s1] sm:$0xff]   ;;  %v6364_v25 = vshrl.u32 %v841_v24, 7  ;;  %vm1356_vm3 = vmpackc.low %vm6222_vm2, %vm6222_vm2  ;;  %675 = vst.msk [vmem:[#allocation2 + $0x8] sm:$0xf] %vm9392_vm0, %v9362_v28 }
  0x16   : > { %5860 = vmatprep.subr.bf16.mxu0 %v6040_v1  ;;  %5979 = vmatprep.subr.bf16.mxu1 %v6040_v1  ;;  %676 = vst.msk [vmem:[#allocation2 + $0xc] sm:$0xf] %vm9392_vm0, %v9362_v28  ;;  %v6372_v29 = vsel %vm1356_vm3, 65537, %v9362_v28  ;;  %674 = vst.msk [vmem:[#allocation2 + $0x4] sm:$0xf] %vm9392_vm0, %v9362_v28  ;;  %v9514_v38 = vmov 0 }
  0x17   : > { %s5525_s20 = sshll.u32 %s273_s17, 7  ;;  %9512 = vst [vmem:[#allocation6_spill] sm:$0xff] %v6364_v25  ;;  %v843_v26 = vadd.s32 8, %v6364_v25  ;;  %677 = vst.msk [vmem:[#allocation2 + $0x90] sm:$0xf] %vm9392_vm0, %v9362_v28  ;;  %v1436_v30 = vshrl.u32 %v6372_v29, 16 }
  0x18   : > { %s6331_s23 = scalar_lea.vmem %s9351_s0, %s5525_s20  ;;  %678 = vst.msk [vmem:[#allocation2 + $0x94] sm:$0xf] %vm9392_vm0, %v9362_v28  ;;  %679 = vst.msk [vmem:[#allocation2 + $0x98] sm:$0xf] %vm9392_vm0, %v9362_v28  ;;  %v1432_v35 = vshll.u32 %v6372_v29, 16  ;;  %s6224_s20 = smov 64  }
  0x19   : > { %5861 = vmatpush3.bf16.msra.mxu0 %v6040_v1  ;;  %5987 = vmatpush3.bf16.msra.mxu1 %v6040_v1  ;;  %v280_v4 = vld [vmem:[%s6331_s23] sm:$0xff]   ;;  %v282_v10 = vld [vmem:[%s6331_s23 + $0x8] sm:$0xff]   ;;  %v284_v12 = vld [vmem:[%s6331_s23 + $0x10] sm:$0xff]   ;;  %v885_v27 = vand.u32 15, %v843_v26  ;;  %v1878_v33 = vrot.slane %v1436_v30, 7  ;;  %s6225_s21 = smov 32  }
  0x1a   : > { %5862 = vmatprep.subr.bf16.mxu0 %v6041_v2  ;;  %5980 = vmatprep.subr.bf16.mxu1 %v6041_v2  ;;  %v296_v5 = vld [vmem:[%s6331_s23 + $0x40] sm:$0xff]   ;;  %v298_v11 = vld [vmem:[%s6331_s23 + $0x48] sm:$0xff]   ;;  %v300_v13 = vld [vmem:[%s6331_s23 + $0x50] sm:$0xff]   ;;  %vm1873_vm6 = vsmask.f32 4368  ;;  %v844_v57 = vadd.s32 16, %v6364_v25 }
  0x1b   : > { %5874 = vmatprep.mubr.bf16.mxu0 %v280_v4  ;;  %5890 = vmatprep.mubr.bf16.mxu1 %v296_v5  ;;  %v286_v14 = vld [vmem:[%s6331_s23 + $0x18] sm:$0xff]   ;;  %v288_v16 = vld [vmem:[%s6331_s23 + $0x20] sm:$0xff]   ;;  %v290_v18 = vld [vmem:[%s6331_s23 + $0x28] sm:$0xff]   ;;  %vm1291_vm1 = vcmp.lt.s32.totalorder %v885_v27, 15  ;;  %v6389_v37 = vrot.slane %v1878_v33, 4  ;;  %v6395_v39 = vor.u32 %v1878_v33, %v1432_v35  ;;  %v878_v58 = vand.u32 15, %v6364_v25 }
  0x1c   : > { %v302_v15 = vld [vmem:[%s6331_s23 + $0x58] sm:$0xff]   ;;  %v304_v17 = vld [vmem:[%s6331_s23 + $0x60] sm:$0xff]   ;;  %v306_v19 = vld [vmem:[%s6331_s23 + $0x68] sm:$0xff]   ;;  %v892_v59 = vand.u32 15, %v844_v57  ;;  %v860_v60 = vadd.s32 144, %v6364_v25  ;;  %v858_v61 = vadd.s32 128, %v6364_v25 }
  0x1d   : > { %5863 = vmatpush3.bf16.msra.mxu0 %v6041_v2  ;;  %5988 = vmatpush3.bf16.msra.mxu1 %v6041_v2  ;;  %v292_v20 = vld [vmem:[%s6331_s23 + $0x30] sm:$0xff]   ;;  %v294_v22 = vld [vmem:[%s6331_s23 + $0x38] sm:$0xff]   ;;  %vm1809_vm4 = vmpackc.low %vm1291_vm1, %vm1291_vm1  ;;  %9513 = vst [vmem:[#allocation7_spill] sm:$0xff] %v6389_v37  ;;  %vm2162_vm8 = vcmp.ne.s16.totalorder %v6395_v39, 0  ;;  %vm1258_vm10 = vcmp.ge.s32.totalorder %v878_v58, 1  ;;  %v845_v1 = vadd.s32 24, %v6364_v25 }
  0x1e   : > { %5864 = vmatprep.subr.bf16.mxu0 %v6042_v3  ;;  %5981 = vmatprep.subr.bf16.mxu1 %v6042_v3  ;;  %v308_v21 = vld [vmem:[%s6331_s23 + $0x70] sm:$0xff]   ;;  %v310_v23 = vld [vmem:[%s6331_s23 + $0x78] sm:$0xff]   ;;  %v1841_v31 = vsel %vm1809_vm4, 65537, %v9362_v28  ;;  %vm6391_vm7 = vmor %vm1872_vm5, %vm1873_vm6  ;;  %9517 = vst [vmem:[#allocation9_spill] sm:$0xff] %v6395_v39  ;;  %vm1260_vm11 = vcmp.ge.s32.totalorder %v892_v59, 1  ;;  %v1004_v62 = vand.u32 15, %v860_v60 }
  0x1f   : > { %v1884_v32 = vshrl.u32 %v1841_v31, 16  ;;  %v1887_v34 = vshll.u32 %v1841_v31, 16  ;;  %v9515_v38 = vsel %vm6391_vm7, 4294967295, %v9514_v38  ;;  %v1323_v41 = vld [vmem:[#allocation2 + $0x8] sm:$0xf]  ;;  %v6064_v56 = vld [vmem:[%s9354_s3 + $0x80] sm:$0xff]   ;;  %vm1355_vm12 = vmpackc.low %vm1258_vm10, %vm1258_vm10 }
  0x20   : > { %9516 = vst [vmem:[#allocation8_spill] sm:$0xff] %v9515_v38  ;;  %v1324_v42 = vld [vmem:[#allocation2 + $0xc] sm:$0xf]  ;;  %v2195_v46 = vsel %vm2162_vm8, %v1323_v41, 0  ;;  %vm1357_vm13 = vmpackc.low %vm1260_vm11, %vm1260_vm11  ;;  %v990_v63 = vand.u32 15, %v858_v61  ;;  %v1387_v0 = vsel %vm1355_vm12, 65537, %v9362_v28 }
  0x21   : > { %5865 = vmatpush3.bf16.msra.mxu0 %v6042_v3  ;;  %5989 = vmatpush3.bf16.msra.mxu1 %v6042_v3  ;;  %v6387_v36 = vrot.slane %v1884_v32, 7  ;;  %v5331_v44 = vcombine.low %v1323_v41, %v1324_v42  ;;  %v6063_v55 = vld [vmem:[%s9354_s3 + $0x88] sm:$0xff]   ;;  %vm1276_vm14 = vcmp.ge.s32.totalorder %v1004_v62, 1  ;;  %v1389_v2 = vsel %vm1357_vm13, 65537, %v9362_v28  ;;  %s6226_s15 = smov 96   ;;  %s269_s16 = sand.u32 1, %s6212_s25  }
  0x22   : > { %5866 = vmatprep.subr.bf16.mxu0 %v6043_v6  ;;  %5982 = vmatprep.subr.bf16.mxu1 %v6043_v6  ;;  %v847_v3 = vadd.s32 40, %v6364_v25  ;;  %v1423_v4 = vshll.u32 %v1387_v0, 16  ;;  %v1426_v5 = vshrl.u32 %v1387_v0, 16  ;;  %vm6434_vm15 = vcmp.ge.s32.totalorder %v990_v63, 1  ;;  %vm1373_vm1 = vmpackc.low %vm1276_vm14, %vm1276_vm14  ;;  %s5254_s17 = sshll.u32 %s269_s16, 7  ;;  %s9309_s29 = scalar_lea.sflag [#allocation4], %s269_s16 }
  0x23   : > { %v1889_v40 = vor.u32 %v1887_v34, %v6387_v36  ;;  %v2532_v48 = vshrl.u32 %v5331_v44, 16  ;;  %v2535_v49 = vshll.u32 %v5331_v44, 16  ;;  %vm1371_vm2 = vmpackc.low %vm6434_vm15, %vm6434_vm15  ;;  %v859_v24 = vadd.s32 136, %v6364_v25  ;;  %s9238_s18 = scalar_lea.vmem [#allocation3], %s5254_s17  ;;  %s6227_s8 = smov [#allocation3]  }
  0x24   : > { %v846_v27 = vadd.s32 32, %v6364_v25  ;;  %vm9388_vm6 = vsmask.f32 3328  ;;  %vm1420_vm10 = vsmask.f32 7440  ;;  %v861_v33 = vadd.s32 152, %v6364_v25 }
  0x25   : > { %5867 = vmatpush3.bf16.msra.mxu0 %v6043_v6  ;;  %5990 = vmatpush3.bf16.msra.mxu1 %v6043_v6  ;;  %v1890_v43 = vsel %vm6391_vm7, %v6389_v37, %v1889_v40  ;;  %v2534_v51 = vrot.slane %v2532_v48, 4  ;;  %v2537_v52 = vrot.slane %v2535_v49, 5  ;;  %vm6484_vm12 = vmor %vm9388_vm6, %vm1420_vm10  ;;  %v848_v61 = vadd.s32 48, %v6364_v25  ;;  %s5188_s19 = sshll.u32 %s9238_s18, 4  ;;  %s6164_s9 = sshll.u32 %s6227_s8, 4  ;;  %s9304_s19 = int_to_ptr.vmem [resolvable:$true] %s5188_s19  ;;  %s6165_s9 = int_to_ptr.vmem [resolvable:$false] %s6164_s9 }
  0x26   : > { %5868 = vmatprep.subr.bf16.mxu0 %v6044_v7  ;;  %5983 = vmatprep.subr.bf16.mxu1 %v6044_v7  ;;  %vm6402_vm9 = vcmp.ne.s16.totalorder %v1890_v43, 0  ;;  %v906_v44 = vand.u32 15, %v846_v27  ;;  %v1891_v62 = vrot.slane %v6387_v36, 4  ;;  %v855_v36 = vadd.s32 104, %v6364_v25  ;;  %s6166_s13 = scalar_lea.vmem %s6165_s9, 4096  ;;  %p6167_p0 = scmp.lt.s32.totalorder %s9304_s19, %s6165_s9 }
  0x27   : > { %v2196_v47 = vsel %vm6402_vm9, %v1324_v42, 0  ;;  %v6413_v54 = vor.u32 %v2537_v52, %v2534_v51  ;;  %v997_v42 = vand.u32 15, %v859_v24  ;;  %v2228_v52 = vld [vmem:[#allocation2 + $0xc] sm:$0x8]  ;;  %v2264_v51 = vld [vmem:[#allocation2 + $0x90] sm:$0x1] }
  0x28   : > { %v6410_v50 = vcombine.low %v2195_v46, %v2196_v47 }
  0x29   : > { %5869 = vmatpush3.bf16.msra.mxu0 %v6044_v7  ;;  %5991 = vmatpush3.bf16.msra.mxu1 %v6044_v7  ;;  %9520 = vst [vmem:[#allocation10_spill] sm:$0xff] %v6413_v54  ;;  %v899_v7 = vand.u32 15, %v845_v1  ;;  %vm6496_vm15 = vcmp.lt.s32.totalorder %v997_v42, 15  ;;  %v849_v1 = vadd.s32 56, %v6364_v25 }
  0x2a   : > { %5870 = vmatprep.subr.bf16.mxu0 %v6045_v8  ;;  %5984 = vmatprep.subr.bf16.mxu1 %v6045_v8  ;;  %v9359_v53 = vrot.slane %v6410_v50, 5 }
  0x2b   : > { %2674 = vrot.lane.b32.xlu1 %v6413_v54, %s6225_s21  ;;  %vm6448_vm3 = vcmp.lt.s32.totalorder %v899_v7, 15 }
  0x2c   : > { %2825 = vrot.lane.b32.xlu0 %v9359_v53, %s6224_s20  ;;  %vm1811_vm5 = vmpackc.low %vm6448_vm3, %vm6448_vm3 }
  0x2d   : > { %5871 = vmatpush3.bf16.msra.mxu0 %v6045_v8  ;;  %5992 = vmatpush3.bf16.msra.mxu1 %v6045_v8  ;;  %v1442_v8 = vshll.u32 %v1389_v2, 16  ;;  %v1843_v41 = vsel %vm1811_vm5, 65537, %v9362_v28 }
  0x2e   : > { %5872 = vmatprep.subr.bf16.mxu0 %v6046_v9  ;;  %5985 = vmatprep.subr.bf16.mxu1 %v6046_v9  ;;  %v1905_v7 = vshll.u32 %v1843_v41, 16 }
  0x31   : > { %5873 = vmatpush3.bf16.msra.mxu0 %v6046_v9  ;;  %5993 = vmatpush3.bf16.msra.mxu1 %v6046_v9  ;;  %v1446_v9 = vshrl.u32 %v1389_v2, 16 }
  0x32   : > { %5906 = vmatprep.subr.bf16.mxu0 %v6063_v55 }
  0x34   : > { %5875 = vmatmul.mubr.bf16.vlgmr.msra.gmra.mxu0 %v282_v10  ;;  %5891 = vmatmul.mubr.bf16.vlgmr.msra.gmra.mxu1 %v298_v11  ;;  %v913_v10 = vand.u32 15, %v847_v3  ;;  %v6441_v11 = vrot.slane %v1423_v4, 5 }
  0x35   : > { %5878 = vmatprep.mubr.bf16.mxu0 %v284_v12  ;;  %5894 = vmatprep.mubr.bf16.mxu1 %v300_v13  ;;  %v1428_v12 = vrot.slane %v1426_v5, 4  ;;  %v1405_v13 = vsel %vm1373_vm1, 65537, %v9362_v28  ;;  %vm6502_vm1 = vcmp.ge.s32.totalorder %v906_v44, 1 }
  0x36   : > { %5907 = vmatpush3.bf16.msra.mxu0 %v6063_v55  ;;  %9523 = vst [vmem:[#allocation11_spill] sm:$0xff] %v6441_v11  ;;  %vm6456_vm4 = vcmp.lt.s32.totalorder %v913_v10, 15  ;;  %vm9389_vm13 = vcmp.ne.s16.totalorder %v6441_v11, 0  ;;  %v1902_v55 = vshrl.u32 %v1843_v41, 16  ;;  %vm1359_vm5 = vmpackc.low %vm6502_vm1, %vm6502_vm1 }
  0x37   : > { %5908 = vmatprep.subr.bf16.mxu0 %v6064_v56  ;;  %v1429_v26 = vor.u32 %v1428_v12, %v6441_v11  ;;  %vm1813_vm11 = vmpackc.low %vm6456_vm4, %vm6456_vm4  ;;  %v6513_v3 = vsel %vm9389_vm13, %v2228_v52, 0  ;;  %v1391_v27 = vsel %vm1359_vm5, 65537, %v9362_v28 }
  0x38   : > { %v1845_v49 = vsel %vm1813_vm11, 65537, %v9362_v28  ;;  %v1904_v6 = vrot.slane %v1902_v55, 7  ;;  %vm1825_vm4 = vmpackc.low %vm6496_vm15, %vm6496_vm15 }
  0x39   : > { %v6475_v43 = vrot.slane %v1429_v26, 4  ;;  %v1920_v63 = vshrl.u32 %v1845_v49, 16 }
  0x3a   : > { %5909 = vmatpush3.bf16.msra.mxu0 %v6064_v56  ;;  %v1011_v56 = vand.u32 15, %v861_v33  ;;  %v6558_v24 = vor.u32 %v1905_v7, %v1904_v6  ;;  %v1909_v26 = vrot.slane %v1904_v6, 4 }
  0x3c   : > { %5879 = vmatmul.mubr.bf16.gmra.mxu0 %v286_v14  ;;  %5895 = vmatmul.mubr.bf16.gmra.mxu1 %v302_v15  ;;  %v6444_v14 = vrot.slane %v1432_v35, 5  ;;  %v1438_v15 = vrot.slane %v1436_v30, 4  ;;  %vm6524_vm3 = vcmp.lt.s32.totalorder %v1011_v56, 15  ;;  %v6597_v56 = vsel %vm6391_vm7, %v1909_v26, %v6395_v39 }
  0x3d   : > { %5882 = vmatprep.mubr.bf16.mxu0 %v288_v16  ;;  %5898 = vmatprep.mubr.bf16.mxu1 %v304_v17  ;;  %v6452_v17 = vrot.slane %v1442_v8, 5  ;;  %v1923_v16 = vshll.u32 %v1845_v49, 16  ;;  %vm1827_vm10 = vmpackc.low %vm6524_vm3, %vm6524_vm3  ;;  %v1466_v49 = vshrl.u32 %v1391_v27, 16  ;;  %vm9390_vm6 = vcmp.ne.s16.totalorder %v6597_v56, 0 }
  0x3e   : > { %v1439_v29 = vor.u32 %v1438_v15, %v6444_v14  ;;  %v6544_v15 = vrot.slane %v1920_v63, 7  ;;  %v853_v63 = vadd.s32 88, %v6364_v25 }
  0x3f   : > { %v1468_v7 = vrot.slane %v1466_v49, 4 }
  0x40   : > { %v6477_v46 = vrot.slane %v1439_v29, 4  ;;  %v851_v29 = vadd.s32 72, %v6364_v25  ;;  %v955_v26 = vand.u32 15, %v853_v63 }
  0x44   : > { %5883 = vmatmul.mubr.bf16.gmra.mxu0 %v290_v18  ;;  %5899 = vmatmul.mubr.bf16.gmra.mxu1 %v306_v19  ;;  %v1448_v18 = vrot.slane %v1446_v9, 4  ;;  %v1403_v19 = vsel %vm1371_vm2, 65537, %v9362_v28 }
  0x45   : > { %5886 = vmatprep.mubr.bf16.mxu0 %v292_v20  ;;  %5902 = vmatprep.mubr.bf16.mxu1 %v308_v21  ;;  %v857_v20 = vadd.s32 120, %v6364_v25  ;;  %v1602_v21 = vshll.u32 %v1405_v13, 16  ;;  %v1582_v30 = vshll.u32 %v1403_v19, 16  ;;  %v1586_v31 = vshrl.u32 %v1403_v19, 16 }
  0x46   : > { %v1449_v32 = vor.u32 %v1448_v18, %v6452_v17  ;;  %v927_v19 = vand.u32 15, %v849_v1 }
  0x47   : > { %v983_v34 = vand.u32 15, %v857_v20  ;;  %v6472_v35 = vrot.slane %v1602_v21, 5  ;;  %v6479_v47 = vrot.slane %v1582_v30, 5  ;;  %v1588_v48 = vrot.slane %v1586_v31, 4 }
  0x48   : > { %v6493_v58 = vrot.slane %v1449_v32, 4  ;;  %v6552_v21 = vsel %vm6391_vm7, %v1891_v62, %v6395_v39 }
  0x49   : > { %vm6489_vm14 = vcmp.lt.s32.totalorder %v983_v34, 15  ;;  %v1589_v4 = vor.u32 %v1588_v48, %v6479_v47  ;;  %v6575_v34 = vor.u32 %v1923_v16, %v6544_v15  ;;  %v1462_v48 = vshll.u32 %v1391_v27, 16 }
  0x4a   : > { %vm1823_vm2 = vmpackc.low %vm6489_vm14, %vm6489_vm14  ;;  %vm6578_vm14 = vcmp.lt.s32.totalorder %v927_v19, 15 }
  0x4b   : > { %v1855_v18 = vsel %vm1823_vm2, 65537, %v9362_v28  ;;  %v6547_v20 = vrot.slane %v1589_v4, 4  ;;  %vm1815_vm2 = vmpackc.low %vm6578_vm14, %vm6578_vm14  ;;  %v6614_v6 = vrot.slane %v1462_v48, 5 }
  0x4c   : > { %5887 = vmatmul.mubr.bf16.gmra.mxu0 %v294_v22  ;;  %5903 = vmatmul.mubr.bf16.gmra.mxu1 %v310_v23  ;;  %v1606_v22 = vshrl.u32 %v1405_v13, 16  ;;  %v920_v13 = vand.u32 15, %v848_v61  ;;  %v969_v23 = vand.u32 15, %v855_v36  ;;  %v2010_v32 = vshrl.u32 %v1855_v18, 16 }
  0x4d   : > { %v2013_v57 = vshll.u32 %v1855_v18, 16  ;;  %v850_v36 = vadd.s32 64, %v6364_v25  ;;  %v1847_v16 = vsel %vm1815_vm2, 65537, %v9362_v28  ;;  %v1469_v48 = vor.u32 %v1468_v7, %v6614_v6 }
  0x4e   : > { %v1608_v40 = vrot.slane %v1606_v22, 4  ;;  %v1857_v22 = vsel %vm1825_vm4, 65537, %v9362_v28  ;;  %vm6570_vm11 = vcmp.ge.s32.totalorder %v920_v13, 1  ;;  %vm6586_vm15 = vcmp.lt.s32.totalorder %v969_v23, 15 }
  0x4f   : > { %v2028_v41 = vshrl.u32 %v1857_v22, 16  ;;  %vm1361_vm1 = vmpackc.low %vm6570_vm11, %vm6570_vm11  ;;  %v2012_v60 = vrot.slane %v2010_v32, 7  ;;  %v2031_v61 = vshll.u32 %v1857_v22, 16  ;;  %v863_v13 = vadd.s32 168, %v6364_v25 }
  0x50   : > { %v1609_v59 = vor.u32 %v1608_v40, %v6472_v35  ;;  %v1859_v40 = vsel %vm1827_vm10, 65537, %v9362_v28  ;;  %vm1821_vm3 = vmpackc.low %vm6586_vm15, %vm6586_vm15  ;;  %v1393_v8 = vsel %vm1361_vm1, 65537, %v9362_v28  ;;  %v852_v22 = vadd.s32 80, %v6364_v25 }
  0x51   : > { %v2046_v62 = vshrl.u32 %v1859_v40, 16  ;;  %v2030_v1 = vrot.slane %v2028_v41, 7  ;;  %v2049_v4 = vshll.u32 %v1859_v40, 16  ;;  %v1486_v19 = vshrl.u32 %v1393_v8, 16 }
  0x52   : > { %v6539_v12 = vrot.slane %v1609_v59, 4  ;;  %v941_v59 = vand.u32 15, %v851_v29  ;;  %v1927_v23 = vrot.slane %v6544_v15, 4  ;;  %v6626_v27 = vsel %vm1821_vm3, 65537, %v9362_v28 }
  0x53   : > { %v865_v29 = vadd.s32 184, %v6364_v25  ;;  %v6629_v32 = vor.u32 %v2013_v57, %v2012_v60  ;;  %v2017_v33 = vrot.slane %v2012_v60, 4  ;;  %v1482_v40 = vshll.u32 %v1393_v8, 16 }
  0x54   : > { %vm6619_vm4 = vcmp.lt.s32.totalorder %v941_v59, 15  ;;  %v934_v41 = vand.u32 15, %v850_v36  ;;  %v6631_v42 = vrot.slane %v2046_v62, 7  ;;  %v1938_v49 = vshrl.u32 %v1847_v16, 16 }
  0x55   : > { %9546 = vst [vmem:[#allocation12_spill] sm:$0xff] %v6629_v32  ;;  %vm1817_vm5 = vmpackc.low %vm6619_vm4, %vm6619_vm4  ;;  %v1025_v52 = vand.u32 15, %v863_v13  ;;  %v6637_v59 = vor.u32 %v2031_v61, %v2030_v1  ;;  %v1488_v63 = vrot.slane %v1486_v19, 4  ;;  %v1992_v53 = vshrl.u32 %v6626_v27, 16 }
  0x56   : > { %v948_v57 = vand.u32 15, %v852_v22  ;;  %v2035_v0 = vrot.slane %v2030_v1, 4  ;;  %vm6640_vm10 = vcmp.lt.s32.totalorder %v955_v26, 15  ;;  %v1039_v62 = vand.u32 15, %v865_v29 }
  0x57   : > { %v856_v36 = vadd.s32 112, %v6364_v25  ;;  %v1849_v7 = vsel %vm1817_vm5, 65537, %v9362_v28  ;;  %v6646_v8 = vrot.slane %v1482_v40, 5  ;;  %vm6648_vm11 = vcmp.ge.s32.totalorder %v934_v41, 1  ;;  %vm1819_vm15 = vmpackc.low %vm6640_vm10, %vm6640_vm10 }
  0x58   : > { %v867_v61 = vadd.s32 200, %v6364_v25  ;;  %v6654_v18 = vor.u32 %v2049_v4, %v6631_v42  ;;  %v6656_v1 = vrot.slane %v1469_v48, 4  ;;  %v1940_v19 = vrot.slane %v1938_v49, 7  ;;  %vm1363_vm2 = vmpackc.low %vm6648_vm11, %vm6648_vm11 }
  0x59   : > { %vm6658_vm14 = vcmp.lt.s32.totalorder %v1025_v52, 15  ;;  %v1941_v26 = vshll.u32 %v1847_v16, 16  ;;  %v1489_v29 = vor.u32 %v1488_v63, %v6646_v8  ;;  %v6666_v40 = vrot.slane %v1992_v53, 7 }
  0x5a   : > { %vm6668_vm1 = vcmp.ge.s32.totalorder %v948_v57, 1  ;;  %v6675_v4 = vsel %vm6391_vm7, %v2017_v33, %v6395_v39  ;;  %v1956_v48 = vshrl.u32 %v1849_v7, 16  ;;  %vm6680_vm3 = vcmp.lt.s32.totalorder %v1039_v62, 15  ;;  %vm1829_vm4 = vmpackc.low %vm6658_vm14, %vm6658_vm14 }
  0x5b   : > { %9555 = vst [vmem:[#allocation13_spill] sm:$0xff] %v6675_v4  ;;  %v976_v53 = vand.u32 15, %v856_v36  ;;  %v6691_v33 = vsel %vm6391_vm7, %v2035_v0, %v6395_v39  ;;  %v1053_v63 = vand.u32 15, %v867_v61  ;;  %vm1365_vm5 = vmpackc.low %vm6668_vm1, %vm6668_vm1  ;;  %v6716_v61 = vor.u32 %v1941_v26, %v1940_v19 }
  0x5c   : > { %9558 = vst [vmem:[#allocation14_spill] sm:$0xff] %v6691_v33  ;;  %v6718_v22 = vrot.slane %v1489_v29, 4  ;;  %v1999_v62 = vrot.slane %v6666_v40, 4  ;;  %v1395_v0 = vsel %vm1363_vm2, 65537, %v9362_v28  ;;  %vm1831_vm14 = vmpackc.low %vm6680_vm3, %vm6680_vm3  ;;  %v6730_v41 = vrot.slane %v1956_v48, 7 }
  0x5d   : > { %v1851_v26 = vsel %vm1819_vm15, 65537, %v9362_v28  ;;  %v1861_v29 = vsel %vm1829_vm4, 65537, %v9362_v28  ;;  %vm6739_vm1 = vcmp.ge.s32.totalorder %v976_v53, 1  ;;  %v1945_v13 = vrot.slane %v1940_v19, 4 }
  0x5e   : > { %v1959_v57 = vshll.u32 %v1849_v7, 16  ;;  %vm6743_vm11 = vcmp.lt.s32.totalorder %v1053_v63, 15  ;;  %v1397_v48 = vsel %vm1365_vm5, 65537, %v9362_v28  ;;  %v1502_v49 = vshll.u32 %v1395_v0, 16  ;;  %vm1369_vm10 = vmpackc.low %vm6739_vm1, %vm6739_vm1 }
  0x5f   : > { %v1506_v55 = vshrl.u32 %v1395_v0, 16  ;;  %v1863_v53 = vsel %vm1831_vm14, 65537, %v9362_v28  ;;  %v6758_v7 = vsel %vm6391_vm7, %v1927_v23, %v6395_v39  ;;  %v1974_v63 = vshrl.u32 %v1851_v26, 16  ;;  %vm1833_vm15 = vmpackc.low %vm6743_vm11, %vm6743_vm11 }
  0x60   : > { %v2064_v44 = vshrl.u32 %v1861_v29, 16  ;;  %v6774_v23 = vsel %vm6391_vm7, %v1999_v62, %v6395_v39  ;;  %v1522_v0 = vshll.u32 %v1397_v48, 16  ;;  %v1526_v60 = vshrl.u32 %v1397_v48, 16 }
  0x61   : > { %9563 = vst [vmem:[#allocation15_spill] sm:$0xff] %v6774_v23  ;;  %v6782_v36 = vsel %vm6391_vm7, %v1945_v13, %v6395_v39  ;;  %v6785_v19 = vor.u32 %v1959_v57, %v6730_v41  ;;  %v2067_v15 = vshll.u32 %v1861_v29, 16  ;;  %v2082_v31 = vshrl.u32 %v1863_v53, 16 }
  0x62   : > { %v6787_v10 = vrot.slane %v1502_v49, 5  ;;  %v1508_v62 = vrot.slane %v1506_v55, 4  ;;  %v1401_v30 = vsel %vm1369_vm10, 65537, %v9362_v28  ;;  %v862_v16 = vadd.s32 160, %v6364_v25 }
  0x63   : > { %v1976_v5 = vrot.slane %v1974_v63, 7  ;;  %v1977_v2 = vshll.u32 %v1851_v26, 16  ;;  %v2066_v48 = vrot.slane %v2064_v44, 7  ;;  %v1865_v9 = vsel %vm1833_vm15, 65537, %v9362_v28 }
  0x64   : > { %9564 = vst [vmem:[#allocation16_spill] sm:$0xff] %v6787_v10  ;;  %v1995_v13 = vshll.u32 %v6626_v27, 16  ;;  %v6793_v52 = vrot.slane %v1522_v0, 5  ;;  %v1528_v57 = vrot.slane %v1526_v60, 4  ;;  %v854_v29 = vadd.s32 96, %v6364_v25 }
  0x65   : > { %v2084_v54 = vrot.slane %v2082_v31, 7  ;;  %v2085_v49 = vshll.u32 %v1863_v53, 16  ;;  %v1562_v32 = vshll.u32 %v1401_v30, 16  ;;  %v1566_v55 = vshrl.u32 %v1401_v30, 16 }
  0x66   : > { %9565 = vst [vmem:[#allocation17_spill] sm:$0xff] %v6793_v52  ;;  %v1509_v44 = vor.u32 %v1508_v62, %v6787_v10  ;;  %v2100_v26 = vshrl.u32 %v1865_v9, 16  ;;  %v1018_v28 = vand.u32 15, %v862_v16  ;;  %v1963_v27 = vrot.slane %v6730_v41, 4 }
  0x67   : > { %v6802_v0 = vor.u32 %v1977_v2, %v1976_v5  ;;  %v1981_v60 = vrot.slane %v1976_v5, 4  ;;  %v6804_v23 = vor.u32 %v2067_v15, %v2066_v48  ;;  %v6807_v31 = vor.u32 %v1995_v13, %v6666_v40  ;;  %v6826_v40 = vld [vmem:[%s9353_s2] ss:$0 sm:$0xff] }
  0x68   : > { %v9568_v30 = vrot.slane %v6631_v42, 4  ;;  %v1529_v62 = vor.u32 %v1528_v57, %v6793_v52  ;;  %v962_v16 = vand.u32 15, %v854_v29  ;;  %v2071_v63 = vrot.slane %v2066_v48, 4 }
  0x69   : > { %9566 = vst [vmem:[#allocation18_spill] sm:$0xff] %v6804_v23  ;;  %9567 = vst [vmem:[#allocation19_spill] sm:$0xff] %v6807_v31  ;;  %v6817_v41 = vor.u32 %v2085_v49, %v2084_v54  ;;  %v6819_v2 = vrot.slane %v1562_v32, 5  ;;  %v6821_v5 = vrot.slane %v1566_v55, 4  ;;  %v6828_v42 = vrot.slane %v1509_v44, 4 }
  0x6a   : > { %v6814_v53 = vsel %vm6391_vm7, %v9568_v30, %v6395_v39  ;;  %v6830_v15 = vrot.slane %v2100_v26, 7  ;;  %v2103_v13 = vshll.u32 %v1865_v9, 16  ;;  %vm6832_vm2 = vcmp.ge.s32.totalorder %v1018_v28, 1 }
  0x6b   : > { %9569 = vst [vmem:[#allocation20_spill] sm:$0xff] %v6814_v53  ;;  %9570 = vst [vmem:[#allocation21_spill] sm:$0xff] %v6817_v41  ;;  %v6839_v32 = vsel %vm6391_vm7, %v1963_v27, %v6395_v39  ;;  %v6848_v29 = vsel %vm6391_vm7, %v1981_v60, %v6395_v39  ;;  %v2089_v44 = vrot.slane %v2084_v54, 4  ;;  %v6858_v26 = vrot.slane %v1529_v62, 4 }
  0x6c   : > { %9571 = vst [vmem:[#allocation22_spill] sm:$0xff] %v6819_v2  ;;  %9572 = vst [vmem:[#allocation23_spill] sm:$0xff] %v6821_v5  ;;  %vm6860_vm3 = vcmp.ge.s32.totalorder %v962_v16, 1  ;;  %v6869_v28 = vsel %vm6391_vm7, %v2071_v63, %v6395_v39  ;;  %v9586_v52 = vmov 0 }
  0x6d   : > { %9573 = vst [vmem:[#allocation24_spill] sm:$0xff] %v6828_v42  ;;  %9574 = vst [vmem:[#allocation25_spill] sm:$0xff] %v6830_v15 }
  0x6e   : > { %9577 = vst [vmem:[#allocation26_spill] sm:$0xff] %v6858_v26  ;;  %9580 = vst [vmem:[#allocation27_spill] sm:$0xff] %v6869_v28  ;;  %v6899_v28 = vsel %vm6391_vm7, %v2089_v44, %v6395_v39 }
  0x6f   : > { %vm1375_vm4 = vmpackc.low %vm6832_vm2, %vm6832_vm2  ;;  %9582 = vst [vmem:[#allocation29_spill] sm:$0xff] %v6899_v28 }
  0x70   : > { %vm1367_vm5 = vmpackc.low %vm6860_vm3, %vm6860_vm3 }
  0xf4   : > { %v5876_v9 = vpop.f32.mrf.mxu0  ;;  %v5892_v49 = vpop.f32.mrf.mxu1 }
  0xf5   : > { %v522_v60 = vadd.f32 %v5876_v9, %v6826_v40  ;;  %v586_v30 = vadd.f32 %v5892_v49, %v6826_v40  ;;  %v6889_v49 = vor.u32 %v2103_v13, %v6830_v15  ;;  %v9585_v13 = vsel %vm6484_vm12, %v6493_v58, %v6444_v14 }
  0xf6   : > { %v513_v54 = vpop.f32.mrf.mxu0  ;;  %v577_v62 = vpop.f32.mrf.mxu1  ;;  %vm6922_vm14 = vcmp.ne.s16.totalorder %v9585_v13, 0  ;;  %v9590_v13 = vmov 0 }
  0xf7   : > { %9581 = vst [vmem:[#allocation28_spill] sm:$0xff] %v6889_v49  ;;  %v642_v48 = vmax.f32 %v522_v60, 0.0  ;;  %v658_v55 = vmax.f32 %v586_v30, 0.0  ;;  %v514_v2 = vadd.f32 %v6826_v40, %v513_v54  ;;  %v578_v5 = vadd.f32 %v6826_v40, %v577_v62 }
  0xf8   : > { %v5877_v16 = vpop.f32.mrf.mxu0  ;;  %v5893_v63 = vpop.f32.mrf.mxu1  ;;  %v9583_v30 = vmov 0   ;;  %v9587_v52 = vsel %vm6922_vm14, 4294967295, %v9586_v52 }
  0xf9   : > { %v6915_v54 = vsel %vm1375_vm4, 65537, %v9583_v30  ;;  %v5528_v44 = vpack.c.bf16 %v642_v48, %v642_v48  ;;  %v5544_v62 = vpack.c.bf16 %v658_v55, %v658_v55  ;;  %v640_v9 = vmax.f32 %v514_v2, 0.0  ;;  %9588 = vst [vmem:[#allocation31_spill] sm:$0xff] %v9587_v52 }
  0xfa   : > { %9584 = vst [vmem:[#allocation30_spill] sm:$0xff] %v6915_v54  ;;  %v656_v15 = vmax.f32 %v578_v5, 0.0  ;;  %v525_v60 = vadd.f32 %v5877_v16, %v6826_v40  ;;  %v589_v57 = vadd.f32 %v5893_v63, %v6826_v40  ;;  %v516_v26 = vpop.f32.mrf.mxu0  ;;  %v580_v28 = vpop.f32.mrf.mxu1  ;;  %v1399_v58 = vsel %vm1367_vm5, 65537, %v9583_v30 }
  0xfb   : > { %811 = vst.msk [vmem:[#allocation2 + $0x18] sm:$0xf] %vm9392_vm0, %v5528_v44  ;;  %827 = vst.msk [vmem:[#allocation2 + $0x58] sm:$0xf] %vm9392_vm0, %v5544_v62  ;;  %v5526_v5 = vpack.c.bf16 %v640_v9, %v640_v9  ;;  %v517_v55 = vadd.f32 %v6826_v40, %v516_v26  ;;  %v581_v16 = vadd.f32 %v6826_v40, %v580_v28  ;;  %v1542_v41 = vshll.u32 %v1399_v58, 16 }
  0xfc   : > { %v5542_v48 = vpack.c.bf16 %v656_v15, %v656_v15  ;;  %v9589_v63 = vsel %vm6484_vm12, %v6475_v43, %v6444_v14  ;;  %v643_v27 = vmax.f32 %v525_v60, 0.0  ;;  %v659_v2 = vmax.f32 %v589_v57, 0.0  ;;  %v5880_v44 = vpop.f32.mrf.mxu0  ;;  %v5896_v30 = vpop.f32.mrf.mxu1 }
  0xfd   : > { %vm6947_vm1 = vcmp.ne.s16.totalorder %v9589_v63, 0  ;;  %v6953_v15 = vadd.s32 176, %v6364_v25  ;;  %809 = vst.msk [vmem:[#allocation2 + $0x10] sm:$0xf] %vm9392_vm0, %v5526_v5  ;;  %v641_v28 = vmax.f32 %v517_v55, 0.0  ;;  %v657_v26 = vmax.f32 %v581_v16, 0.0 }
  0xfe   : > { %v9591_v13 = vsel %vm6947_vm1, 4294967295, %v9590_v13  ;;  %825 = vst.msk [vmem:[#allocation2 + $0x50] sm:$0xf] %vm9392_vm0, %v5542_v48  ;;  %v538_v43 = vadd.f32 %v5880_v44, %v6826_v40  ;;  %v602_v62 = vadd.f32 %v5896_v30, %v6826_v40  ;;  %v5529_v63 = vpack.c.bf16 %v643_v27, %v643_v27  ;;  %v529_v57 = vpop.f32.mrf.mxu0  ;;  %v593_v49 = vpop.f32.mrf.mxu1 }
  0xff   : > { %9592 = vst [vmem:[#allocation32_spill] sm:$0xff] %v9591_v13  ;;  %9593 = vst [vmem:[#allocation33_spill] sm:$0xff] %v6953_v15  ;;  %v5545_v60 = vpack.c.bf16 %v659_v2, %v659_v2  ;;  %v1546_v23 = vshrl.u32 %v1399_v58, 16  ;;  %v5527_v9 = vpack.c.bf16 %v641_v28, %v641_v28  ;;  %v5543_v53 = vpack.c.bf16 %v657_v26, %v657_v26 }
 0x100   : > { %v646_v25 = vmax.f32 %v538_v43, 0.0  ;;  %v662_v42 = vmax.f32 %v602_v62, 0.0  ;;  %812 = vst.msk [vmem:[#allocation2 + $0x1c] sm:$0xf] %vm9392_vm0, %v5529_v63  ;;  %v530_v5 = vadd.f32 %v6826_v40, %v529_v57  ;;  %v594_v48 = vadd.f32 %v6826_v40, %v593_v49  ;;  %v5881_v55 = vpop.f32.mrf.mxu0  ;;  %v5897_v30 = vpop.f32.mrf.mxu1 }
 0x101   : > { %828 = vst.msk [vmem:[#allocation2 + $0x5c] sm:$0xf] %vm9392_vm0, %v5545_v60  ;;  %v9594_v2 = vsel %vm6484_vm12, %v6477_v46, %v6452_v17  ;;  %v9595_v58 = vmov 0  ;;  %810 = vst.msk [vmem:[#allocation2 + $0x14] sm:$0xf] %vm9392_vm0, %v5527_v9  ;;  %v541_v28 = vadd.f32 %v5881_v55, %v6826_v40  ;;  %v605_v26 = vadd.f32 %v5897_v30, %v6826_v40 }
 0x102   : > { %vm6968_vm11 = vcmp.ne.s16.totalorder %v9594_v2, 0  ;;  %826 = vst.msk [vmem:[#allocation2 + $0x54] sm:$0xf] %vm9392_vm0, %v5543_v53  ;;  %v5532_v49 = vpack.c.bf16 %v646_v25, %v646_v25  ;;  %v5548_v44 = vpack.c.bf16 %v662_v42, %v662_v42  ;;  %v644_v43 = vmax.f32 %v530_v5, 0.0  ;;  %v532_v62 = vpop.f32.mrf.mxu0  ;;  %v596_v63 = vpop.f32.mrf.mxu1  ;;  %v6978_v60 = vld [vmem:[#allocation2 + $0x18] sm:$0xf] }
 0x103   : > { %v9596_v58 = vsel %vm6968_vm11, 4294967295, %v9595_v58  ;;  %v660_v17 = vmax.f32 %v594_v48, 0.0  ;;  %v9597_v57 = vsel %vm6484_vm12, %v6539_v12, %v6444_v14  ;;  %v9598_v9 = vmov 0 }
 0x104   : > { %vm6985_vm10 = vcmp.ne.s16.totalorder %v9597_v57, 0  ;;  %v6989_v25 = vrot.slane %v1542_v41, 5  ;;  %v6991_v53 = vrot.slane %v1546_v23, 4  ;;  %815 = vst.msk [vmem:[#allocation2 + $0x28] sm:$0xf] %vm9392_vm0, %v5532_v49  ;;  %v647_v42 = vmax.f32 %v541_v28, 0.0 }
 0x105   : > { %v9599_v9 = vsel %vm6985_vm10, 4294967295, %v9598_v9  ;;  %831 = vst.msk [vmem:[#allocation2 + $0x68] sm:$0xf] %vm9392_vm0, %v5548_v44  ;;  %v663_v5 = vmax.f32 %v605_v26, 0.0  ;;  %v533_v48 = vadd.f32 %v6826_v40, %v532_v62  ;;  %v597_v55 = vadd.f32 %v6826_v40, %v596_v63  ;;  %v7027_v26 = vld [vmem:[#allocation2 + $0x10] sm:$0xf]  ;;  %v5900_v63 = vpop.f32.mrf.mxu1 }
 0x106   : > { %9600 = vst [vmem:[#allocation34_spill] sm:$0xff] %v9599_v9  ;;  %9601 = vst [vmem:[#allocation35_spill] sm:$0xff] %v6989_v25  ;;  %v9603_v12 = vsel %vm6484_vm12, %v6477_v46, %v6472_v35  ;;  %v9604_v41 = vmov 0  ;;  %v9607_v23 = vsel %vm6484_vm12, %v6477_v46, %v6479_v47  ;;  %v9608_v30 = vmov 0  ;;  %v5884_v47 = vpop.f32.mrf.mxu0 }
 0x107   : > { %9602 = vst [vmem:[#allocation36_spill] sm:$0xff] %v6991_v53  ;;  %vm7002_vm15 = vcmp.ne.s16.totalorder %v9603_v12, 0  ;;  %vm7011_vm2 = vcmp.ne.s16.totalorder %v9607_v23, 0  ;;  %v9611_v2 = vsel %vm6484_vm12, %v6547_v20, %v6444_v14  ;;  %v9612_v35 = vmov 0 }
 0x108   : > { %v9605_v41 = vsel %vm7002_vm15, 4294967295, %v9604_v41  ;;  %v9609_v30 = vsel %vm7011_vm2, 4294967295, %v9608_v30  ;;  %vm7020_vm3 = vcmp.ne.s16.totalorder %v9611_v2, 0  ;;  %v5530_v49 = vpack.c.bf16 %v644_v43, %v644_v43  ;;  %v2298_v54 = vld [vmem:[#allocation2 + $0x14] sm:$0x8] }
 0x109   : > { %9606 = vst [vmem:[#allocation37_spill] sm:$0xff] %v9605_v41  ;;  %9610 = vst [vmem:[#allocation38_spill] sm:$0xff] %v9609_v30  ;;  %v9613_v35 = vsel %vm7020_vm3, 4294967295, %v9612_v35  ;;  %v5546_v44 = vpack.c.bf16 %v660_v17, %v660_v17  ;;  %v2335_v28 = vsel %vm2162_vm8, %v6978_v60, 0  ;;  %v2234_v62 = vsel %vm6922_vm14, %v6978_v60, 0  ;;  %v545_v17 = vpop.f32.mrf.mxu0  ;;  %v6070_v41 = vld [vmem:[%s9354_s3 + $0x78] sm:$0xff]  }
 0x10a   : > { %9614 = vst [vmem:[#allocation39_spill] sm:$0xff] %v9613_v35  ;;  %v5533_v57 = vpack.c.bf16 %v647_v42, %v647_v42  ;;  %v5549_v20 = vpack.c.bf16 %v663_v5, %v663_v5  ;;  %v645_v12 = vmax.f32 %v533_v48, 0.0  ;;  %v661_v23 = vmax.f32 %v597_v55, 0.0  ;;  %813 = vst.msk [vmem:[#allocation2 + $0x20] sm:$0xf] %vm9392_vm0, %v5530_v49  ;;  %v609_v5 = vpop.f32.mrf.mxu1  ;;  %5710 = vmatprep.subr.bf16.mxu1 %v6070_v41 }
 0x10b   : > { %829 = vst.msk [vmem:[#allocation2 + $0x60] sm:$0xf] %vm9392_vm0, %v5546_v44  ;;  %v554_v43 = vadd.f32 %v5884_v47, %v6826_v40  ;;  %v2232_v2 = vsel %vm6947_vm1, %v7027_v26, 0  ;;  %v2302_v27 = vsel %vm6947_vm1, %v6978_v60, 0  ;;  %v618_v42 = vadd.f32 %v5900_v63, %v6826_v40  ;;  %v7044_v49 = vld [vmem:[#allocation2 + $0x1c] sm:$0xf]  ;;  %v5885_v15 = vpop.f32.mrf.mxu0 }
 0x10c   : > { %816 = vst.msk [vmem:[#allocation2 + $0x2c] sm:$0xf] %vm9392_vm0, %v5533_v57  ;;  %832 = vst.msk [vmem:[#allocation2 + $0x6c] sm:$0xf] %vm9392_vm0, %v5549_v20  ;;  %v5531_v48 = vpack.c.bf16 %v645_v12, %v645_v12  ;;  %v5547_v55 = vpack.c.bf16 %v661_v23, %v661_v23  ;;  %v546_v44 = vadd.f32 %v6826_v40, %v545_v17  ;;  %v2336_v16 = vsel %vm6402_vm9, %v7044_v49, 0 }
 0x10d   : > { %v5364_v47 = vcombine.low %v6513_v3, %v2232_v2  ;;  %v650_v13 = vmax.f32 %v554_v43, 0.0  ;;  %v7051_v63 = vld [vmem:[#allocation2 + $0x14] sm:$0xf]  ;;  %v610_v57 = vadd.f32 %v6826_v40, %v609_v5  ;;  %v7056_v20 = vcombine.low %v6978_v60, %v7044_v49  ;;  %v5901_v2 = vpop.f32.mrf.mxu1  ;;  %v548_v5 = vpop.f32.mrf.mxu0 }
 0x10e   : > { %814 = vst.msk [vmem:[#allocation2 + $0x24] sm:$0xf] %vm9392_vm0, %v5531_v48  ;;  %830 = vst.msk [vmem:[#allocation2 + $0x64] sm:$0xf] %vm9392_vm0, %v5547_v55  ;;  %v5417_v3 = vcombine.low %v2335_v28, %v2336_v16  ;;  %v648_v12 = vmax.f32 %v546_v44, 0.0  ;;  %v557_v23 = vadd.f32 %v5885_v15, %v6826_v40  ;;  %v2233_v43 = vsel %vm6968_vm11, %v7051_v63, 0 }
 0x10f   : > { %2942 = vrot.lane.b32.xlu0 %v5364_v47, %s6226_s15  ;;  %v7065_v17 = vld [vmem:[#allocation2 + $0x54] sm:$0xf]  ;;  %v9615_v16 = vsel %vm6391_vm7, %v6389_v37, %v6558_v24  ;;  %v5536_v15 = vpack.c.bf16 %v650_v13, %v650_v13  ;;  %v5365_v48 = vcombine.low %v2233_v43, %v2234_v62  ;;  %v2301_v55 = vsel %vm9389_vm13, %v2298_v54, 0  ;;  %v7079_v47 = vld [vmem:[#allocation2 + $0x58] sm:$0xf]  ;;  %v5888_v54 = vpop.f32.mrf.mxu0 }
 0x110   : > { %vm7073_vm5 = vcmp.ne.s16.totalorder %v9615_v16, 0  ;;  %v666_v44 = vmax.f32 %v618_v42, 0.0  ;;  %v7081_v53 = vrot.slane %v5417_v3, 5  ;;  %v5534_v25 = vpack.c.bf16 %v648_v12, %v648_v12 }
 0x111   : > { %v651_v10 = vmax.f32 %v557_v23, 0.0  ;;  %v549_v31 = vadd.f32 %v6826_v40, %v548_v5  ;;  %v9618_v24 = vsel %vm6391_vm7, %v6389_v37, %v6575_v34  ;;  %819 = vst.msk [vmem:[#allocation2 + $0x38] sm:$0xf] %vm9392_vm0, %v5536_v15  ;;  %2944 = vrot.lane.b32.xlu1 %v5365_v48, %s6226_s15  ;;  %v5399_v62 = vcombine.low %v2301_v55, %v2302_v27  ;;  %v612_v15 = vpop.f32.mrf.mxu1  ;;  %v561_v27 = vpop.f32.mrf.mxu0 }
 0x112   : > { %vm7090_vm4 = vcmp.ne.s16.totalorder %v9618_v24, 0  ;;  %v5552_v42 = vpack.c.bf16 %v666_v44, %v666_v44  ;;  %v664_v3 = vmax.f32 %v610_v57, 0.0  ;;  %v2249_v12 = vsel %vm7002_vm15, %v7065_v17, 0  ;;  %817 = vst.msk [vmem:[#allocation2 + $0x30] sm:$0xf] %vm9392_vm0, %v5534_v25 }
 0x113   : > { %v5537_v23 = vpack.c.bf16 %v651_v10, %v651_v10  ;;  %v649_v34 = vmax.f32 %v549_v31, 0.0  ;;  %v570_v43 = vadd.f32 %v5888_v54, %v6826_v40  ;;  %v2250_v16 = vsel %vm6985_vm10, %v7079_v47, 0  ;;  %3223 = vrot.lane.b32.xlu0 %v5399_v62, %s6224_s20  ;;  %v5889_v24 = vpop.f32.mrf.mxu0 }
 0x114   : > { %835 = vst.msk [vmem:[#allocation2 + $0x78] sm:$0xf] %vm9392_vm0, %v5552_v42  ;;  %v5550_v57 = vpack.c.bf16 %v664_v3, %v664_v3  ;;  %v5373_v5 = vcombine.low %v2249_v12, %v2250_v16  ;;  %v2317_v25 = vsel %vm7011_vm2, %v7065_v17, 0  ;;  %v2318_v10 = vsel %vm7020_vm3, %v7079_v47, 0 }
 0x115   : > { %820 = vst.msk [vmem:[#allocation2 + $0x3c] sm:$0xf] %vm9392_vm0, %v5537_v23  ;;  %v5535_v31 = vpack.c.bf16 %v649_v34, %v649_v34  ;;  %v654_v48 = vmax.f32 %v570_v43, 0.0  ;;  %v562_v55 = vadd.f32 %v6826_v40, %v561_v27  ;;  %v5407_v44 = vcombine.low %v2317_v25, %v2318_v10  ;;  %v7126_v16 = vld [vmem:[#allocation2 + $0x24] sm:$0xf] }
 0x116   : > { %833 = vst.msk [vmem:[#allocation2 + $0x70] sm:$0xf] %vm9392_vm0, %v5550_v57  ;;  %2960 = vrot.lane.b32.xlu1 %v5373_v5, %s6226_s15  ;;  %v621_v54 = vadd.f32 %v5901_v2, %v6826_v40  ;;  %v613_v62 = vadd.f32 %v6826_v40, %v612_v15  ;;  %v2265_v42 = vsel %vm2162_vm8, %v7027_v26, 0  ;;  %v2266_v3 = vsel %vm6402_vm9, %v7051_v63, 0  ;;  %v564_v15 = vpop.f32.mrf.mxu0 }
 0x117   : > { %818 = vst.msk [vmem:[#allocation2 + $0x34] sm:$0xf] %vm9392_vm0, %v5535_v31  ;;  %v5540_v12 = vpack.c.bf16 %v654_v48, %v654_v48  ;;  %v652_v23 = vmax.f32 %v562_v55, 0.0  ;;  %v573_v34 = vadd.f32 %v5889_v24, %v6826_v40  ;;  %v5382_v43 = vcombine.low %v2265_v42, %v2266_v3  ;;  %3239 = vrot.lane.b32.xlu0 %v5407_v44, %s6224_s20  ;;  %v7137_v48 = vld [vmem:[#allocation2 + $0x20] sm:$0xf] }
 0x118   : > { %v667_v2 = vmax.f32 %v621_v54, 0.0  ;;  %v665_v27 = vmax.f32 %v613_v62, 0.0  ;;  %vm9621_vm8 = vcmp.ne.s16.totalorder %v6552_v21, 0  ;;  %v2198_v45 = vsel %vm7073_vm5, %v7051_v63, 0 }
 0x119   : > { %v2197_v57 = vsel %vm9621_vm8, %v7027_v26, 0  ;;  %823 = vst.msk [vmem:[#allocation2 + $0x48] sm:$0xf] %vm9392_vm0, %v5540_v12  ;;  %v5538_v5 = vpack.c.bf16 %v652_v23, %v652_v23  ;;  %v655_v25 = vmax.f32 %v573_v34, 0.0  ;;  %v565_v10 = vadd.f32 %v6826_v40, %v564_v15  ;;  %vm9622_vm9 = vmmov %vm9621_vm8  ;;  %v7147_v12 = vld [vmem:[#allocation2 + $0x28] sm:$0xf] }
 0x11a   : > { %v3073_v31 = vrot.slane %v5382_v43, 5  ;;  %v5553_v55 = vpack.c.bf16 %v667_v2, %v667_v2  ;;  %v5551_v44 = vpack.c.bf16 %v665_v27, %v665_v27  ;;  %v2337_v24 = vsel %vm9622_vm9, %v7137_v48, 0  ;;  %v7149_v23 = vld [vmem:[#allocation2 + $0x2c] sm:$0xf]  ;;  %vm9623_vm9 = vmmov %vm9621_vm8 }
 0x11b   : > { %v2338_v54 = vsel %vm7073_vm5, %v7126_v16, 0  ;;  %821 = vst.msk [vmem:[#allocation2 + $0x40] sm:$0xf] %vm9392_vm0, %v5538_v5  ;;  %v5541_v62 = vpack.c.bf16 %v655_v25, %v655_v25  ;;  %v653_v42 = vmax.f32 %v565_v10, 0.0  ;;  %v5348_v40 = vcombine.low %v2197_v57, %v2198_v45 }
 0x11c   : > { %v5418_v3 = vcombine.low %v2337_v24, %v2338_v54  ;;  %836 = vst.msk [vmem:[#allocation2 + $0x7c] sm:$0xf] %vm9392_vm0, %v5553_v55  ;;  %834 = vst.msk [vmem:[#allocation2 + $0x74] sm:$0xf] %vm9392_vm0, %v5551_v44  ;;  %3106 = vrot.lane.b32.xlu0 %v3073_v31, %s6225_s21  ;;  %v2267_v34 = vsel %vm9623_vm9, %v6978_v60, 0  ;;  %v2268_v43 = vsel %vm7073_vm5, %v7044_v49, 0  ;;  %v9624_v27 = vsel %vm6391_vm7, %v6389_v37, %v6637_v59 }
 0x11d   : > { %v2199_v2 = vsel %vm9390_vm6, %v6978_v60, 0  ;;  %v2200_v15 = vsel %vm7090_vm4, %v7044_v49, 0  ;;  %vm7172_vm13 = vcmp.ne.s16.totalorder %v9624_v27, 0  ;;  %v9625_v21 = vmov 0  ;;  %824 = vst.msk [vmem:[#allocation2 + $0x4c] sm:$0xf] %vm9392_vm0, %v5541_v62 }
 0x11e   : > { %v9626_v21 = vsel %vm7172_vm13, 4294967295, %v9625_v21  ;;  %v9628_v28 = vsel %vm6391_vm7, %v6389_v37, %v6654_v18  ;;  %v9629_v60 = vmov 0  ;;  %v5539_v57 = vpack.c.bf16 %v653_v42, %v653_v42 }
 0x11f   : > { %9627 = vst [vmem:[#allocation40_spill] sm:$0xff] %v9626_v21  ;;  %vm7181_vm5 = vcmp.ne.s16.totalorder %v9628_v28, 0  ;;  %v2793_v45 = vrot.slane %v5348_v40, 5  ;;  %v3389_v5 = vrot.slane %v5418_v3, 5  ;;  %v7186_v25 = vcombine.low %v2267_v34, %v2268_v43 }
 0x120   : > { %v9630_v60 = vsel %vm7181_vm5, 4294967295, %v9629_v60  ;;  %v2339_v59 = vsel %vm9390_vm6, %v7147_v12, 0  ;;  %v2340_v10 = vsel %vm7090_vm4, %v7149_v23, 0  ;;  %v7194_v18 = vcombine.low %v2199_v2, %v2200_v15  ;;  %822 = vst.msk [vmem:[#allocation2 + $0x44] sm:$0xf] %vm9392_vm0, %v5539_v57 }
 0x121   : > { %9631 = vst [vmem:[#allocation41_spill] sm:$0xff] %v9630_v60  ;;  %v2549_v55 = vshrl.u32 %v7056_v20, 16  ;;  %v9632_v44 = vrot.slane %v6410_v50, 5  ;;  %vm9633_vm8 = vcmask 1042432   ;;  %v9395_v54 = vrot.slane %v7186_v25, 5 }
 0x122   : > { %v7202_v62 = vcombine.low %v2339_v59, %v2340_v10  ;;  %v2552_v42 = vshll.u32 %v7056_v20, 16  ;;  %v9634_v40 = vsel %vm6484_vm12, %v6477_v46, %v6614_v6  ;;  %v9635_v3 = vmov 0  ;;  %vm9642_vm6 = vmmov %vm9633_vm8  ;;  %v7448_v60 = vld [vmem:[#allocation2 + $0x40] sm:$0xf] }
 0x123   : > { %v2794_v24 = vsel %vm9633_vm8, %v9632_v44, %v2793_v45  ;;  %vm7210_vm1 = vcmp.ne.s16.totalorder %v9634_v40, 0  ;;  %v9394_v50 = vrot.slane %v7194_v18, 5  ;;  %v2551_v34 = vrot.slane %v2549_v55, 4  ;;  %v7243_v44 = vld [vmem:[#allocation2 + $0x50] sm:$0xf]  ;;  %vm9644_vm9 = vmmov %vm9642_vm6 }
 0x124   : > { %v9636_v3 = vsel %vm7210_vm1, 4294967295, %v9635_v3  ;;  %2827 = vrot.lane.b32.xlu1 %v2794_v24, %s6224_s20  ;;  %v2303_v43 = vsel %vm6968_vm11, %v7044_v49, 0  ;;  %v2304_v20 = vsel %vm6922_vm14, %v7137_v48, 0  ;;  %v3075_v6 = vsel %vm9633_vm8, %v3073_v31, %v9395_v54  ;;  %vm9643_vm8 = vmmov %vm9642_vm6  ;;  %v7286_v54 = vld [vmem:[#allocation2 + $0x60] sm:$0xf] }
 0x125   : > { %9637 = vst [vmem:[#allocation42_spill] sm:$0xff] %v9636_v3  ;;  %v9398_v2 = vrot.slane %v7202_v62, 5  ;;  %v2554_v15 = vrot.slane %v2552_v42, 5  ;;  %v5400_v27 = vcombine.low %v2303_v43, %v2304_v20  ;;  %v9638_v28 = vsel %vm6484_vm12, %v6656_v1, %v6444_v14  ;;  %3108 = vrot.lane.b32.xlu0 %v3075_v6, %s6225_s21 }
 0x126   : > { %vm7231_vm0 = vcmp.ne.s16.totalorder %v9638_v28, 0  ;;  %v9639_v57 = vmov 0  ;;  %v2796_v59 = vsel %vm9642_vm6, %v2793_v45, %v9394_v50  ;;  %v3390_v31 = vsel %vm9643_vm8, %v7081_v53, %v3389_v5  ;;  %v7252_v28 = vld [vmem:[#allocation2 + $0x5c] sm:$0xf] }
 0x127   : > { %v9640_v57 = vsel %vm7231_vm0, 4294967295, %v9639_v57  ;;  %v3737_v10 = vshrl.u32 %v7081_v53, 16  ;;  %v3740_v55 = vshll.u32 %v7081_v53, 16  ;;  %v7245_v1 = vor.u32 %v2554_v15, %v2551_v34  ;;  %9645 = vst [vmem:[#allocation44_spill] sm:$0xff] %v7252_v28  ;;  %v7451_v30 = vld [vmem:[#allocation2 + $0x44] sm:$0xf] }
 0x128   : > { %9641 = vst [vmem:[#allocation43_spill] sm:$0xff] %v9640_v57  ;;  %v3745_v24 = vshrl.u32 %v3390_v31, 16  ;;  %v3748_v42 = vshll.u32 %v3390_v31, 16  ;;  %v3392_v40 = vsel %vm9644_vm9, %v3389_v5, %v9398_v2  ;;  %2829 = vrot.lane.b32.xlu1 %v2796_v59, %s6224_s20  ;;  %v9646_v53 = vsel %vm6391_vm7, %v6389_v37, %v6716_v61  ;;  %v7264_v59 = vld [vmem:[#allocation2 + $0x64] sm:$0xf]  ;;  %v6071_v57 = vld [vmem:[%s9354_s3 + $0x38] sm:$0xff]  }
 0x129   : > { %v3739_v45 = vrot.slane %v3737_v10, 3  ;;  %v3742_v43 = vrot.slane %v3740_v55, 4  ;;  %v3770_v20 = vshrl.u32 %v3392_v40, 16  ;;  %v3773_v6 = vshll.u32 %v3392_v40, 16  ;;  %3271 = vrot.lane.b32.xlu0 %v7245_v1, %s6226_s15  ;;  %5711 = vmatpush3.bf16.msra.mxu1 %v6071_v57  ;;  %v6074_v57 = vld [vmem:[%s9354_s3 + $0x68] sm:$0xff]  }
 0x12a   : > { %vm7259_vm6 = vcmp.ne.s16.totalorder %v9646_v53, 0  ;;  %v3747_v5 = vrot.slane %v3745_v24, 3  ;;  %v3750_v15 = vrot.slane %v3748_v42, 4  ;;  %vm9649_vm8 = vcmp.ne.s16.totalorder %v6675_v4, 0 }
 0x12b   : > { %v2281_v31 = vsel %vm9649_vm8, %v7243_v44, 0  ;;  %v2282_v10 = vsel %vm7172_vm13, %v7065_v17, 0  ;;  %v9650_v61 = vsel %vm6391_vm7, %v6389_v37, %v6785_v19  ;;  %v3743_v24 = vor.u32 %v3742_v43, %v3739_v45 }
 0x12c   : > { %vm7277_vm14 = vcmp.ne.s16.totalorder %v9650_v61, 0  ;;  %v3772_v42 = vrot.slane %v3770_v20, 3  ;;  %v3775_v40 = vrot.slane %v3773_v6, 4  ;;  %vm9653_vm8 = vcmp.ne.s16.totalorder %v6691_v33, 0  ;;  %3225 = vrot.lane.b32.xlu1 %v5400_v27, %s6224_s20  ;;  %v7315_v27 = vld [vmem:[#allocation2 + $0x30] sm:$0xf] }
 0x12d   : > { %v2283_v53 = vsel %vm9653_vm8, %v7079_v47, 0  ;;  %v3751_v50 = vor.u32 %v3750_v15, %v3747_v5  ;;  %v2284_v19 = vsel %vm7181_vm5, %v7252_v28, 0  ;;  %vm9654_vm9 = vcmp.ne.s16.totalorder %v6675_v4, 0 }
 0x12e   : > { %v2351_v61 = vsel %vm9654_vm9, %v7079_v47, 0  ;;  %v2352_v45 = vsel %vm7172_vm13, %v7252_v28, 0  ;;  %v7298_v43 = vor.u32 %v3775_v40, %v3772_v42  ;;  %v2353_v20 = vsel %vm9653_vm8, %v7286_v54, 0  ;;  %v7317_v42 = vld [vmem:[#allocation2 + $0x38] sm:$0xf] }
 0x12f   : > { %v2354_v6 = vsel %vm7181_vm5, %v7264_v59, 0  ;;  %v7306_v5 = vcombine.low %v2281_v31, %v2282_v10  ;;  %vm9656_vm3 = vsmask.f32 4352  ;;  %v7309_v2 = vcombine.low %v2283_v53, %v2284_v19  ;;  %v7329_v53 = vld [vmem:[#allocation2 + $0x34] sm:$0xf] }
 0x130   : > { %v3752_v15 = vsel %vm9656_vm3, %v3743_v24, %v3751_v50  ;;  %v7311_v52 = vcombine.low %v2351_v61, %v2352_v45  ;;  %v7313_v39 = vcombine.low %v2353_v20, %v2354_v6  ;;  %vm9658_vm9 = vcmask 261120   ;;  %vm9659_vm8 = vmmov %vm9656_vm3  ;;  %v7335_v20 = vld [vmem:[#allocation2 + $0x3c] sm:$0xf] }
 0x131   : > { %9655 = vst [vmem:[#allocation45_spill] sm:$0xff] %v7306_v5  ;;  %9657 = vst [vmem:[#allocation46_spill] sm:$0xff] %v7309_v2  ;;  %5910 = vmatprep.mubr.msk.bf16.mxu0 %vm9658_vm9, %v3752_v15  ;;  %v3777_v40 = vsel %vm9659_vm8, %v3751_v50, %v7298_v43  ;;  %v9406_v31 = vrot.slane %v7306_v5, 5  ;;  %v2235_v10 = vsel %vm7210_vm1, %v7044_v49, 0  ;;  %v2236_v24 = vsel %vm7231_vm0, %v7137_v48, 0 }
 0x132   : > { %vm9660_vm3 = vmmov %vm9658_vm9  ;;  %v9403_v19 = vrot.slane %v7309_v2, 5  ;;  %v5366_v45 = vcombine.low %v2235_v10, %v2236_v24  ;;  %v2319_v49 = vsel %vm7002_vm15, %v7252_v28, 0  ;;  %v2320_v6 = vsel %vm6985_vm10, %v7286_v54, 0 }
 0x133   : > { %5911 = vmatmul.mubr.msk.bf16.vlgmr.msra.gmra.mxu0 %vm9660_vm3, %v3777_v40  ;;  %v5332_v15 = vcombine.low %v7027_v26, %v7051_v63  ;;  %vm9661_vm9 = vcmp.ne.s16.totalorder %v6758_v7, 0  ;;  %vm9662_vm8 = vcmask 1042432   ;;  %v5408_v24 = vcombine.low %v2319_v49, %v2320_v6 }
 0x134   : > { %v2341_v40 = vsel %vm9661_vm9, %v7315_v27, 0  ;;  %v3091_v10 = vsel %vm9662_vm8, %v9406_v31, %v9403_v19  ;;  %2946 = vrot.lane.b32.xlu1 %v5366_v45, %s6226_s15  ;;  %v2342_v50 = vsel %vm7259_vm6, %v7329_v53, 0  ;;  %vm9663_vm3 = vcmp.ne.s16.totalorder %v6782_v36, 0  ;;  %v9680_v31 = vld [vmem:[#allocation12_spill] sm:$0xff] }
 0x135   : > { %v2343_v26 = vsel %vm9663_vm3, %v7317_v42, 0  ;;  %3124 = vrot.lane.b32.xlu0 %v3091_v10, %s6225_s21  ;;  %v2540_v63 = vshrl.u32 %v5332_v15, 16  ;;  %v2543_v61 = vshll.u32 %v5332_v15, 16  ;;  %v5420_v9 = vcombine.low %v2341_v40, %v2342_v50 }
 0x136   : > { %v2344_v19 = vsel %vm7277_vm14, %v7335_v20, 0  ;;  %v9664_v45 = vsel %vm6484_vm12, %v6477_v46, %v6646_v8  ;;  %v9665_v49 = vmov 0  ;;  %v9668_v6 = vsel %vm6484_vm12, %v6718_v22, %v6444_v14 }
 0x137   : > { %vm7369_vm9 = vcmp.ne.s16.totalorder %v9664_v45, 0  ;;  %vm7378_vm8 = vcmp.ne.s16.totalorder %v9668_v6, 0  ;;  %v9669_v50 = vmov 0  ;;  %v7383_v15 = vcombine.low %v2343_v26, %v2344_v19  ;;  %v9675_v26 = vld [vmem:[#allocation19_spill] sm:$0xff] }
 0x138   : > { %v9666_v49 = vsel %vm7369_vm9, 4294967295, %v9665_v49  ;;  %v9670_v50 = vsel %vm7378_vm8, 4294967295, %v9669_v50  ;;  %v5340_v8 = vcombine.low %v7243_v44, %v7065_v17  ;;  %v5341_v40 = vcombine.low %v7079_v47, %v7252_v28  ;;  %v9679_v6 = vld [vmem:[#allocation15_spill] sm:$0xff] }
 0x139   : > { %9667 = vst [vmem:[#allocation47_spill] sm:$0xff] %v9666_v49  ;;  %9671 = vst [vmem:[#allocation48_spill] sm:$0xff] %v9670_v50  ;;  %v2305_v10 = vsel %vm7210_vm1, %v7126_v16, 0  ;;  %v9672_v22 = vsel %vm6391_vm7, %v6389_v37, %v6802_v0  ;;  %v9676_v47 = vsel %vm6391_vm7, %v6389_v37, %v9675_v26  ;;  %v9681_v0 = vsel %vm6391_vm7, %v6389_v37, %v9680_v31 }
 0x13a   : > { %vm7398_vm3 = vcmp.ne.s16.totalorder %v9672_v22, 0  ;;  %vm7407_vm15 = vcmp.ne.s16.totalorder %v9676_v47, 0  ;;  %vm7417_vm1 = vcmp.ne.s16.totalorder %v9681_v0, 0  ;;  %v2542_v26 = vrot.slane %v2540_v63, 4  ;;  %3241 = vrot.lane.b32.xlu0 %v5408_v24, %s6224_s20 }
 0x13b   : > { %v2545_v47 = vrot.slane %v2543_v61, 5  ;;  %v3393_v3 = vrot.slane %v5420_v9, 5  ;;  %v2306_v2 = vsel %vm7231_vm0, %v7147_v12, 0  ;;  %v2612_v5 = vshrl.u32 %v5340_v8, 16 }
 0x13c   : > { %v2615_v28 = vshll.u32 %v5340_v8, 16  ;;  %v2621_v31 = vshrl.u32 %v5341_v40, 16  ;;  %v9685_v33 = vrot.slane %v7202_v62, 5  ;;  %vm9686_vm10 = vcmask 1042432   ;;  %v6072_v8 = vld [vmem:[%s9354_s3 + $0x70] sm:$0xff]  }
 0x13d   : > { %v7429_v0 = vor.u32 %v2545_v47, %v2542_v26  ;;  %v2624_v61 = vshll.u32 %v5341_v40, 16  ;;  %v7434_v9 = vcombine.low %v2305_v10, %v2306_v2  ;;  %v9687_v24 = vrot.slane %v7383_v15, 5  ;;  %vm9688_vm0 = vmmov %vm9686_vm10  ;;  %5712 = vmatprep.subr.bf16.mxu1 %v6072_v8 }
 0x13e   : > { %v3394_v63 = vsel %vm9686_vm10, %v9685_v33, %v3393_v3  ;;  %v2614_v62 = vrot.slane %v2612_v5, 4  ;;  %v9689_v33 = vld [vmem:[#allocation10_spill] sm:$0xff]  ;;  %vm9690_vm10 = vsmask.f32 3328  ;;  %v2617_v47 = vrot.slane %v2615_v28, 5 }
 0x13f   : > { %9684 = vst [vmem:[#allocation19_spill] sm:$0xff] %v7429_v0  ;;  %v3795_v41 = vshrl.u32 %v3394_v63, 16  ;;  %v3798_v11 = vshll.u32 %v3394_v63, 16  ;;  %v3396_v26 = vsel %vm9688_vm0, %v3393_v3, %v9687_v24  ;;  %v2547_v2 = vsel %vm9690_vm10, %v9689_v33, %v7429_v0  ;;  %vm9692_vm0 = vmmov %vm9690_vm10 }
 0x140   : > { %v3820_v40 = vshrl.u32 %v3396_v26, 16  ;;  %v3823_v10 = vshll.u32 %v3396_v26, 16  ;;  %2676 = vrot.lane.b32.xlu1 %v2547_v2, %s6225_s21  ;;  %v2623_v63 = vrot.slane %v2621_v31, 4  ;;  %v2626_v4 = vrot.slane %v2624_v61, 5  ;;  %v7460_v26 = vld [vmem:[#allocation2 + $0x48] sm:$0xf] }
 0x141   : > { %v3797_v35 = vrot.slane %v3795_v41, 3  ;;  %v3800_v21 = vrot.slane %v3798_v11, 4  ;;  %v7453_v24 = vor.u32 %v2617_v47, %v2614_v62  ;;  %v7458_v28 = vsel %vm9692_vm0, %v7429_v0, %v7245_v1  ;;  %v6073_v11 = vld [vmem:[%s9354_s3 + $0x30] sm:$0xff]   ;;  %v7476_v62 = vld [vmem:[#allocation2 + $0x4c] sm:$0xf] }
 0x142   : > { %v3822_v3 = vrot.slane %v3820_v40, 3  ;;  %v3825_v5 = vrot.slane %v3823_v10, 4  ;;  %9693 = vst [vmem:[#allocation12_spill] sm:$0xff] %v7458_v28  ;;  %v7468_v61 = vor.u32 %v2626_v4, %v2623_v63  ;;  %v2237_v8 = vsel %vm7369_vm9, %v7126_v16, 0  ;;  %5713 = vmatpush3.bf16.msra.mxu1 %v6073_v11  ;;  %v6075_v11 = vld [vmem:[%s9354_s3 + $0x28] sm:$0xff]  }
 0x143   : > { %9691 = vst [vmem:[#allocation15_spill] sm:$0xff] %v7453_v24  ;;  %v3801_v31 = vor.u32 %v3800_v21, %v3797_v35  ;;  %v2238_v41 = vsel %vm7378_vm8, %v7147_v12, 0  ;;  %vm9694_vm10 = vcmp.ne.s16.totalorder %v6839_v32, 0  ;;  %v2346_v4 = vsel %vm7398_vm3, %v7451_v30, 0  ;;  %5714 = vmatprep.subr.bf16.mxu1 %v6074_v57  ;;  %v6076_v57 = vld [vmem:[%s9354_s3 + $0x60] sm:$0xff]  }
 0x144   : > { %v7478_v33 = vor.u32 %v3825_v5, %v3822_v3  ;;  %v5367_v2 = vcombine.low %v2237_v8, %v2238_v41  ;;  %v2345_v40 = vsel %vm9694_vm10, %v7448_v60, 0  ;;  %vm9695_vm0 = vsmask.f32 4352  ;;  %2678 = vrot.lane.b32.xlu1 %v7458_v28, %s6225_s21 }
 0x145   : > { %v3802_v35 = vsel %vm9695_vm0, %v7298_v43, %v3801_v31  ;;  %vm9696_vm5 = vsmask.f32 3328  ;;  %v5422_v10 = vcombine.low %v2345_v40, %v2346_v4  ;;  %vm9698_vm10 = vcmp.ne.s16.totalorder %v6848_v29, 0  ;;  %vm9700_vm2 = vmmov %vm9695_vm0 }
 0x146   : > { %v7491_v21 = vsel %vm9696_vm5, %v7453_v24, %v7468_v61  ;;  %v2347_v47 = vsel %vm9698_vm10, %v7460_v26, 0  ;;  %vm9699_vm13 = vcmask 261120   ;;  %v3827_v63 = vsel %vm9700_vm2, %v3801_v31, %v7478_v33  ;;  %5715 = vmatpush3.bf16.msra.mxu1 %v6075_v11  ;;  %v7742_v24 = vld [vmem:[#allocation2 + $0x7c] sm:$0xf] }
 0x147   : > { %9697 = vst [vmem:[#allocation10_spill] sm:$0xff] %v7491_v21  ;;  %5914 = vmatprep.mubr.msk.bf16.mxu0 %vm9699_vm13, %v3802_v35  ;;  %3287 = vrot.lane.b32.xlu0 %v7491_v21, %s6226_s15  ;;  %v2348_v43 = vsel %vm7407_vm15, %v7476_v62, 0  ;;  %vm9701_vm5 = vcmp.ne.s16.totalorder %v9679_v6, 0  ;;  %v2350_v5 = vsel %vm7417_vm1, %v7065_v17, 0  ;;  %v3397_v31 = vrot.slane %v5422_v10, 5 }
 0x148   : > { %v2349_v3 = vsel %vm9701_vm5, %v7243_v44, 0  ;;  %5915 = vmatmul.mubr.msk.bf16.gmra.mxu0 %vm9699_vm13, %v3827_v63  ;;  %v5423_v8 = vcombine.low %v2347_v47, %v2348_v43  ;;  %vm9702_vm2 = vcmp.ne.s16.totalorder %v6597_v56, 0  ;;  %v2270_v17 = vsel %vm7090_vm4, %v7126_v16, 0  ;;  %2948 = vrot.lane.b32.xlu1 %v5367_v2, %s6226_s15 }
 0x149   : > { %v5424_v41 = vcombine.low %v2349_v3, %v2350_v5  ;;  %v2269_v40 = vsel %vm9702_vm2, %v7137_v48, 0  ;;  %vm9703_vm0 = vcmp.ne.s16.totalorder %v6758_v7, 0  ;;  %v2202_v35 = vsel %vm7259_vm6, %v7126_v16, 0  ;;  %5716 = vmatprep.subr.bf16.mxu1 %v6076_v57 }
 0x14a   : > { %v2201_v4 = vsel %vm9703_vm0, %v7137_v48, 0  ;;  %vm9704_vm10 = vmmov %vm9703_vm0  ;;  %v9705_v56 = vrot.slane %v7383_v15, 5  ;;  %vm9706_vm5 = vcmask 1042432   ;;  %v3399_v47 = vrot.slane %v5423_v8, 5  ;;  %v9707_v15 = vld [vmem:[#allocation16_spill] sm:$0xff] }
 0x14b   : > { %v2271_v10 = vsel %vm9704_vm10, %v7147_v12, 0  ;;  %v3401_v63 = vrot.slane %v5424_v41, 5  ;;  %v5384_v43 = vcombine.low %v2269_v40, %v2270_v17  ;;  %3227 = vrot.lane.b32.xlu0 %v7434_v9, %s6224_s20  ;;  %v7540_v28 = vcombine.low %v2201_v4, %v2202_v35  ;;  %v6077_v9 = vld [vmem:[%s9354_s3 + $0x20] sm:$0xff]   ;;  %vm9712_vm13 = vmmov %vm9706_vm5  ;;  %v9714_v40 = vld [vmem:[#allocation24_spill] sm:$0xff] }
 0x14c   : > { %v3398_v13 = vsel %vm9706_vm5, %v9705_v56, %v3397_v31  ;;  %v2272_v7 = vsel %vm7259_vm6, %v7149_v23, 0  ;;  %v9708_v2 = vsel %vm6484_vm12, %v6477_v46, %v9707_v15  ;;  %v9709_v11 = vmov 0  ;;  %vm9713_vm2 = vmmov %vm9706_vm5  ;;  %v6078_v35 = vld [vmem:[%s9354_s3 + $0x58] sm:$0xff]   ;;  %5717 = vmatpush3.bf16.msra.mxu1 %v6077_v9  ;;  %v9722_v9 = vld [vmem:[#allocation18_spill] sm:$0xff] }
 0x14d   : > { %v3845_v3 = vshrl.u32 %v3398_v13, 16  ;;  %v3848_v5 = vshll.u32 %v3398_v13, 16  ;;  %vm7550_vm4 = vcmp.ne.s16.totalorder %v9708_v2, 0  ;;  %v3400_v57 = vsel %vm9712_vm13, %v3397_v31, %v3399_v47  ;;  %vm9720_vm0 = vmmov %vm9713_vm2  ;;  %5718 = vmatprep.subr.bf16.mxu1 %v6078_v35 }
 0x14e   : > { %v9710_v11 = vsel %vm7550_vm4, 4294967295, %v9709_v11  ;;  %v3402_v8 = vsel %vm9713_vm2, %v3399_v47, %v3401_v63  ;;  %v3076_v41 = vrot.slane %v5384_v43, 5  ;;  %v7559_v34 = vcombine.low %v2271_v10, %v2272_v7  ;;  %vm9727_vm13 = vmmov %vm9720_vm0 }
 0x14f   : > { %9711 = vst [vmem:[#allocation16_spill] sm:$0xff] %v9710_v11  ;;  %v9715_v17 = vsel %vm6484_vm12, %v9714_v40, %v6444_v14  ;;  %v9716_v4 = vmov 0  ;;  %v3847_v56 = vrot.slane %v3845_v3, 3  ;;  %v3850_v31 = vrot.slane %v3848_v5, 4  ;;  %v9721_v5 = vld [vmem:[#allocation20_spill] sm:$0xff]  ;;  %vm9730_vm10 = vmmov %vm9727_vm13 }
 0x150   : > { %vm7566_vm6 = vcmp.ne.s16.totalorder %v9715_v17, 0  ;;  %v3870_v13 = vshrl.u32 %v3400_v57, 16  ;;  %v3873_v47 = vshll.u32 %v3400_v57, 16  ;;  %v3895_v10 = vshrl.u32 %v3402_v8, 16 }
 0x151   : > { %v9717_v4 = vsel %vm7566_vm6, 4294967295, %v9716_v4  ;;  %v3898_v43 = vshll.u32 %v3402_v8, 16  ;;  %v9719_v7 = vrot.slane %v7186_v25, 5  ;;  %v2797_v2 = vrot.slane %v7540_v28, 5  ;;  %v6079_v28 = vld [vmem:[%s9354_s3 + $0x18] sm:$0xff]   ;;  %v6080_v8 = vld [vmem:[%s9354_s3 + $0x50] sm:$0xff]  }
 0x152   : > { %9718 = vst [vmem:[#allocation24_spill] sm:$0xff] %v9717_v4  ;;  %v3851_v40 = vor.u32 %v3850_v31, %v3847_v56  ;;  %v3872_v17 = vrot.slane %v3870_v13, 3  ;;  %v3875_v0 = vrot.slane %v3873_v47, 4  ;;  %v9432_v3 = vrot.slane %v7559_v34, 5  ;;  %5719 = vmatpush3.bf16.msra.mxu1 %v6079_v28 }
 0x153   : > { %v3077_v15 = vsel %vm9720_vm0, %v9719_v7, %v3076_v41  ;;  %v9723_v57 = vsel %vm6391_vm7, %v6389_v37, %v9722_v9  ;;  %v3897_v35 = vrot.slane %v3895_v10, 3  ;;  %v3900_v56 = vrot.slane %v3898_v43, 4  ;;  %v9731_v10 = vld [vmem:[#allocation27_spill] sm:$0xff]  ;;  %5720 = vmatprep.subr.bf16.mxu1 %v6080_v8 }
 0x154   : > { %3110 = vrot.lane.b32.xlu0 %v3077_v15, %s6225_s21  ;;  %vm7585_vm5 = vcmp.ne.s16.totalorder %v9723_v57, 0  ;;  %v9726_v31 = vrot.slane %v7194_v18, 5  ;;  %vm9728_vm2 = vcmp.ne.s16.totalorder %v6782_v36, 0  ;;  %vm9729_vm0 = vsmask.f32 4352 }
 0x155   : > { %v2203_v47 = vsel %vm9728_vm2, %v7147_v12, 0  ;;  %v3852_v7 = vsel %vm9729_vm0, %v7478_v33, %v3851_v40  ;;  %v3876_v15 = vor.u32 %v3875_v0, %v3872_v17  ;;  %v3079_v9 = vsel %vm9730_vm10, %v3076_v41, %v9432_v3  ;;  %vm9734_vm2 = vmmov %vm9730_vm10 }
 0x156   : > { %v2798_v13 = vsel %vm9727_vm13, %v9726_v31, %v2797_v2  ;;  %v2204_v18 = vsel %vm7277_vm14, %v7149_v23, 0  ;;  %vm9438_vm13 = vcmp.ne.s16.totalorder %v9731_v10, 0  ;;  %vm9732_vm11 = vcmask 261120   ;;  %vm9737_vm10 = vmmov %vm9734_vm2 }
 0x157   : > { %2831 = vrot.lane.b32.xlu1 %v2798_v13, %s6224_s20  ;;  %5918 = vmatprep.mubr.msk.bf16.mxu0 %vm9732_vm11, %v3852_v7  ;;  %v3901_v43 = vor.u32 %v3900_v56, %v3897_v35  ;;  %v7612_v57 = vcombine.low %v2203_v47, %v2204_v18  ;;  %v9733_v0 = vrot.slane %v7311_v52, 5  ;;  %v9735_v17 = vrot.slane %v7313_v39, 5  ;;  %v9738_v13 = vld [vmem:[#allocation21_spill] sm:$0xff]  ;;  %v6081_v52 = vld [vmem:[%s9354_s3 + $0x10] sm:$0xff]  }
 0x158   : > { %v9739_v28 = vsel %vm6391_vm7, %v6389_v37, %v9738_v13  ;;  %v9740_v7 = vmov 0  ;;  %vm9743_vm11 = vsmask.f32 4352  ;;  %3112 = vrot.lane.b32.xlu0 %v3079_v9, %s6225_s21  ;;  %v7642_v9 = vld [vmem:[#allocation2 + $0x68] sm:$0xf]  ;;  %v2308_v13 = vsel %vm7378_vm8, %v7315_v27, 0  ;;  %5721 = vmatpush3.bf16.msra.mxu1 %v6081_v52 }
 0x159   : > { %v3404_v33 = vsel %vm9734_vm2, %v3401_v63, %v9733_v0  ;;  %v9736_v41 = vmov %v9733_v0  ;;  %vm7627_vm0 = vcmp.ne.s16.totalorder %v9739_v28, 0  ;;  %v3877_v35 = vsel %vm9743_vm11, %v3851_v40, %v3876_v15  ;;  %v7648_v28 = vld [vmem:[#allocation2 + $0x6c] sm:$0xf] }
 0x15a   : > { %v3406_v31 = vsel %vm9737_vm10, %v9736_v41, %v9735_v17  ;;  %v9741_v7 = vsel %vm7627_vm0, 4294967295, %v9740_v7  ;;  %v3920_v63 = vshrl.u32 %v3404_v33, 16  ;;  %v3923_v56 = vshll.u32 %v3404_v33, 16  ;;  %vm9745_vm10 = vmmov %vm9743_vm11 }
 0x15b   : > { %9742 = vst [vmem:[#allocation20_spill] sm:$0xff] %v9741_v7  ;;  %v3945_v47 = vshrl.u32 %v3406_v31, 16  ;;  %vm9744_vm2 = vcmask 261120   ;;  %v3902_v18 = vsel %vm9745_vm10, %v3876_v15, %v3901_v43  ;;  %v9433_v0 = vrot.slane %v7612_v57, 5  ;;  %v9747_v15 = vld [vmem:[#allocation29_spill] sm:$0xff] }
 0x15c   : > { %5919 = vmatmul.mubr.msk.bf16.gmra.mxu0 %vm9744_vm2, %v3877_v35  ;;  %v3948_v17 = vshll.u32 %v3406_v31, 16  ;;  %v2307_v40 = vsel %vm7369_vm9, %v7149_v23, 0  ;;  %vm9746_vm11 = vmmov %vm9744_vm2  ;;  %v3922_v8 = vrot.slane %v3920_v63, 3  ;;  %v3925_v33 = vrot.slane %v3923_v56, 4 }
 0x15d   : > { %5922 = vmatprep.mubr.msk.bf16.mxu0 %vm9746_vm11, %v3902_v18  ;;  %v3947_v41 = vrot.slane %v3945_v47, 3  ;;  %vm9748_vm10 = vcmask 1042432   ;;  %v5402_v3 = vcombine.low %v2307_v40, %v2308_v13  ;;  %v2239_v63 = vsel %vm7550_vm4, %v7149_v23, 0 }
 0x15e   : > { %v2800_v31 = vsel %vm9748_vm10, %v2797_v2, %v9433_v0  ;;  %v3950_v35 = vrot.slane %v3948_v17, 4  ;;  %v3926_v56 = vor.u32 %v3925_v33, %v3922_v8  ;;  %v2240_v47 = vsel %vm7566_vm6, %v7315_v27, 0  ;;  %v7665_v2 = vld [vmem:[#allocation2 + $0x70] sm:$0xf] }
 0x15f   : > { %2833 = vrot.lane.b32.xlu1 %v2800_v31, %s6224_s20  ;;  %v5334_v52 = vcombine.low %v7137_v48, %v7126_v16  ;;  %v5335_v18 = vcombine.low %v7147_v12, %v7149_v23  ;;  %9749 = vst [vmem:[#allocation18_spill] sm:$0xff] %v7665_v2  ;;  %v9750_v17 = vld [vmem:[#allocation28_spill] sm:$0xff]  ;;  %3229 = vrot.lane.b32.xlu0 %v5402_v3, %s6224_s20  ;;  %vm9754_vm10 = vcmp.ne.s16.totalorder %v9721_v5, 0  ;;  %v2356_v48 = vsel %vm7585_vm5, %v7648_v28, 0  ;;  %v6082_v3 = vld [vmem:[%s9354_s3 + $0x48] sm:$0xff]  }
 0x160   : > { %v9751_v40 = vsel %vm6391_vm7, %v6389_v37, %v9750_v17  ;;  %v7676_v8 = vor.u32 %v3950_v35, %v3947_v41  ;;  %v5368_v33 = vcombine.low %v2239_v63, %v2240_v47  ;;  %v2355_v16 = vsel %vm9754_vm10, %v7642_v9, 0  ;;  %v7685_v12 = vld [vmem:[#allocation2 + $0x74] sm:$0xf]  ;;  %v6083_v41 = vld [vmem:[%s9354_s3 + $0x8] sm:$0xff]   ;;  %5722 = vmatprep.subr.bf16.mxu1 %v6082_v3 }
 0x161   : > { %vm7672_vm11 = vcmp.ne.s16.totalorder %v9751_v40, 0  ;;  %9755 = vst [vmem:[#allocation27_spill] sm:$0xff] %v7685_v12  ;;  %vm9756_vm2 = vsmask.f32 4352  ;;  %v2558_v31 = vshrl.u32 %v5334_v52, 16  ;;  %v2561_v17 = vshll.u32 %v5334_v52, 16  ;;  %5723 = vmatpush3.bf16.msra.mxu1 %v6083_v41 }
 0x162   : > { %v3927_v23 = vsel %vm9756_vm2, %v3901_v43, %v3926_v56  ;;  %v2567_v40 = vshrl.u32 %v5335_v18, 16  ;;  %vm9757_vm10 = vmmov %vm9756_vm2  ;;  %v2570_v63 = vshll.u32 %v5335_v18, 16  ;;  %v5427_v47 = vcombine.low %v2355_v16, %v2356_v48 }
 0x163   : > { %v3952_v35 = vsel %vm9757_vm10, %v3926_v56, %v7676_v8  ;;  %v2357_v43 = vsel %vm9438_vm13, %v7665_v2, 0  ;;  %2950 = vrot.lane.b32.xlu1 %v5368_v33, %s6226_s15  ;;  %v2560_v52 = vrot.slane %v2558_v31, 4  ;;  %v2563_v0 = vrot.slane %v2561_v17, 5  ;;  %v9759_v33 = vld [vmem:[#allocation17_spill] sm:$0xff] }
 0x164   : > { %v2569_v49 = vrot.slane %v2567_v40, 4  ;;  %v2358_v50 = vsel %vm7627_vm0, %v7685_v12, 0  ;;  %vm9758_vm2 = vcmask 261120   ;;  %v2572_v21 = vrot.slane %v2570_v63, 5  ;;  %v9771_v63 = vld [vmem:[#allocation35_spill] sm:$0xff] }
 0x165   : > { %5923 = vmatmul.mubr.msk.bf16.gmra.mxu0 %vm9758_vm2, %v3927_v23  ;;  %v3407_v56 = vrot.slane %v5427_v47, 5  ;;  %v5428_v18 = vcombine.low %v2357_v43, %v2358_v50  ;;  %v5342_v16 = vcombine.low %v7286_v54, %v7264_v59  ;;  %v9760_v48 = vsel %vm6484_vm12, %v6477_v46, %v9759_v33  ;;  %vm9764_vm13 = vmmov %vm9758_vm2  ;;  %v7716_v23 = vld [vmem:[#allocation2 + $0x78] sm:$0xf]  ;;  %v9766_v50 = vld [vmem:[#allocation26_spill] sm:$0xff] }
 0x166   : > { %vm7711_vm10 = vcmp.ne.s16.totalorder %v9760_v48, 0  ;;  %v9761_v31 = vmov 0  ;;  %5926 = vmatprep.mubr.msk.bf16.mxu0 %vm9764_vm13, %v3952_v35  ;;  %v2564_v17 = vor.u32 %v2563_v0, %v2560_v52  ;;  %9765 = vst [vmem:[#allocation28_spill] sm:$0xff] %v7716_v23  ;;  %v9767_v40 = vsel %vm6484_vm12, %v9766_v50, %v6444_v14  ;;  %v9772_v47 = vld [vmem:[#allocation36_spill] sm:$0xff]  ;;  %v9773_v33 = vld [vmem:[#allocation30_spill] sm:$0xff] }
 0x167   : > { %v9762_v31 = vsel %vm7711_vm10, 4294967295, %v9761_v31  ;;  %vm7723_vm2 = vcmp.ne.s16.totalorder %v9767_v40, 0  ;;  %v9768_v3 = vmov 0  ;;  %v1549_v43 = vor.u32 %v9772_v47, %v9771_v63 }
 0x168   : > { %9763 = vst [vmem:[#allocation21_spill] sm:$0xff] %v9762_v31  ;;  %v9769_v3 = vsel %vm7723_vm2, 4294967295, %v9768_v3  ;;  %v9774_v48 = vshll.u32 %v9773_v33, 16  ;;  %v9775_v0 = vshrl.u32 %v9773_v33, 16  ;;  %v7737_v52 = vor.u32 %v2572_v21, %v2569_v49  ;;  %v6084_v49 = vld [vmem:[%s9354_s3 + $0x40] sm:$0xff]  }
 0x169   : > { %9770 = vst [vmem:[#allocation17_spill] sm:$0xff] %v9769_v3  ;;  %v9776_v12 = vrot.slane %v7313_v39, 5  ;;  %vm9777_vm13 = vcmask 1042432   ;;  %v3409_v40 = vrot.slane %v5428_v18, 5  ;;  %v2630_v2 = vshrl.u32 %v5342_v16, 16  ;;  %v6086_v39 = vld [vmem:[%s9354_s3] sm:$0xff]   ;;  %5724 = vmatprep.subr.bf16.mxu1 %v6084_v49 }
 0x16a   : > { %v7731_v41 = vrot.slane %v9774_v48, 5  ;;  %v7735_v35 = vrot.slane %v9775_v0, 4  ;;  %vm9778_vm9 = vsmask.f32 3328  ;;  %v2633_v38 = vshll.u32 %v5342_v16, 16  ;;  %5725 = vmatpush3.bf16.msra.mxu1 %v6086_v39 }
 0x16b   : > { %v3408_v50 = vsel %vm9777_vm13, %v9776_v12, %v3407_v56  ;;  %v7746_v47 = vsel %vm9778_vm9, %v7245_v1, %v2564_v17  ;;  %vm9780_vm13 = vmmov %vm9778_vm9  ;;  %vm9782_vm9 = vcmask 1042432   ;;  %v2632_v12 = vrot.slane %v2630_v2, 4 }
 0x16c   : > { %9779 = vst [vmem:[#allocation26_spill] sm:$0xff] %v7746_v47  ;;  %v3970_v48 = vshrl.u32 %v3408_v50, 16  ;;  %v3973_v37 = vshll.u32 %v3408_v50, 16  ;;  %v7756_v21 = vsel %vm9780_vm13, %v2564_v17, %v7737_v52  ;;  %3273 = vrot.lane.b32.xlu1 %v7746_v47, %s6226_s15  ;;  %v3410_v1 = vsel %vm9782_vm9, %v3407_v56, %v3409_v40 }
 0x16d   : > { %9781 = vst [vmem:[#allocation35_spill] sm:$0xff] %v7756_v21  ;;  %vm9783_vm8 = vcmp.ne.s16.totalorder %v9747_v15, 0  ;;  %3275 = vrot.lane.b32.xlu0 %v7756_v21, %s6226_s15  ;;  %v3995_v0 = vshrl.u32 %v3410_v1, 16  ;;  %v3998_v50 = vshll.u32 %v3410_v1, 16  ;;  %v2635_v17 = vrot.slane %v2633_v38, 5 }
 0x16e   : > { %v2359_v18 = vsel %vm9783_vm8, %v7716_v23, 0  ;;  %v3972_v16 = vrot.slane %v3970_v48, 3  ;;  %v3975_v33 = vrot.slane %v3973_v37, 4  ;;  %v2360_v7 = vsel %vm7672_vm11, %v7742_v24, 0 }
 0x16f   : > { %vm9784_vm13 = vcmp.ne.s16.totalorder %v6782_v36, 0  ;;  %v2274_v56 = vsel %vm7277_vm14, %v7329_v53, 0  ;;  %v3997_v48 = vrot.slane %v3995_v0, 3  ;;  %v4000_v37 = vrot.slane %v3998_v50, 4 }
 0x170   : > { %v2273_v2 = vsel %vm9784_vm13, %v7315_v27, 0  ;;  %v3976_v23 = vor.u32 %v3975_v33, %v3972_v16  ;;  %v7775_v15 = vcombine.low %v2359_v18, %v2360_v7  ;;  %v7777_v49 = vor.u32 %v2635_v17, %v2632_v12  ;;  %2680 = vrot.lane.b32.xlu1 %v7746_v47, %s6225_s21  ;;  %v9792_v17 = vld [vmem:[#allocation33_spill] sm:$0xff] }
 0x171   : > { %v2309_v38 = vsel %vm7550_vm4, %v7329_v53, 0  ;;  %v2310_v36 = vsel %vm7566_vm6, %v7317_v42, 0  ;;  %v5386_v55 = vcombine.low %v2273_v2, %v2274_v56  ;;  %vm9785_vm14 = vsmask.f32 4352 }
 0x172   : > { %v3977_v39 = vsel %vm9785_vm14, %v7676_v8, %v3976_v23  ;;  %v4001_v1 = vor.u32 %v4000_v37, %v3997_v48  ;;  %v9456_v7 = vrot.slane %v7775_v15, 5  ;;  %v2241_v12 = vsel %vm7711_vm10, %v7329_v53, 0 }
 0x173   : > { %vm9786_vm8 = vcmask 261120   ;;  %vm9787_vm9 = vsmask.f32 3328  ;;  %v2242_v16 = vsel %vm7723_vm2, %v7317_v42, 0  ;;  %vm9789_vm13 = vcmp.ne.s16.totalorder %v6839_v32, 0 }
 0x174   : > { %5927 = vmatmul.mubr.msk.bf16.gmra.mxu0 %vm9786_vm8, %v3977_v39  ;;  %v7797_v18 = vsel %vm9787_vm9, %v7468_v61, %v7777_v49  ;;  %v2275_v8 = vsel %vm9789_vm13, %v7317_v42, 0  ;;  %v2276_v33 = vsel %vm7398_vm3, %v7335_v20, 0  ;;  %v4002_v0 = vsel %vm9785_vm14, %v3976_v23, %v4001_v1  ;;  %vm9791_vm9 = vmmov %vm9789_vm13  ;;  %2682 = vrot.lane.b32.xlu1 %v7756_v21, %s6225_s21 }
 0x175   : > { %9788 = vst [vmem:[#allocation36_spill] sm:$0xff] %v7797_v18  ;;  %3289 = vrot.lane.b32.xlu0 %v7797_v18, %s6226_s15  ;;  %vm9790_vm8 = vcmask 1042432   ;;  %v2205_v50 = vsel %vm9791_vm9, %v7315_v27, 0  ;;  %v9793_v2 = vand.u32 15, %v9792_v17  ;;  %vm9796_vm6 = vcmask 261120  }
 0x176   : > { %v3412_v61 = vsel %vm9790_vm8, %v3409_v40, %v9456_v7  ;;  %5930 = vmatprep.mubr.msk.bf16.mxu0 %vm9796_vm6, %v4002_v0  ;;  %v2206_v40 = vsel %vm7398_vm3, %v7329_v53, 0  ;;  %v1550_v37 = vrot.slane %v1549_v43, 4  ;;  %v5403_v32 = vcombine.low %v2309_v38, %v2310_v36  ;;  %v9798_v36 = vld [vmem:[#allocation23_spill] sm:$0xff] }
 0x177   : > { %vm7819_vm13 = vcmp.ge.s32.totalorder %v9793_v2, 1  ;;  %v4020_v23 = vshrl.u32 %v3412_v61, 16  ;;  %v4023_v48 = vshll.u32 %v3412_v61, 16  ;;  %v5369_v39 = vcombine.low %v2241_v12, %v2242_v16 }
 0x178   : > { %v7829_v7 = vcombine.low %v2275_v8, %v2276_v33  ;;  %v5352_v17 = vcombine.low %v2205_v50, %v2206_v40  ;;  %v3080_v11 = vrot.slane %v5386_v55, 5  ;;  %vm9797_vm6 = vcmp.ne.s16.totalorder %v6848_v29, 0  ;;  %vm1377_vm14 = vmpackc.low %vm7819_vm13, %vm7819_vm13  ;;  %v9799_v55 = vld [vmem:[#allocation22_spill] sm:$0xff] }
 0x179   : > { %v4022_v2 = vrot.slane %v4020_v23, 3  ;;  %v4025_v4 = vrot.slane %v4023_v48, 4  ;;  %v2207_v0 = vsel %vm9797_vm6, %v7317_v42, 0  ;;  %3231 = vrot.lane.b32.xlu0 %v5403_v32, %s6224_s20  ;;  %v2208_v43 = vsel %vm7407_vm15, %v7335_v20, 0  ;;  %2952 = vrot.lane.b32.xlu1 %v5369_v39, %s6226_s15  ;;  %v5904_v23 = vpop.f32.mrf.mxu1  ;;  %vm9806_vm13 = vmmov %vm9790_vm8 }
 0x17a   : > { %v2801_v19 = vrot.slane %v5352_v17, 5  ;;  %v5336_v38 = vcombine.low %v7315_v27, %v7329_v53  ;;  %v9800_v12 = vor.u32 %v9798_v36, %v9799_v55  ;;  %v7849_v33 = vcombine.low %v2207_v0, %v2208_v43 }
 0x17b   : > { %v7846_v8 = vor.u32 %v4025_v4, %v4022_v2  ;;  %v1545_v61 = vsel %vm6484_vm12, %v6477_v46, %v9771_v63  ;;  %v1555_v50 = vsel %vm6484_vm12, %v1550_v37, %v6444_v14  ;;  %v9460_v27 = vrot.slane %v7829_v7, 5 }
 0x17c   : > { %v1570_v16 = vrot.slane %v9800_v12, 4  ;;  %v2576_v53 = vshrl.u32 %v5336_v38, 16  ;;  %v2579_v56 = vshll.u32 %v5336_v38, 16  ;;  %v9801_v4 = vmov 0  }
 0x17d   : > { %v1409_v48 = vsel %vm1377_vm14, 65537, %v9801_v4  ;;  %vm9802_vm3 = vsmask.f32 4352  ;;  %v9803_v32 = vrot.slane %v7559_v34, 5  ;;  %v5337_v63 = vcombine.low %v7317_v42, %v7335_v20 }
 0x17e   : > { %v4027_v40 = vsel %vm9802_vm3, %v4001_v1, %v7846_v8  ;;  %v1629_v37 = vor.u32 %v7735_v35, %v7731_v41  ;;  %vm9804_vm9 = vcmask 261120   ;;  %v9805_v17 = vrot.slane %v7612_v57, 5  ;;  %vm9813_vm3 = vmmov %vm9790_vm8 }
 0x17f   : > { %v3081_v39 = vsel %vm9790_vm8, %v9803_v32, %v3080_v11  ;;  %5931 = vmatmul.mubr.msk.bf16.gmra.mxu0 %vm9804_vm9, %v4027_v40  ;;  %v9459_v1 = vrot.slane %v7849_v33, 5  ;;  %vm7875_vm6 = vcmp.ne.s16.totalorder %v1545_v61, 0  ;;  %v9807_v34 = vmov 0  ;;  %v625_v61 = vpop.f32.mrf.mxu1  ;;  %vm9814_vm8 = vmmov %vm9813_vm3 }
 0x180   : > { %3114 = vrot.lane.b32.xlu0 %v3081_v39, %s6225_s21  ;;  %v2802_v2 = vsel %vm9806_vm13, %v9805_v17, %v2801_v19  ;;  %v9808_v34 = vsel %vm7875_vm6, 4294967295, %v9807_v34  ;;  %vm7879_vm14 = vcmp.ne.s16.totalorder %v1555_v50, 0  ;;  %v9810_v0 = vmov 0 }
 0x181   : > { %9809 = vst [vmem:[#allocation30_spill] sm:$0xff] %v9808_v34  ;;  %v9811_v0 = vsel %vm7879_vm14, 4294967295, %v9810_v0  ;;  %2835 = vrot.lane.b32.xlu1 %v2802_v2, %s6224_s20  ;;  %v2311_v42 = vsel %vm7711_vm10, %v7335_v20, 0  ;;  %v1642_v35 = vshll.u32 %v1409_v48, 16  ;;  %v1646_v57 = vshrl.u32 %v1409_v48, 16 }
 0x182   : > { %9812 = vst [vmem:[#allocation33_spill] sm:$0xff] %v9811_v0  ;;  %v3083_v43 = vsel %vm9813_vm3, %v3080_v11, %v9460_v27  ;;  %v2312_v38 = vsel %vm7723_vm2, %v7448_v60, 0  ;;  %v2578_v36 = vrot.slane %v2576_v53, 4  ;;  %v2581_v12 = vrot.slane %v2579_v56, 5 }
 0x183   : > { %v2243_v50 = vsel %vm7875_vm6, %v7335_v20, 0  ;;  %v2244_v40 = vsel %vm7879_vm14, %v7448_v60, 0  ;;  %v2585_v48 = vshrl.u32 %v5337_v63, 16  ;;  %v2588_v32 = vshll.u32 %v5337_v63, 16  ;;  %v6107_v63 = vld [vmem:[%s9353_s2] ss:$0 sm:$0xff] }
 0x184   : > { %3116 = vrot.lane.b32.xlu0 %v3083_v43, %s6225_s21  ;;  %v2804_v11 = vsel %vm9814_vm8, %v2801_v19, %v9459_v1  ;;  %v1565_v53 = vsel %vm6484_vm12, %v6477_v46, %v9799_v55  ;;  %v1575_v20 = vsel %vm6484_vm12, %v1570_v16, %v6444_v14  ;;  %v7910_v56 = vrot.slane %v1629_v37, 4 }
 0x185   : > { %v5404_v39 = vcombine.low %v2311_v42, %v2312_v38  ;;  %2837 = vrot.lane.b32.xlu1 %v2804_v11, %s6224_s20  ;;  %v634_v17 = vadd.f32 %v6107_v63, %v5904_v23  ;;  %v7916_v19 = vrot.slane %v1642_v35, 5  ;;  %v7918_v2 = vrot.slane %v1646_v57, 4  ;;  %v5905_v42 = vpop.f32.mrf.mxu1 }
 0x186   : > { %v2582_v43 = vor.u32 %v2581_v12, %v2578_v36  ;;  %v5370_v55 = vcombine.low %v2243_v50, %v2244_v40  ;;  %vm9815_vm9 = vcmp.ne.s16.totalorder %v6848_v29, 0  ;;  %v2278_v37 = vsel %vm7407_vm15, %v7451_v30, 0 }
 0x187   : > { %v2277_v16 = vsel %vm9815_vm9, %v7448_v60, 0  ;;  %v2587_v38 = vrot.slane %v2585_v48, 4  ;;  %v2590_v11 = vrot.slane %v2588_v32, 5  ;;  %v670_v1 = vmax.f32 %v634_v17, 0.0  ;;  %v628_v32 = vpop.f32.mrf.mxu1 }
 0x188   : > { %v7926_v27 = vcombine.low %v2277_v16, %v2278_v37  ;;  %3233 = vrot.lane.b32.xlu0 %v5404_v39, %s6224_s20  ;;  %vm7929_vm13 = vcmp.ne.s16.totalorder %v1565_v53, 0  ;;  %v9816_v23 = vmov 0  ;;  %vm7933_vm3 = vcmp.ne.s16.totalorder %v1575_v20, 0 }
 0x189   : > { %v9817_v23 = vsel %vm7929_vm13, 4294967295, %v9816_v23  ;;  %v9819_v35 = vmov 0  ;;  %v626_v29 = vadd.f32 %v6107_v63, %v625_v61  ;;  %2954 = vrot.lane.b32.xlu1 %v5370_v55, %s6226_s15  ;;  %vm9822_vm15 = vcmp.ne.s16.totalorder %v9679_v6, 0  ;;  %v9840_v61 = vld [vmem:[#allocation41_spill] sm:$0xff] }
 0x18a   : > { %9818 = vst [vmem:[#allocation23_spill] sm:$0xff] %v9817_v23  ;;  %v9820_v35 = vsel %vm7933_vm3, 4294967295, %v9819_v35  ;;  %v2279_v57 = vsel %vm9822_vm15, %v7460_v26, 0  ;;  %v5556_v36 = vpack.c.bf16 %v670_v1, %v670_v1  ;;  %v2280_v50 = vsel %vm7417_vm1, %v7476_v62, 0  ;;  %vm9823_vm8 = vmmov %vm9822_vm15 }
 0x18b   : > { %9821 = vst [vmem:[#allocation22_spill] sm:$0xff] %v9820_v35  ;;  %v668_v40 = vmax.f32 %v626_v29, 0.0  ;;  %v637_v48 = vadd.f32 %v6107_v63, %v5905_v42  ;;  %v2209_v1 = vsel %vm9823_vm8, %v7448_v60, 0  ;;  %vm9824_vm9 = vsmask.f32 3328  ;;  %v9829_v29 = vld [vmem:[#allocation38_spill] sm:$0xff] }
 0x18c   : > { %v7961_v53 = vsel %vm9824_vm9, %v7737_v52, %v2582_v43  ;;  %v7963_v20 = vor.u32 %v2590_v11, %v2587_v38  ;;  %vm9826_vm15 = vcmask 257024   ;;  %v2210_v39 = vsel %vm7417_vm1, %v7451_v30, 0  ;;  %v7975_v52 = vld [vmem:[#allocation2 + $0xc] sm:$0xf]  ;;  %v9828_v38 = vld [vmem:[#allocation6_spill] sm:$0xff] }
 0x18d   : > { %9825 = vst [vmem:[#allocation49_spill] sm:$0xff] %v7961_v53  ;;  %839 = vst.msk [vmem:[#allocation2 + $0x88] sm:$0xf] %vm9826_vm15, %v5556_v36  ;;  %v1649_v17 = vor.u32 %v7918_v2, %v7916_v19  ;;  %3277 = vrot.lane.b32.xlu0 %v7961_v53, %s6226_s15  ;;  %v5554_v6 = vpack.c.bf16 %v668_v40, %v668_v40  ;;  %v671_v55 = vmax.f32 %v637_v48, 0.0  ;;  %vm9827_vm8 = vnez %v9596_v58  ;;  %v9831_v40 = vld [vmem:[#allocation13_spill] sm:$0xff] }
 0x18e   : > { %v7973_v16 = vcombine.low %v2209_v1, %v2210_v39  ;;  %2684 = vrot.lane.b32.xlu1 %v7961_v53, %s6225_s21  ;;  %v2315_v22 = vsel %vm7929_vm13, %v7476_v62, 0  ;;  %v7985_v2 = vcombine.low %v2279_v57, %v2280_v50  ;;  %v629_v42 = vadd.f32 %v6107_v63, %v628_v32  ;;  %v9833_v1 = vld [vmem:[#allocation40_spill] sm:$0xff] }
 0x18f   : > { %v869_v11 = vadd.s32 216, %v9828_v38  ;;  %vm9830_vm1 = vnez %v9829_v29  ;;  %vm9832_vm9 = vcmp.ne.s16.totalorder %v9831_v40, 0  ;;  %vm9834_vm15 = vnez %v9833_v1  ;;  %v6109_v1 = vld [vmem:[#allocation2 + $0x54] sm:$0xf]  ;;  %v9843_v29 = vld [vmem:[#allocation14_spill] sm:$0xff] }
 0x190   : > { %v2247_v36 = vsel %vm9830_vm1, %v7476_v62, 0  ;;  %v2211_v48 = vsel %vm9832_vm9, %v7460_v26, 0  ;;  %v2212_v39 = vsel %vm9834_vm15, %v7476_v62, 0  ;;  %vm9835_vm2 = vcmask 257024  }
 0x191   : > { %837 = vst.msk [vmem:[#allocation2 + $0x80] sm:$0xf] %vm9835_vm2, %v5554_v6  ;;  %v5557_v37 = vpack.c.bf16 %v671_v55, %v671_v55  ;;  %vm9836_vm10 = vsmask.f32 3328  ;;  %v2316_v57 = vsel %vm7933_vm3, %v7243_v44, 0  ;;  %v2313_v50 = vsel %vm7875_vm6, %v7451_v30, 0 }
 0x192   : > { %v8000_v63 = vsel %vm9836_vm10, %v2582_v43, %v7963_v20  ;;  %v669_v32 = vmax.f32 %v629_v42, 0.0  ;;  %v5406_v40 = vcombine.low %v2315_v22, %v2316_v57  ;;  %v2314_v6 = vsel %vm7879_vm14, %v7460_v26, 0  ;;  %v9838_v43 = vld [vmem:[#allocation39_spill] sm:$0xff] }
 0x193   : > { %9837 = vst [vmem:[#allocation6_spill] sm:$0xff] %v8000_v63  ;;  %3279 = vrot.lane.b32.xlu0 %v8000_v63, %s6226_s15  ;;  %vm9839_vm10 = vnez %v9838_v43  ;;  %vm9841_vm2 = vnez %v9840_v61  ;;  %vm9842_vm9 = vcmask 257024   ;;  %2686 = vrot.lane.b32.xlu1 %v8000_v63, %s6225_s21  ;;  %v9464_v22 = vrot.slane %v7985_v2, 5 }
 0x194   : > { %v2248_v55 = vsel %vm9839_vm10, %v7243_v44, 0  ;;  %v2214_v12 = vsel %vm9841_vm2, %v6109_v1, 0  ;;  %840 = vst.msk [vmem:[#allocation2 + $0x8c] sm:$0xf] %vm9842_vm9, %v5557_v37  ;;  %v8022_v57 = vcombine.low %v2211_v48, %v2212_v39  ;;  %v5555_v45 = vpack.c.bf16 %v669_v32, %v669_v32  ;;  %v6110_v39 = vld [vmem:[#allocation2 + $0x58] sm:$0xf] }
 0x195   : > { %v5372_v42 = vcombine.low %v2247_v36, %v2248_v55  ;;  %vm9844_vm15 = vcmp.ne.s16.totalorder %v9843_v29, 0  ;;  %v5339_v0 = vcombine.low %v7460_v26, %v7476_v62  ;;  %vm9845_vm2 = vcmp.ne.s16.totalorder %v9721_v5, 0  ;;  %v9847_v55 = vld [vmem:[#allocation44_spill] sm:$0xff] }
 0x196   : > { %v2213_v43 = vsel %vm9844_vm15, %v7243_v44, 0  ;;  %v2285_v61 = vsel %vm9845_vm2, %v7286_v54, 0  ;;  %v2286_v37 = vsel %vm7585_vm5, %v7264_v59, 0  ;;  %v2245_v36 = vsel %vm7929_vm13, %v7451_v30, 0  ;;  %838 = vst.msk [vmem:[#allocation2 + $0x84] sm:$0xf] %vm9842_vm9, %v5555_v45  ;;  %vm9846_vm15 = vmmov %vm9845_vm2 }
 0x197   : > { %v2246_v29 = vsel %vm7933_vm3, %v7460_v26, 0  ;;  %v8041_v44 = vcombine.low %v2213_v43, %v2214_v12  ;;  %v8044_v62 = vcombine.low %v2285_v61, %v2286_v37  ;;  %3237 = vrot.lane.b32.xlu0 %v5406_v40, %s6224_s20  ;;  %v5338_v48 = vcombine.low %v7448_v60, %v7451_v30  ;;  %v1322_v59 = vld [vmem:[#allocation2 + $0x4] sm:$0x8]  ;;  %2958 = vrot.lane.b32.xlu1 %v5372_v42, %s6226_s15  ;;  %v9848_v30 = vld [vmem:[#allocation45_spill] sm:$0xff] }
 0x198   : > { %v2215_v32 = vsel %vm9846_vm15, %v6110_v39, 0  ;;  %v2216_v26 = vsel %vm7585_vm5, %v9847_v55, 0  ;;  %v8054_v12 = vrot.slane %v1649_v17, 4  ;;  %v5405_v43 = vcombine.low %v2313_v50, %v2314_v6  ;;  %v9851_v6 = vld [vmem:[#allocation11_spill] sm:$0xff] }
 0x199   : > { %v9469_v45 = vrot.slane %v8022_v57, 5  ;;  %v8058_v40 = vcombine.low %v2215_v32, %v2216_v26  ;;  %v1067_v1 = vand.u32 15, %v869_v11  ;;  %v9849_v60 = vrot.slane %v9848_v30, 5  ;;  %v6111_v39 = vld [vmem:[#allocation2 + $0x8] sm:$0xf]  ;;  %v9853_v32 = vld [vmem:[#allocation32_spill] sm:$0xff] }
 0x19a   : > { %vm9850_vm2 = vcmask 1042432   ;;  %v5371_v61 = vcombine.low %v2245_v36, %v2246_v29  ;;  %v3084_v25 = vrot.slane %v7926_v27, 5  ;;  %v2603_v37 = vshrl.u32 %v5339_v0, 16 }
 0x19b   : > { %v3089_v5 = vsel %vm9850_vm2, %v9464_v22, %v9849_v60  ;;  %v9466_v17 = vrot.slane %v8041_v44, 5  ;;  %v2606_v50 = vshll.u32 %v5339_v0, 16  ;;  %vm9852_vm5 = vcmp.ne.s16.totalorder %v9851_v6, 0  ;;  %3235 = vrot.lane.b32.xlu0 %v5405_v43, %s6224_s20  ;;  %v8213_v34 = vld [vmem:[#allocation2 + $0x8c] sm:$0xf] }
 0x19c   : > { %v1774_v42 = vsel %vm9852_vm5, %v1322_v59, 0  ;;  %vm9854_vm9 = vnez %v9853_v32  ;;  %v2594_v55 = vshrl.u32 %v5338_v48, 16  ;;  %v2597_v26 = vshll.u32 %v5338_v48, 16  ;;  %2956 = vrot.lane.b32.xlu1 %v5371_v61, %s6226_s15  ;;  %v2826_v59 = vpop.permute.xlu0 %2825  ;;  %v9857_v48 = vld [vmem:[#allocation25_spill] sm:$0xff]  ;;  %9893 = vst [vmem:[#allocation32_spill] sm:$0xff] %v8213_v34 }
 0x19d   : > { %v1775_v11 = vsel %vm9854_vm9, %v6111_v39, 0  ;;  %vm9855_vm15 = vcmp.ne.s16.totalorder %v9731_v10, 0  ;;  %v2288_v29 = vsel %vm7627_vm0, %v7648_v28, 0  ;;  %v2810_v0 = vsel %vm9850_vm2, %v9469_v45, %v9466_v17 }
 0x19e   : > { %v2287_v36 = vsel %vm9855_vm15, %v7642_v9, 0  ;;  %vm1317_vm5 = vcmp.lt.s32.totalorder %v1067_v1, 15  ;;  %v2107_v30 = vrot.slane %v9857_v48, 4  ;;  %v2805_v60 = vrot.slane %v7973_v16, 5 }
 0x19f   : > { %v8084_v43 = vcombine.low %v2287_v36, %v2288_v29  ;;  %v2605_v6 = vrot.slane %v2603_v37, 4  ;;  %v5314_v39 = vcombine.low %v1774_v42, %v1775_v11  ;;  %vm1835_vm9 = vmpackc.low %vm1317_vm5, %vm1317_vm5  ;;  %v871_v32 = vadd.s32 232, %v9828_v38  ;;  %3122 = vrot.lane.b32.xlu0 %v3089_v5, %s6225_s21  ;;  %v2675_v29 = vpop.permute.xlu1 %2674  ;;  %v9862_v11 = vld [vmem:[#allocation9_spill] sm:$0xff] }
 0x1a0   : > { %v2608_v61 = vrot.slane %v2606_v50, 5  ;;  %v9468_v22 = vrot.slane %v8044_v62, 5  ;;  %v1867_v17 = vsel %vm1835_vm9, 65537, %v9801_v4  ;;  %v2596_v36 = vrot.slane %v2594_v55, 4  ;;  %2843 = vrot.lane.b32.xlu1 %v2810_v0, %s6224_s20  ;;  %vm9865_vm5 = vmmov %vm9850_vm2 }
 0x1a1   : > { %v9467_v35 = vrot.slane %v8084_v43, 5  ;;  %v2599_v1 = vrot.slane %v2597_v26, 5  ;;  %v9858_v16 = vsel %vm6484_vm12, %v6477_v46, %v7731_v41  ;;  %v9859_v37 = vmov 0  ;;  %vm9867_vm9 = vmmov %vm9850_vm2 }
 0x1a2   : > { %vm8098_vm15 = vcmp.ne.s16.totalorder %v9858_v16, 0  ;;  %v2118_v50 = vshrl.u32 %v1867_v17, 16  ;;  %v2121_v42 = vshll.u32 %v1867_v17, 16  ;;  %v8113_v26 = vsel %vm6391_vm7, %v2107_v30, %v9862_v11  ;;  %v8128_v30 = vld [vmem:[#allocation2 + $0x80] sm:$0xf]  ;;  %v8131_v17 = vpop.permute.xlu0 %2942 }
 0x1a3   : > { %v9860_v37 = vsel %vm8098_vm15, 4294967295, %v9859_v37  ;;  %v8108_v5 = vsel %vm9850_vm2, %v9468_v22, %v9467_v35  ;;  %v1081_v41 = vand.u32 15, %v871_v32  ;;  %v9864_v0 = vrot.slane %v7829_v7, 5 }
 0x1a4   : > { %9861 = vst [vmem:[#allocation13_spill] sm:$0xff] %v9860_v37  ;;  %v9866_v16 = vrot.slane %v7985_v2, 5  ;;  %v9868_v22 = vrot.slane %v7849_v33, 5  ;;  %v2120_v32 = vrot.slane %v2118_v50, 7  ;;  %v2609_v23 = vor.u32 %v2608_v61, %v2605_v6  ;;  %v8145_v6 = vld [vmem:[#allocation2 + $0x84] sm:$0xf] }
 0x1a5   : > { %v3085_v48 = vsel %vm9865_vm5, %v9864_v0, %v3084_v25  ;;  %vm9869_vm10 = vcmask 261120   ;;  %v9870_v7 = vsel %vm6484_vm12, %v7910_v56, %v6444_v14  ;;  %v9871_v2 = vmov 0 }
 0x1a6   : > { %v3087_v35 = vsel %vm9867_vm9, %v3084_v25, %v9866_v16  ;;  %v2806_v45 = vsel %vm9850_vm2, %v9868_v22, %v2805_v60  ;;  %v3424_v63 = vsel %vm9869_vm10, %v5314_v39, %v2675_v29  ;;  %vm8138_vm5 = vcmp.ne.s16.totalorder %v9870_v7, 0  ;;  %3118 = vrot.lane.b32.xlu0 %v3085_v48, %s6225_s21  ;;  %v9875_v29 = vld [vmem:[#allocation7_spill] sm:$0xff]  ;;  %v8182_v7 = vpop.permute.xlu0 %3223 }
 0x1a7   : > { %v9872_v2 = vsel %vm8138_vm5, 4294967295, %v9871_v2  ;;  %vm1319_vm9 = vcmp.lt.s32.totalorder %v1081_v41, 15  ;;  %v2600_v33 = vor.u32 %v2599_v1, %v2596_v36  ;;  %v2123_v22 = vor.u32 %v2121_v42, %v2120_v32  ;;  %2839 = vrot.lane.b32.xlu1 %v2806_v45, %s6224_s20  ;;  %v8154_v36 = vld [vmem:[#allocation2 + $0x64] sm:$0xf]  ;;  %v9881_v48 = vld [vmem:[#allocation15_spill] sm:$0xff] }
 0x1a8   : > { %9873 = vst [vmem:[#allocation40_spill] sm:$0xff] %v9872_v2  ;;  %vm9472_vm2 = vcmp.ne.s16.totalorder %v8113_v26, 0  ;;  %vm1837_vm10 = vmpackc.low %vm1319_vm9, %vm1319_vm9  ;;  %v2125_v25 = vrot.slane %v2120_v32, 4  ;;  %vm9874_vm1 = vcmp.ne.s16.totalorder %v9731_v10, 0  ;;  %v2218_v1 = vsel %vm7627_vm0, %v8154_v36, 0  ;;  %v8180_v32 = vpop.permute.xlu1 %2944 }
 0x1a9   : > { %v2361_v56 = vsel %vm9472_vm2, %v8128_v30, 0  ;;  %v1869_v39 = vsel %vm1837_vm10, 65537, %v9801_v4  ;;  %v2217_v61 = vsel %vm9874_vm1, %v7286_v54, 0  ;;  %v2124_v45 = vsel %vm6391_vm7, %v9875_v29, %v2123_v22  ;;  %9884 = vst [vmem:[#allocation14_spill] sm:$0xff] %v8180_v32 }
 0x1aa   : > { %v8165_v50 = vsel %vm6391_vm7, %v2125_v25, %v9862_v11  ;;  %v2136_v42 = vshrl.u32 %v1869_v39, 16  ;;  %v2139_v41 = vshll.u32 %v1869_v39, 16  ;;  %v9876_v10 = vrot.slane %v8022_v57, 5  ;;  %3120 = vrot.lane.b32.xlu0 %v3087_v35, %s6225_s21  ;;  %v8197_v39 = vld [vmem:[#allocation2 + $0x88] sm:$0xf] }
 0x1ab   : > { %vm9877_vm1 = vcmask 1042432   ;;  %vm9878_vm9 = vcmask 523264   ;;  %vm8171_vm2 = vcmp.ne.s16.totalorder %v2124_v45, 0  ;;  %vm9882_vm0 = vsmask.f32 3328  ;;  %9888 = vst [vmem:[#allocation44_spill] sm:$0xff] %v8197_v39 }
 0x1ac   : > { %v2808_v54 = vsel %vm9877_vm1, %v2805_v60, %v9876_v10  ;;  %v3475_v0 = vsel %vm9878_vm9, %v3424_v63, %v2826_v59  ;;  %v8178_v16 = vsel %vm9882_vm0, %v2609_v23, %v9881_v48  ;;  %v2362_v57 = vsel %vm8171_vm2, %v8145_v6, 0  ;;  %v9885_v59 = vld [vmem:[#allocation18_spill] sm:$0xff]  ;;  %v9886_v60 = vld [vmem:[#allocation29_spill] sm:$0xff]  ;;  %vm9890_vm10 = vmmov %vm9882_vm0  ;;  %v8248_v3 = vpop.permute.xlu1 %2960 }
 0x1ad   : > { %9883 = vst [vmem:[#allocation41_spill] sm:$0xff] %v8178_v16  ;;  %v8187_v63 = vrot.slane %v2136_v42, 7  ;;  %vm9887_vm1 = vcmp.ne.s16.totalorder %v9886_v60, 0  ;;  %2841 = vrot.lane.b32.xlu1 %v2808_v54, %s6224_s20  ;;  %v5430_v25 = vcombine.low %v2361_v56, %v2362_v57  ;;  %vm9486_vm9 = vcmp.ne.s16.totalorder %v8165_v50, 0  ;;  %v9892_v48 = vld [vmem:[#allocation27_spill] sm:$0xff]  ;;  %9902 = vst [vmem:[#allocation9_spill] sm:$0xff] %v8248_v3 }
 0x1ae   : > { %v2289_v22 = vsel %vm9887_vm1, %v9885_v59, 0  ;;  %v8199_v45 = vcombine.low %v2217_v61, %v2218_v1  ;;  %v8203_v42 = vsel %vm9882_vm0, %v7963_v20, %v2600_v33  ;;  %v8206_v10 = vsel %vm9890_vm10, %v2600_v33, %v2609_v23  ;;  %3285 = vrot.lane.b32.xlu0 %v8178_v16, %s6226_s15  ;;  %v8223_v20 = vpop.permute.xlu0 %3239 }
 0x1af   : > { %9889 = vst [vmem:[#allocation45_spill] sm:$0xff] %v8203_v42  ;;  %9891 = vst [vmem:[#allocation11_spill] sm:$0xff] %v8206_v10  ;;  %v2141_v54 = vor.u32 %v2139_v41, %v8187_v63  ;;  %v2290_v35 = vsel %vm7672_vm11, %v9892_v48, 0  ;;  %v2811_v56 = vrot.slane %v8058_v40, 5  ;;  %v3413_v57 = vrot.slane %v5430_v25, 5 }
 0x1b0   : > { %v8216_v1 = vcombine.low %v2289_v22, %v2290_v35  ;;  %v2322_v23 = vsel %vm8138_vm5, %v7642_v9, 0  ;;  %9894 = vst [vmem:[#allocation20_spill] sm:$0xff] %v8223_v20  ;;  %v2363_v33 = vsel %vm9486_vm9, %v8197_v39, 0  ;;  %v866_v41 = vadd.s32 192, %v9828_v38 }
 0x1b1   : > { %v2142_v40 = vsel %vm6391_vm7, %v9875_v29, %v2141_v54  ;;  %2692 = vrot.lane.b32.xlu1 %v8178_v16, %s6225_s21  ;;  %v5343_v22 = vcombine.low %v7642_v9, %v7648_v28  ;;  %v9895_v35 = vrot.slane %v7775_v15, 5  ;;  %vm9896_vm10 = vcmask 1042432  }
 0x1b2   : > { %vm8239_vm1 = vcmp.ne.s16.totalorder %v2142_v40, 0  ;;  %v9897_v61 = vmov 0  ;;  %v9900_v54 = vrot.slane %v8199_v45, 5  ;;  %vm9901_vm0 = vmmov %vm9896_vm10  ;;  %v9903_v15 = vsel %vm6484_vm12, %v6477_v46, %v7916_v19  ;;  %3281 = vrot.lane.b32.xlu0 %v8203_v42, %s6226_s15 }
 0x1b3   : > { %v3414_v25 = vsel %vm9896_vm10, %v9895_v35, %v3413_v57  ;;  %v9898_v61 = vsel %vm8239_vm1, 4294967295, %v9897_v61  ;;  %v2364_v53 = vsel %vm8239_vm1, %v8213_v34, 0  ;;  %vm8258_vm10 = vcmp.ne.s16.totalorder %v9903_v15, 0  ;;  %v9909_v15 = vld [vmem:[#allocation46_spill] sm:$0xff]  ;;  %v8276_v35 = vpop.permute.xlu0 %3106  ;;  %vm9917_vm3 = vmmov %vm9901_vm0 }
 0x1b4   : > { %9899 = vst [vmem:[#allocation25_spill] sm:$0xff] %v9898_v61  ;;  %v8246_v20 = vsel %vm9901_vm0, %v2811_v56, %v9900_v54  ;;  %v4045_v31 = vshrl.u32 %v3414_v25, 16  ;;  %v4048_v16 = vshll.u32 %v3414_v25, 16  ;;  %v9904_v40 = vmov 0  ;;  %v6113_v54 = vld [vmem:[#allocation2 + $0x5c] sm:$0xf]  ;;  %vm9924_vm14 = vmmov %vm9917_vm3 }
 0x1b5   : > { %v9905_v40 = vsel %vm8258_vm10, 4294967295, %v9904_v40  ;;  %v2251_v3 = vsel %vm8098_vm15, %v6113_v54, 0  ;;  %v8265_v25 = vcombine.low %v2363_v33, %v2364_v53  ;;  %v5344_v21 = vcombine.low %v9885_v59, %v9892_v48 }
 0x1b6   : > { %9906 = vst [vmem:[#allocation8_spill] sm:$0xff] %v9905_v40  ;;  %v1046_v47 = vand.u32 15, %v866_v41  ;;  %v9908_v19 = vrot.slane %v8044_v62, 5  ;;  %v9910_v34 = vrot.slane %v9909_v15, 5  ;;  %v4047_v32 = vrot.slane %v4045_v31, 3 }
 0x1b7   : > { %9907 = vst [vmem:[#allocation7_spill] sm:$0xff] %v8265_v25  ;;  %v4050_v61 = vrot.slane %v4048_v16, 4  ;;  %v9911_v53 = vsel %vm6484_vm12, %v8054_v12, %v6444_v14  ;;  %v9912_v33 = vmov 0  ;;  %v9915_v41 = vrot.slane %v8216_v1, 5  ;;  %v8329_v2 = vpop.permute.xlu0 %3108 }
 0x1b8   : > { %v3093_v39 = vsel %vm9901_vm0, %v9910_v34, %v9908_v19  ;;  %vm8283_vm9 = vcmp.ne.s16.totalorder %v9911_v53, 0  ;;  %v9916_v62 = vrot.slane %v8084_v43, 5  ;;  %v9919_v34 = vld [vmem:[#allocation10_spill] sm:$0xff]  ;;  %v2639_v31 = vshrl.u32 %v5343_v22, 16 }
 0x1b9   : > { %v9913_v33 = vsel %vm8283_vm9, 4294967295, %v9912_v33  ;;  %2694 = vrot.lane.b32.xlu1 %v9919_v34, %s6225_s21  ;;  %v2642_v16 = vshll.u32 %v5343_v22, 16  ;;  %v9491_v19 = vrot.slane %v8265_v25, 5  ;;  %vm8297_vm0 = vcmp.ge.s32.totalorder %v1046_v47, 1  ;;  %3126 = vrot.lane.b32.xlu0 %v3093_v39, %s6225_s21 }
 0x1ba   : > { %9914 = vst [vmem:[#allocation15_spill] sm:$0xff] %v9913_v33  ;;  %v8292_v54 = vsel %vm9917_vm3, %v9916_v62, %v9915_v41  ;;  %vm9922_vm13 = vcmask 785408   ;;  %v9923_v53 = vrot.slane %v8041_v44, 5  ;;  %v6114_v41 = vld [vmem:[#allocation2 + $0x60] sm:$0xf]  ;;  %v2648_v47 = vshrl.u32 %v5344_v21, 16  ;;  %vm1379_vm6 = vmpackc.low %vm8297_vm0, %vm8297_vm0 }
 0x1bb   : > { %9918 = vst [vmem:[#allocation18_spill] sm:$0xff] %v8292_v54  ;;  %v3510_v15 = vsel %vm9922_vm13, %v3475_v0, %v8131_v17  ;;  %v2252_v62 = vsel %vm8138_vm5, %v6114_v41, 0  ;;  %v4051_v54 = vor.u32 %v4050_v61, %v4047_v32  ;;  %v3416_v22 = vsel %vm9917_vm3, %v3413_v57, %v9491_v19  ;;  %v8321_v0 = vpop.permute.xlu1 %2827 }
 0x1bc   : > { %v2812_v43 = vsel %vm9924_vm14, %v9923_v53, %v2811_v56  ;;  %vm9925_vm13 = vcmp.ne.s16.totalorder %v9886_v60, 0  ;;  %v2220_v17 = vsel %vm7672_vm11, %v7648_v28, 0  ;;  %vm9926_vm14 = vsmask.f32 4352 }
 0x1bd   : > { %v2219_v44 = vsel %vm9925_vm13, %v7642_v9, 0  ;;  %v4052_v32 = vsel %vm9926_vm14, %v7846_v8, %v4051_v54  ;;  %v4070_v56 = vshrl.u32 %v3416_v22, 16  ;;  %v4073_v57 = vshll.u32 %v3416_v22, 16  ;;  %2845 = vrot.lane.b32.xlu1 %v2812_v43, %s6224_s20  ;;  %v9929_v43 = vld [vmem:[#allocation28_spill] sm:$0xff]  ;;  %3283 = vrot.lane.b32.xlu0 %v8206_v10, %s6226_s15  ;;  %vm9930_vm11 = vmmov %vm9926_vm14 }
 0x1be   : > { %v2651_v61 = vshll.u32 %v5344_v21, 16  ;;  %v3706_v53 = vshrl.u32 %v3510_v15, 16  ;;  %v2641_v41 = vrot.slane %v2639_v31, 4  ;;  %v2644_v60 = vrot.slane %v2642_v16, 5 }
 0x1bf   : > { %vm9927_vm3 = vcmask 261120   ;;  %v8327_v19 = vcombine.low %v2219_v44, %v2220_v17  ;;  %v3709_v13 = vshll.u32 %v3510_v15, 16  ;;  %v4072_v39 = vrot.slane %v4070_v56, 3  ;;  %v8348_v44 = vpop.permute.xlu1 %2829 }
 0x1c0   : > { %5934 = vmatprep.mubr.msk.bf16.mxu0 %vm9927_vm3, %v4052_v32  ;;  %v4075_v25 = vrot.slane %v4073_v57, 4  ;;  %v1411_v21 = vsel %vm1379_vm6, 65537, %v9801_v4  ;;  %v9928_v8 = vsel %vm8098_vm15, %v8154_v36, 0  ;;  %v5374_v16 = vcombine.low %v2251_v3, %v2252_v62  ;;  %vm9933_vm0 = vmmov %vm9927_vm3 }
 0x1c1   : > { %v5409_v31 = vcombine.low %v9928_v8, %v2322_v23  ;;  %v2323_v15 = vsel %vm8258_vm10, %v7648_v28, 0  ;;  %v5345_v22 = vcombine.low %v9929_v43, %v7742_v24  ;;  %v2650_v17 = vrot.slane %v2648_v47, 4  ;;  %vm9939_vm3 = vmmov %vm9933_vm0 }
 0x1c2   : > { %v8350_v12 = vor.u32 %v4075_v25, %v4072_v39  ;;  %v2653_v32 = vrot.slane %v2651_v61, 5  ;;  %v9495_v56 = vrot.slane %v8327_v19, 5  ;;  %2962 = vrot.lane.b32.xlu1 %v5374_v16, %s6226_s15  ;;  %v2645_v3 = vor.u32 %v2644_v60, %v2641_v41 }
 0x1c3   : > { %v2324_v23 = vsel %vm8283_vm9, %v9885_v59, 0  ;;  %v1662_v62 = vshll.u32 %v1411_v21, 16  ;;  %v1666_v57 = vshrl.u32 %v1411_v21, 16  ;;  %v8357_v8 = vrot.slane %v3706_v53, 3  ;;  %3243 = vrot.lane.b32.xlu0 %v5409_v31, %s6224_s20 }
 0x1c4   : > { %v8359_v37 = vrot.slane %v3709_v13, 4  ;;  %v4077_v25 = vsel %vm9930_vm11, %v4051_v54, %v8350_v12  ;;  %v9931_v47 = vrot.slane %v8199_v45, 5  ;;  %vm9932_vm6 = vcmask 1042432   ;;  %v3272_v45 = vpop.permute.xlu0 %3271 }
 0x1c5   : > { %5935 = vmatmul.mubr.msk.bf16.gmra.mxu0 %vm9933_vm0, %v4077_v25  ;;  %v2253_v41 = vsel %vm8258_vm10, %v8154_v36, 0  ;;  %v2254_v53 = vsel %vm8283_vm9, %v7642_v9, 0  ;;  %v2657_v60 = vshrl.u32 %v5345_v22, 16  ;;  %v2660_v13 = vshll.u32 %v5345_v22, 16  ;;  %v8388_v9 = vpop.permute.xlu1 %3225  ;;  %v6115_v36 = vld [vmem:[#allocation2 + $0x10] sm:$0xf] }
 0x1c6   : > { %v8368_v61 = vsel %vm9932_vm6, %v9931_v47, %v9495_v56  ;;  %v8378_v54 = vcombine.low %v2323_v15, %v2324_v23  ;;  %v2654_v39 = vor.u32 %v2653_v32, %v2650_v17  ;;  %v868_v21 = vadd.s32 208, %v9828_v38  ;;  %2688 = vrot.lane.b32.xlu1 %v8203_v42, %s6225_s21  ;;  %v9936_v22 = vld [vmem:[#allocation31_spill] sm:$0xff] }
 0x1c7   : > { %v873_v16 = vadd.s32 248, %v9828_v38  ;;  %vm9934_vm13 = vsmask.f32 3328  ;;  %vm9937_vm14 = vnez %v9936_v22  ;;  %v1664_v15 = vrot.slane %v1662_v62, 5  ;;  %v9938_v32 = vld [vmem:[#allocation19_spill] sm:$0xff] }
 0x1c8   : > { %v8384_v25 = vsel %vm9934_vm13, %v7777_v49, %v2645_v3  ;;  %v1777_v31 = vsel %vm9937_vm14, %v6115_v36, 0  ;;  %v1668_v23 = vrot.slane %v1666_v57, 4  ;;  %v3545_v47 = vsel %vm9939_vm3, %v9938_v32, %v8276_v35  ;;  %vm9940_vm11 = vmmov %vm9934_vm13  ;;  %v6117_v36 = vld [vmem:[#allocation2 + $0x18] sm:$0xf] }
 0x1c9   : > { %9935 = vst [vmem:[#allocation29_spill] sm:$0xff] %v8384_v25  ;;  %v8397_v49 = vcombine.low %v2253_v41, %v2254_v53  ;;  %v1060_v56 = vand.u32 15, %v868_v21  ;;  %v1665_v40 = vsel %vm6484_vm12, %v6477_v46, %v1664_v15  ;;  %v2659_v33 = vrot.slane %v2657_v60, 4  ;;  %3291 = vrot.lane.b32.xlu0 %v8384_v25, %s6226_s15  ;;  %v6116_v41 = vld [vmem:[#allocation2 + $0x14] sm:$0xf]  ;;  %v9943_v53 = vld [vmem:[#allocation42_spill] sm:$0xff] }
 0x1ca   : > { %v2662_v42 = vrot.slane %v2660_v13, 5  ;;  %v1095_v22 = vand.u32 15, %v873_v16  ;;  %v8405_v62 = vsel %vm9940_vm11, %v2645_v3, %v2654_v39  ;;  %v9942_v35 = vsel %vm9827_vm8, %v7975_v52, 0  ;;  %2696 = vrot.lane.b32.xlu1 %v7797_v18, %s6225_s21  ;;  %v3125_v3 = vpop.permute.xlu0 %3124 }
 0x1cb   : > { %9941 = vst [vmem:[#allocation27_spill] sm:$0xff] %v8405_v62  ;;  %v8411_v57 = vcombine.low %v9942_v35, %v1777_v31  ;;  %vm9944_vm6 = vnez %v9943_v53  ;;  %vm8415_vm0 = vcmp.ge.s32.totalorder %v1060_v56, 1  ;;  %v1669_v13 = vor.u32 %v1668_v23, %v1664_v15  ;;  %v9952_v31 = vld [vmem:[#allocation43_spill] sm:$0xff]  ;;  %v9954_v23 = vld [vmem:[#allocation12_spill] sm:$0xff] }
 0x1cc   : > { %v1778_v21 = vsel %vm9944_vm6, %v6116_v41, 0  ;;  %vm9947_vm13 = vcmp.ne.s16.totalorder %v8113_v26, 0  ;;  %v2292_v52 = vsel %vm8171_vm2, %v7742_v24, 0  ;;  %vm1381_vm8 = vmpackc.low %vm8415_vm0, %vm8415_vm0  ;;  %vm1321_vm14 = vcmp.lt.s32.totalorder %v1095_v22, 15  ;;  %v8442_v22 = vpop.permute.xlu1 %2946 }
 0x1cd   : > { %v2291_v58 = vsel %vm9947_vm13, %v9929_v43, 0  ;;  %vm9948_vm3 = vcmask 523264   ;;  %vm8432_vm11 = vcmp.ne.s16.totalorder %v1665_v40, 0  ;;  %v9949_v16 = vmov 0  ;;  %vm1839_vm13 = vmpackc.low %vm1321_vm14, %vm1321_vm14  ;;  %3128 = vrot.lane.b32.xlu0 %v8108_v5, %s6225_s21 }
 0x1ce   : > { %v3595_v56 = vsel %vm9948_vm3, %v3545_v47, %v8182_v7  ;;  %v9950_v16 = vsel %vm8432_vm11, 4294967295, %v9949_v16  ;;  %vm9953_vm6 = vnez %v9952_v31  ;;  %v2143_v24 = vrot.slane %v8187_v63, 4  ;;  %2690 = vrot.lane.b32.xlu1 %v8206_v10, %s6225_s21 }
 0x1cf   : > { %9951 = vst [vmem:[#allocation46_spill] sm:$0xff] %v9950_v16  ;;  %v1779_v15 = vsel %vm9953_vm6, %v6117_v36, 0  ;;  %vm9955_vm10 = vcmask 261120   ;;  %v8446_v7 = vor.u32 %v2662_v42, %v2659_v33  ;;  %v1871_v40 = vsel %vm1839_vm13, 65537, %v9801_v4 }
 0x1d0   : > { %v3548_v32 = vsel %vm9955_vm10, %v9954_v23, %v8329_v2  ;;  %v8444_v35 = vcombine.low %v1778_v21, %v1779_v15  ;;  %v8451_v47 = vcombine.low %v2291_v58, %v2292_v52  ;;  %v1413_v2 = vsel %vm1381_vm8, 65537, %v9801_v4  ;;  %v3242_v58 = vpop.permute.xlu0 %3241  ;;  %vm9958_vm8 = vmmov %vm9948_vm3  ;;  %v2334_v15 = vld [vmem:[#allocation2 + $0x98] sm:$0x1] }
 0x1d1   : > { %v2154_v63 = vshrl.u32 %v1871_v40, 16  ;;  %v2157_v41 = vshll.u32 %v1871_v40, 16  ;;  %v1670_v42 = vrot.slane %v1669_v13, 4  ;;  %v2325_v33 = vsel %vm8432_vm11, %v9892_v48, 0  ;;  %3245 = vrot.lane.b32.xlu0 %v8378_v54, %s6224_s20  ;;  %v8498_v54 = vld [vmem:[#allocation2 + $0x94] sm:$0xf] }
 0x1d2   : > { %v870_v53 = vadd.s32 224, %v9828_v38  ;;  %vm9956_vm10 = vcmask 785408   ;;  %vm9957_vm0 = vcmask 261120   ;;  %v8476_v13 = vsel %vm6391_vm7, %v2143_v24, %v9862_v11  ;;  %2847 = vrot.lane.b32.xlu1 %v8246_v20, %s6224_s20 }
 0x1d3   : > { %v8469_v21 = vsel %vm9956_vm10, %v3595_v56, %v3272_v45  ;;  %v3572_v60 = vsel %vm9957_vm0, %v9919_v34, %v3125_v3  ;;  %v2156_v52 = vrot.slane %v2154_v63, 7  ;;  %vm9959_vm14 = vsmask.f32 3328  ;;  %v8485_v56 = vld [vmem:[#allocation2 + $0x90] sm:$0xf]  ;;  %vm9966_vm0 = vmmov %vm9958_vm8 }
 0x1d4   : > { %v8479_v48 = vsel %vm9958_vm8, %v3572_v60, %v3242_v58  ;;  %v8483_v36 = vsel %vm9959_vm14, %v2654_v39, %v8446_v7  ;;  %v1682_v31 = vshll.u32 %v1413_v2, 16  ;;  %v1686_v45 = vshrl.u32 %v1413_v2, 16  ;;  %v2677_v39 = vpop.permute.xlu1 %2676 }
 0x1d5   : > { %v9501_v34 = vrot.slane %v8451_v47, 5  ;;  %v2159_v3 = vor.u32 %v2157_v41, %v2156_v52  ;;  %v2161_v11 = vrot.slane %v2156_v52, 4  ;;  %v1074_v24 = vand.u32 15, %v870_v53  ;;  %3293 = vrot.lane.b32.xlu0 %v8405_v62, %s6226_s15 }
 0x1d6   : > { %v3721_v23 = vshrl.u32 %v8469_v21, 16  ;;  %v3724_v40 = vshll.u32 %v8469_v21, 16  ;;  %v1675_v2 = vsel %vm6484_vm12, %v1670_v42, %v6444_v14  ;;  %vm9500_vm3 = vcmp.ne.s16.totalorder %v8476_v13, 0  ;;  %2964 = vrot.lane.b32.xlu1 %v8397_v49, %s6226_s15 }
 0x1d7   : > { %v2160_v63 = vsel %vm6391_vm7, %v9875_v29, %v2159_v3  ;;  %v2365_v41 = vsel %vm9500_vm3, %v8485_v56, 0  ;;  %vm8506_vm6 = vcmp.ne.s16.totalorder %v2161_v11, 0  ;;  %vm8510_vm13 = vcmp.ge.s32.totalorder %v1074_v24, 1 }
 0x1d8   : > { %v8514_v42 = vrot.slane %v1682_v31, 5  ;;  %v1688_v21 = vrot.slane %v1686_v45, 4  ;;  %vm8516_vm10 = vcmp.ne.s16.totalorder %v2160_v63, 0  ;;  %v2367_v55 = vsel %vm8506_vm6, %v2334_v15, 0  ;;  %vm1383_vm7 = vmpackc.low %vm8510_vm13, %vm8510_vm13 }
 0x1d9   : > { %v8527_v29 = vsel %vm9966_vm0, %v3548_v32, %v8388_v9  ;;  %vm8531_vm8 = vcmp.ne.s16.totalorder %v1675_v2, 0  ;;  %v9967_v58 = vmov 0  ;;  %v2366_v52 = vsel %vm8516_vm10, %v8498_v54, 0  ;;  %v2679_v32 = vpop.permute.xlu1 %2678  ;;  %v8551_v2 = vpop.permute.xlu0 %3287 }
 0x1da   : > { %v9968_v58 = vsel %vm8531_vm8, 4294967295, %v9967_v58  ;;  %v5433_v31 = vcombine.low %v2367_v55, %v2367_v55  ;;  %v2326_v9 = vsel %vm8531_vm8, %v9929_v43, 0  ;;  %v5432_v45 = vcombine.low %v2365_v41, %v2366_v52  ;;  %9973 = vst [vmem:[#allocation28_spill] sm:$0xff] %v8551_v2  ;;  %v9976_v52 = vld [vmem:[#allocation18_spill] sm:$0xff]  ;;  %2698 = vrot.lane.b32.xlu1 %v8384_v25, %s6225_s21 }
 0x1db   : > { %9969 = vst [vmem:[#allocation10_spill] sm:$0xff] %v9968_v58  ;;  %vm9970_vm14 = vcmp.ne.s16.totalorder %v8165_v50, 0  ;;  %v2294_v15 = vsel %vm8239_vm1, %v8145_v6, 0  ;;  %vm9972_vm0 = vcmask 261120   ;;  %v9974_v49 = vrot.slane %v8216_v1, 5  ;;  %3130 = vrot.lane.b32.xlu0 %v9976_v52, %s6225_s21 }
 0x1dc   : > { %v2293_v3 = vsel %vm9970_vm14, %v8128_v30, 0  ;;  %v3427_v24 = vsel %vm9972_vm0, %v8411_v57, %v2677_v39  ;;  %vm9975_vm3 = vcmask 1042432   ;;  %v3419_v63 = vrot.slane %v5433_v31, 5 }
 0x1dd   : > { %v8558_v43 = vsel %vm9975_vm3, %v9974_v49, %v9501_v34  ;;  %v1415_v41 = vsel %vm1383_vm7, 65537, %v9801_v4  ;;  %v8566_v55 = vrot.slane %v3721_v23, 3  ;;  %v2256_v57 = vsel %vm8531_vm8, %v9885_v59, 0  ;;  %v9978_v23 = vld [vmem:[#allocation7_spill] sm:$0xff] }
 0x1de   : > { %v1689_v39 = vor.u32 %v1688_v21, %v8514_v42  ;;  %v3417_v1 = vrot.slane %v5432_v45, 5  ;;  %v5411_v31 = vcombine.low %v2325_v33, %v2326_v9  ;;  %v8574_v49 = vcombine.low %v2293_v3, %v2294_v15  ;;  %v8583_v21 = vld [vmem:[#allocation2 + $0x70] sm:$0xf]  ;;  %v8588_v9 = vld [vmem:[#allocation2 + $0x74] sm:$0xf]  ;;  %v8595_v3 = vpop.permute.xlu1 %2948  ;;  %2849 = vrot.lane.b32.xlu1 %v8368_v61, %s6224_s20 }
 0x1df   : > { %v1702_v17 = vshll.u32 %v1415_v41, 16  ;;  %v1706_v34 = vshrl.u32 %v1415_v41, 16  ;;  %vm9977_vm3 = vcmask 523264   ;;  %v9979_v5 = vrot.slane %v9978_v23, 5 }
 0x1e0   : > { %v3477_v20 = vsel %vm9977_vm3, %v3427_v24, %v8321_v0  ;;  %vm9980_vm13 = vcmask 1042432   ;;  %vm9981_vm7 = vcmp.ne.s16.totalorder %v8113_v26, 0  ;;  %v2222_v45 = vsel %vm8171_vm2, %v8588_v9, 0  ;;  %v8593_v0 = vpop.permute.xlu0 %3227  ;;  %3247 = vrot.lane.b32.xlu0 %v5411_v31, %s6224_s20 }
 0x1e1   : > { %v3418_v59 = vsel %vm9980_vm13, %v9979_v5, %v3417_v1  ;;  %v2221_v33 = vsel %vm9981_vm7, %v8583_v21, 0  ;;  %vm9982_vm14 = vmmov %vm9980_vm13  ;;  %v8598_v41 = vrot.slane %v1702_v17, 5  ;;  %v3430_v26 = vsel %vm9972_vm0, %v8444_v35, %v2679_v32 }
 0x1e2   : > { %v4095_v15 = vshrl.u32 %v3418_v59, 16  ;;  %v4098_v24 = vshll.u32 %v3418_v59, 16  ;;  %v3420_v5 = vsel %vm9982_vm14, %v3417_v1, %v3419_v63  ;;  %v1690_v52 = vrot.slane %v1689_v39, 4  ;;  %v9983_v59 = vld [vmem:[#allocation14_spill] sm:$0xff]  ;;  %vm9988_vm14 = vmmov %vm9972_vm0 }
 0x1e3   : > { %v4120_v23 = vshrl.u32 %v3420_v5, 16  ;;  %v4123_v58 = vshll.u32 %v3420_v5, 16  ;;  %v8603_v18 = vcombine.low %v2221_v33, %v2222_v45  ;;  %v1708_v2 = vrot.slane %v1706_v34, 4  ;;  %vm9996_vm8 = vmmov %vm9988_vm14 }
 0x1e4   : > { %v4097_v27 = vrot.slane %v4095_v15, 3  ;;  %v4100_v25 = vrot.slane %v4098_v24, 4  ;;  %v8605_v10 = vrot.slane %v3724_v40, 4  ;;  %vm9984_vm2 = vcmask 785408   ;;  %v3111_v31 = vpop.permute.xlu0 %3110  ;;  %3295 = vrot.lane.b32.xlu0 %v8483_v36, %s6226_s15  ;;  %v9990_v24 = vld [vmem:[#allocation44_spill] sm:$0xff] }
 0x1e5   : > { %v3512_v63 = vsel %vm9984_vm2, %v3477_v20, %v9983_v59  ;;  %v4122_v17 = vrot.slane %v4120_v23, 3  ;;  %v4125_v35 = vrot.slane %v4123_v58, 4  ;;  %v3479_v32 = vsel %vm9977_vm3, %v3430_v26, %v8348_v44  ;;  %vm9987_vm7 = vmmov %vm9984_vm2 }
 0x1e6   : > { %v9985_v39 = vsel %vm8432_vm11, %v7648_v28, 0  ;;  %v4101_v34 = vor.u32 %v4100_v25, %v4097_v27  ;;  %v1709_v40 = vor.u32 %v1708_v2, %v8598_v41  ;;  %v1685_v20 = vsel %vm6484_vm12, %v6477_v46, %v8514_v42  ;;  %v8628_v28 = vpop.permute.xlu1 %2831  ;;  %v8655_v27 = vld [vmem:[#allocation2 + $0x7c] sm:$0xf] }
 0x1e7   : > { %v5376_v1 = vcombine.low %v9985_v39, %v2256_v57  ;;  %v1695_v61 = vsel %vm6484_vm12, %v1690_v52, %v6444_v14  ;;  %v4126_v58 = vor.u32 %v4125_v35, %v4122_v17  ;;  %v3100_v44 = vrot.slane %v8574_v49, 5  ;;  %v9997_v52 = vld [vmem:[#allocation32_spill] sm:$0xff] }
 0x1e8   : > { %v3713_v33 = vshrl.u32 %v3512_v63, 16  ;;  %v3716_v45 = vshll.u32 %v3512_v63, 16  ;;  %vm9986_vm13 = vsmask.f32 4352  ;;  %v9507_v2 = vrot.slane %v8603_v18, 5  ;;  %3132 = vrot.lane.b32.xlu0 %v8558_v43, %s6225_s21 }
 0x1e9   : > { %v4102_v25 = vsel %vm9986_vm13, %v8350_v12, %v4101_v34  ;;  %v3514_v57 = vsel %vm9987_vm7, %v3479_v32, %v8442_v22  ;;  %2966 = vrot.lane.b32.xlu1 %v5376_v1, %s6226_s15  ;;  %vm9989_vm0 = vmmov %vm9986_vm13  ;;  %vm9991_vm2 = vcmp.ne.s16.totalorder %v8476_v13, 0  ;;  %vm8643_vm3 = vcmp.ne.s16.totalorder %v1685_v20, 0 }
 0x1ea   : > { %5938 = vmatprep.mubr.msk.bf16.mxu0 %vm9988_vm14, %v4102_v25  ;;  %v4127_v15 = vsel %vm9989_vm0, %v4101_v34, %v4126_v58  ;;  %v2295_v5 = vsel %vm9991_vm2, %v9990_v24, 0  ;;  %vm8647_vm13 = vcmp.ne.s16.totalorder %v1695_v61, 0  ;;  %v1710_v22 = vrot.slane %v1709_v40, 4  ;;  %v8672_v40 = vpop.permute.xlu0 %3112 }
 0x1eb   : > { %5939 = vmatmul.mubr.msk.bf16.gmra.mxu0 %vm9996_vm8, %v4127_v15  ;;  %v2296_v23 = vsel %vm8516_vm10, %v9997_v52, 0  ;;  %v2327_v59 = vsel %vm8643_vm3, %v8655_v27, 0  ;;  %v2328_v63 = vsel %vm8647_vm13, %v8128_v30, 0  ;;  %v9998_v17 = vrot.slane %v8451_v47, 5  ;;  %v8696_v15 = vld [vmem:[#allocation2 + $0x78] sm:$0xf] }
 0x1ec   : > { %vm9999_vm8 = vcmask 1042432   ;;  %v5346_v32 = vcombine.low %v8128_v30, %v8145_v6  ;;  %v3715_v39 = vrot.slane %v3713_v33, 3  ;;  %v3718_v1 = vrot.slane %v3716_v45, 4 }
 0x1ed   : > { %v3101_v35 = vsel %vm9999_vm8, %v9998_v17, %v3100_v44  ;;  %v3753_v34 = vshrl.u32 %v3514_v57, 16  ;;  %v10000_v20 = vrot.slane %v8327_v19, 5  ;;  %vm10001_vm7 = vmmov %vm9999_vm8  ;;  %2700 = vrot.lane.b32.xlu1 %v8405_v62, %s6225_s21  ;;  %v1705_v47 = vsel %vm6484_vm12, %v6477_v46, %v8598_v41  ;;  %v8691_v19 = vpop.permute.xlu1 %2833 }
 0x1ee   : > { %v2257_v43 = vsel %vm8643_vm3, %v8588_v9, 0  ;;  %v8688_v58 = vcombine.low %v2295_v5, %v2296_v23  ;;  %v872_v33 = vadd.s32 240, %v9828_v38  ;;  %v5412_v45 = vcombine.low %v2327_v59, %v2328_v63 }
 0x1ef   : > { %v2818_v61 = vsel %vm10001_vm7, %v10000_v20, %v9507_v2  ;;  %v1715_v25 = vsel %vm6484_vm12, %v1710_v22, %v6444_v14  ;;  %v2258_v41 = vsel %vm8647_vm13, %v8696_v15, 0  ;;  %vm10002_vm14 = vcmp.ne.s16.totalorder %v8165_v50, 0 }
 0x1f0   : > { %v2223_v5 = vsel %vm10002_vm14, %v8696_v15, 0  ;;  %v2666_v23 = vshrl.u32 %v5346_v32, 16  ;;  %v2669_v17 = vshll.u32 %v5346_v32, 16  ;;  %v2224_v38 = vsel %vm8239_vm1, %v8655_v27, 0  ;;  %3249 = vrot.lane.b32.xlu0 %v5412_v45, %s6224_s20 }
 0x1f1   : > { %v1088_v59 = vand.u32 15, %v872_v33  ;;  %v8707_v63 = vor.u32 %v3718_v1, %v3715_v39  ;;  %v8709_v22 = vrot.slane %v3753_v34, 3  ;;  %v3756_v20 = vshll.u32 %v3514_v57, 16  ;;  %2851 = vrot.lane.b32.xlu1 %v2818_v61, %s6224_s20  ;;  %v10007_v39 = vld [vmem:[#allocation26_spill] sm:$0xff]  ;;  %v8724_v57 = vpop.permute.xlu0 %3229  ;;  %v8726_v34 = vpop.permute.xlu1 %2950 }
 0x1f2   : > { %vm8712_vm0 = vcmp.ne.s16.totalorder %v1705_v47, 0  ;;  %vm8717_vm2 = vcmp.ne.s16.totalorder %v1715_v25, 0  ;;  %v5377_v11 = vcombine.low %v2257_v43, %v2258_v41  ;;  %v3102_v32 = vrot.slane %v8688_v58, 5  ;;  %10009 = vst [vmem:[#allocation31_spill] sm:$0xff] %v8726_v34 }
 0x1f3   : > { %vm1288_vm1 = vcmp.ge.s32.totalorder %v1088_v59, 1  ;;  %vm10008_vm8 = vcmask 261120   ;;  %v2329_v47 = vsel %vm8712_vm0, %v8145_v6, 0  ;;  %v2330_v61 = vsel %vm8717_vm2, %v9990_v24, 0 }
 0x1f4   : > { %v3551_v1 = vsel %vm10008_vm8, %v10007_v39, %v3111_v31  ;;  %v8734_v33 = vcombine.low %v2223_v5, %v2224_v38  ;;  %vm1385_vm7 = vmpackc.low %vm1288_vm1, %vm1288_vm1  ;;  %v2668_v43 = vrot.slane %v2666_v23, 4  ;;  %v2671_v45 = vrot.slane %v2669_v17, 5  ;;  %3134 = vrot.lane.b32.xlu0 %v3101_v35, %s6225_s21  ;;  %v8756_v23 = vld [vmem:[#allocation2 + $0x20] sm:$0xf]  ;;  %v10012_v17 = vld [vmem:[#allocation48_spill] sm:$0xff] }
 0x1f5   : > { %v1417_v25 = vsel %vm1385_vm7, 65537, %v9801_v4  ;;  %v2259_v31 = vsel %vm8712_vm0, %v8655_v27, 0  ;;  %v2260_v39 = vsel %vm8717_vm2, %v8128_v30, 0  ;;  %v5381_v5 = vcombine.low %v9990_v24, %v9997_v52  ;;  %2968 = vrot.lane.b32.xlu1 %v5377_v11, %s6226_s15  ;;  %v3274_v16 = vpop.permute.xlu1 %3273 }
 0x1f6   : > { %v1722_v41 = vshll.u32 %v1417_v25, 16  ;;  %v1726_v59 = vshrl.u32 %v1417_v25, 16  ;;  %v8746_v38 = vrot.slane %v3756_v20, 4  ;;  %vm10010_vm14 = vcmask 523264  }
 0x1f7   : > { %v3599_v4 = vsel %vm10010_vm14, %v3551_v1, %v8593_v0  ;;  %vm10011_vm1 = vcmask 1042432   ;;  %vm10013_vm8 = vnez %v10012_v17  ;;  %v5413_v2 = vcombine.low %v2329_v47, %v2330_v61  ;;  %v3276_v1 = vpop.permute.xlu0 %3275 }
 0x1f8   : > { %v3103_v35 = vsel %vm10011_vm1, %v3100_v44, %v3102_v32  ;;  %v1781_v25 = vsel %vm10013_vm8, %v8756_v23, 0  ;;  %v2819_v20 = vrot.slane %v8734_v33, 5  ;;  %v1724_v62 = vrot.slane %v1722_v41, 5 }
 0x1f9   : > { %v1728_v11 = vrot.slane %v1726_v59, 4  ;;  %v8762_v34 = vor.u32 %v2671_v45, %v2668_v43  ;;  %v5378_v0 = vcombine.low %v2259_v31, %v2260_v39  ;;  %vm10014_vm7 = vcmp.ne.s16.totalorder %v8476_v13, 0  ;;  %3251 = vrot.lane.b32.xlu0 %v5413_v2, %s6224_s20  ;;  %2702 = vrot.lane.b32.xlu1 %v8483_v36, %s6225_s21 }
 0x1fa   : > { %v2225_v49 = vsel %vm10014_vm7, %v8128_v30, 0  ;;  %v2226_v44 = vsel %vm8516_vm10, %v8145_v6, 0  ;;  %vm10015_vm14 = vcmask 785408   ;;  %v2982_v41 = vshrl.u32 %v5381_v5, 16 }
 0x1fb   : > { %v3631_v47 = vsel %vm10015_vm14, %v8527_v29, %v3274_v16  ;;  %v1729_v61 = vor.u32 %v1728_v11, %v1724_v62  ;;  %v2985_v59 = vshll.u32 %v5381_v5, 16  ;;  %vm10016_vm1 = vmmov %vm10015_vm14  ;;  %v5416_v13 = vcombine.low %v8485_v56, %v8498_v54 }
 0x1fc   : > { %v3633_v43 = vsel %vm10016_vm1, %v3599_v4, %v3276_v1  ;;  %v3728_v45 = vshrl.u32 %v3631_v47, 16  ;;  %v3731_v31 = vshll.u32 %v3631_v47, 16  ;;  %v10017_v2 = vrot.slane %v8603_v18, 5  ;;  %v2681_v4 = vpop.permute.xlu1 %2680 }
 0x1fd   : > { %v3761_v60 = vshrl.u32 %v3633_v43, 16  ;;  %v3764_v39 = vshll.u32 %v3633_v43, 16  ;;  %vm10018_vm10 = vcmask 1042432   ;;  %v1730_v29 = vrot.slane %v1729_v61, 4  ;;  %3136 = vrot.lane.b32.xlu0 %v3103_v35, %s6225_s21 }
 0x1fe   : > { %v2820_v16 = vsel %vm10018_vm10, %v10017_v2, %v2819_v20  ;;  %v3730_v5 = vrot.slane %v3728_v45, 3  ;;  %v3733_v23 = vrot.slane %v3731_v31, 4  ;;  %v1725_v17 = vsel %vm6484_vm12, %v6477_v46, %v1724_v62  ;;  %v3290_v31 = vpop.permute.xlu0 %3289 }
 0x1ff   : > { %v8786_v11 = vcombine.low %v2225_v49, %v2226_v44  ;;  %v3763_v1 = vrot.slane %v3761_v60, 3  ;;  %v3766_v47 = vrot.slane %v3764_v39, 4  ;;  %vm10019_vm8 = vsmask.f32 3328  ;;  %2853 = vrot.lane.b32.xlu1 %v2820_v16, %s6224_s20 }
 0x200   : > { %v8792_v18 = vsel %vm10019_vm8, %v8446_v7, %v8762_v34  ;;  %v1735_v61 = vsel %vm6484_vm12, %v1730_v29, %v6444_v14  ;;  %v3734_v43 = vor.u32 %v3733_v23, %v3730_v5  ;;  %v2984_v45 = vrot.slane %v2982_v41, 4  ;;  %vm10024_vm12 = vmmov %vm10016_vm1  ;;  %v2683_v41 = vpop.permute.xlu1 %2682  ;;  %v10029_v29 = vld [vmem:[#allocation47_spill] sm:$0xff] }
 0x201   : > { %v2987_v62 = vrot.slane %v2985_v59, 5  ;;  %v3263_v49 = vshrl.u32 %v5416_v13, 16  ;;  %v8798_v44 = vor.u32 %v3766_v47, %v3763_v1  ;;  %vm8800_vm7 = vcmp.ne.s16.totalorder %v1725_v17, 0  ;;  %3297 = vrot.lane.b32.xlu0 %v8792_v18, %s6226_s15 }
 0x202   : > { %vm8804_vm14 = vcmp.ne.s16.totalorder %v1735_v61, 0  ;;  %v3266_v60 = vshll.u32 %v5416_v13, 16  ;;  %v8810_v14 = vsel %vm10024_vm12, %v8479_v48, %v3290_v31  ;;  %v10025_v59 = vor.u32 %v8605_v10, %v8566_v55  ;;  %v6123_v13 = vld [vmem:[#allocation2 + $0x1c] sm:$0xf]  ;;  %v8837_v1 = vpop.permute.xlu0 %3231 }
 0x203   : > { %vm10026_vm1 = vsmask.f32 4352  ;;  %v2331_v2 = vsel %vm8800_vm7, %v9997_v52, 0  ;;  %v2332_v16 = vsel %vm8804_vm14, %v8485_v56, 0  ;;  %v10027_v48 = vor.u32 %v8359_v37, %v8357_v8  ;;  %2970 = vrot.lane.b32.xlu1 %v5378_v0, %s6226_s15 }
 0x204   : > { %v3735_v39 = vsel %vm10026_vm1, %v10025_v59, %v3734_v43  ;;  %vm10028_vm10 = vmmov %vm10026_vm1  ;;  %v2821_v55 = vrot.slane %v8786_v11, 5  ;;  %vm10030_vm8 = vnez %v10029_v29  ;;  %v2297_v23 = vsel %vm8506_vm6, %v2264_v51, 0  ;;  %v8839_v8 = vpop.permute.xlu1 %2952 }
 0x205   : > { %4348 = vmatprep.mubr.bf16.mxu1 %v3735_v39  ;;  %v3720_v10 = vsel %vm10028_vm10, %v10027_v48, %v8707_v63  ;;  %v1780_v5 = vsel %vm10030_vm8, %v6123_v13, 0  ;;  %vm10031_vm12 = vmmov %vm10026_vm1  ;;  %v5414_v37 = vcombine.low %v2331_v2, %v2332_v16  ;;  %v8841_v47 = vor.u32 %v2987_v62, %v2984_v45  ;;  %v6125_v39 = vld [vmem:[#allocation2 + $0x28] sm:$0xf]  ;;  %v10037_v2 = vld [vmem:[#allocation24_spill] sm:$0xff] }
 0x206   : > { %4349 = vmatmul.mubr.bf16.vlgmr.msra.gmra.mxu1 %v3720_v10  ;;  %v3768_v56 = vsel %vm10031_vm12, %v3734_v43, %v8798_v44  ;;  %v5317_v17 = vcombine.low %v1780_v5, %v1781_v25  ;;  %v3265_v61 = vrot.slane %v3263_v49, 4  ;;  %v3268_v31 = vrot.slane %v3266_v60, 5  ;;  %v1807_v49 = vld [vmem:[#allocation2 + $0x88] sm:$0x1]  ;;  %v6124_v60 = vld [vmem:[#allocation2 + $0x24] sm:$0xf] }
 0x207   : > { %4356 = vmatprep.mubr.bf16.mxu1 %v3768_v56  ;;  %v8845_v0 = vor.u32 %v8746_v38, %v8709_v22  ;;  %3253 = vrot.lane.b32.xlu0 %v5414_v37, %s6224_s20  ;;  %vm10032_vm1 = vcmask 1042432   ;;  %v2261_v43 = vsel %vm8800_vm7, %v8145_v6, 0  ;;  %v2262_v45 = vsel %vm8804_vm14, %v9990_v24, 0  ;;  %v3115_v38 = vpop.permute.xlu0 %3114  ;;  %v6126_v37 = vld [vmem:[#allocation2 + $0x6c] sm:$0xf] }
 0x208   : > { %v2822_v25 = vsel %vm10032_vm1, %v2819_v20, %v2821_v55  ;;  %v5398_v62 = vcombine.low %v2297_v23, %v2297_v23  ;;  %vm10033_vm10 = vcmask 261120   ;;  %v1782_v33 = vsel %vm7550_vm4, %v6124_v60, 0  ;;  %v8868_v6 = vpop.permute.xlu1 %2835  ;;  %v10049_v60 = vld [vmem:[#allocation49_spill] sm:$0xff] }
 0x209   : > { %v3433_v22 = vsel %vm10033_vm10, %v5317_v17, %v2681_v4  ;;  %2855 = vrot.lane.b32.xlu1 %v2822_v25, %s6224_s20  ;;  %vm10035_vm8 = vsmask.f32 3328  ;;  %v8870_v59 = vor.u32 %v3268_v31, %v3265_v61  ;;  %v5379_v24 = vcombine.low %v2261_v43, %v2262_v45 }
 0x20a   : > { %v8866_v20 = vsel %vm10035_vm8, %v8762_v34, %v8841_v47  ;;  %vm10036_vm12 = vcmask 523264   ;;  %vm10038_vm1 = vnez %v10037_v2  ;;  %vm10039_vm4 = vsmask.f32 4352 }
 0x20b   : > { %v3481_v4 = vsel %vm10036_vm12, %v3433_v22, %v8628_v28  ;;  %v1783_v16 = vsel %vm10038_vm1, %v6125_v39, 0  ;;  %3299 = vrot.lane.b32.xlu0 %v8866_v20, %s6226_s15  ;;  %v3760_v48 = vsel %vm10039_vm4, %v8707_v63, %v8845_v0  ;;  %v3104_v10 = vrot.slane %v5398_v62, 5  ;;  %v8884_v29 = vpop.permute.xlu0 %3116  ;;  %v10044_v62 = vld [vmem:[#allocation35_spill] sm:$0xff] }
 0x20c   : > { %v2227_v13 = vsel %vm8506_vm6, %v1807_v49, 0  ;;  %vm10040_vm10 = vcmask 785408   ;;  %v5318_v5 = vcombine.low %v1782_v33, %v1783_v16  ;;  %v3270_v56 = vsel %vm10035_vm8, %v8841_v47, %v8870_v59  ;;  %v8891_v23 = vpop.permute.xlu1 %2837 }
 0x20d   : > { %2972 = vrot.lane.b32.xlu1 %v5379_v24, %s6226_s15  ;;  %v3516_v28 = vsel %vm10040_vm10, %v3481_v4, %v8595_v3  ;;  %vm10041_vm12 = vcmask 1042432   ;;  %vm1773_vm6 = vcmp.ne.s16.totalorder %v6477_v46, 0  ;;  %v5363_v53 = vcombine.low %v2227_v13, %v2227_v13 }
 0x20e   : > { %4357 = vmatmul.mubr.bf16.gmra.mxu1 %v3760_v48  ;;  %v3105_v63 = vsel %vm10041_vm12, %v3102_v32, %v3104_v10  ;;  %vm10042_vm1 = vcmask 261120   ;;  %v2333_v3 = vsel %vm1773_vm6, %v8498_v54, 0  ;;  %v1800_v61 = vsel %vm8643_vm3, %v6126_v37, 0  ;;  %vm10052_vm4 = vmmov %vm10041_vm12 }
 0x20f   : > { %3301 = vrot.lane.b32.xlu0 %v3270_v56, %s6226_s15  ;;  %v3436_v17 = vsel %vm10042_vm1, %v5318_v5, %v2683_v41  ;;  %v1801_v58 = vsel %vm8647_vm13, %v8583_v21, 0  ;;  %v3778_v32 = vshrl.u32 %v3516_v28, 16  ;;  %v8909_v31 = vpop.permute.xlu0 %3233  ;;  %v1802_v41 = vsel %vm8712_vm0, %v8588_v9, 0  ;;  %vm10045_vm13 = vmmov %vm10042_vm1 }
 0x210   : > { %v8911_v25 = vcombine.low %v1800_v61, %v1801_v58  ;;  %v1803_v54 = vsel %vm8717_vm2, %v8696_v15, 0  ;;  %v3781_v43 = vshll.u32 %v3516_v28, 16  ;;  %v8919_v12 = vpop.permute.xlu1 %2954  ;;  %v1804_v21 = vsel %vm8800_vm7, %v8655_v27, 0  ;;  %vm10048_vm2 = vmmov %vm10040_vm10 }
 0x211   : > { %2704 = vrot.lane.b32.xlu1 %v8792_v18, %s6225_s21  ;;  %v8921_v45 = vcombine.low %v1802_v41, %v1803_v54  ;;  %v1805_v26 = vsel %vm8804_vm14, %v8128_v30, 0  ;;  %vm10043_vm3 = vcmask 523264   ;;  %v5415_v42 = vcombine.low %v2333_v3, %v2333_v3  ;;  %vm10050_vm7 = vmmov %vm10042_vm1 }
 0x212   : > { %v3483_v9 = vsel %vm10043_vm3, %v3436_v17, %v8691_v19  ;;  %v2823_v15 = vrot.slane %v5363_v53, 5  ;;  %v8932_v50 = vcombine.low %v1804_v21, %v1805_v26  ;;  %v3554_v22 = vsel %vm10045_vm13, %v10044_v62, %v8672_v40  ;;  %vm10046_vm0 = vmmov %vm10043_vm3  ;;  %v10047_v19 = vld [vmem:[#allocation31_spill] sm:$0xff]  ;;  %v10058_v21 = vld [vmem:[#allocation21_spill] sm:$0xff] }
 0x213   : > { %3138 = vrot.lane.b32.xlu0 %v3105_v63, %s6225_s21  ;;  %v3601_v27 = vsel %vm10046_vm0, %v3554_v22, %v8724_v57  ;;  %v3780_v30 = vrot.slane %v3778_v32, 3  ;;  %v3278_v35 = vpop.permute.xlu0 %3277  ;;  %v3783_v7 = vrot.slane %v3781_v43, 4  ;;  %v3518_v49 = vsel %vm10048_vm2, %v3483_v9, %v10047_v19  ;;  %vm10051_vm14 = vmmov %vm10048_vm2  ;;  %v6127_v43 = vld [vmem:[#allocation2 + $0x2c] sm:$0xf]  ;;  %v10060_v9 = vld [vmem:[#allocation17_spill] sm:$0xff] }
 0x214   : > { %v3557_v51 = vsel %vm10050_vm7, %v10049_v60, %v3115_v38  ;;  %v3635_v33 = vsel %vm10051_vm14, %v3601_v27, %v3278_v35  ;;  %v2685_v24 = vpop.permute.xlu1 %2684  ;;  %v2824_v57 = vsel %vm10052_vm4, %v2821_v55, %v2823_v15  ;;  %v3803_v39 = vshrl.u32 %v3518_v49, 16  ;;  %vm10053_vm10 = vmmov %vm10046_vm0  ;;  %v10063_v19 = vld [vmem:[#allocation30_spill] sm:$0xff]  ;;  %v6130_v60 = vld [vmem:[#allocation2 + $0x38] sm:$0xf] }
 0x215   : > { %2706 = vrot.lane.b32.xlu1 %v8762_v34, %s6225_s21  ;;  %v3786_v4 = vshrl.u32 %v3635_v33, 16  ;;  %v3789_v40 = vshll.u32 %v3635_v33, 16  ;;  %v2263_v34 = vsel %vm1773_vm6, %v9997_v52, 0  ;;  %v3603_v16 = vsel %vm10053_vm10, %v3557_v51, %v8837_v1  ;;  %vm10054_vm8 = vmmov %vm10048_vm2  ;;  %v10065_v51 = vld [vmem:[#allocation33_spill] sm:$0xff] }
 0x216   : > { %v3806_v10 = vshll.u32 %v3518_v49, 16  ;;  %v5380_v11 = vcombine.low %v2263_v34, %v2263_v34  ;;  %v3784_v5 = vor.u32 %v3783_v7, %v3780_v30  ;;  %vm10055_vm12 = vsmask.f32 4352  ;;  %v6129_v7 = vld [vmem:[#allocation2 + $0x34] sm:$0xf] }
 0x217   : > { %3255 = vrot.lane.b32.xlu0 %v5415_v42, %s6224_s20  ;;  %v3788_v2 = vrot.slane %v3786_v4, 3  ;;  %v3791_v38 = vrot.slane %v3789_v40, 4  ;;  %v3280_v48 = vpop.permute.xlu0 %3279  ;;  %v3805_v3 = vrot.slane %v3803_v39, 3  ;;  %vm10056_vm1 = vmmov %vm10055_vm12  ;;  %vm10059_vm13 = vnez %v10058_v21 }
 0x218   : > { %v3637_v13 = vsel %vm10054_vm8, %v3603_v16, %v3280_v48  ;;  %v2687_v28 = vpop.permute.xlu1 %2686  ;;  %v3808_v37 = vrot.slane %v3806_v10, 4  ;;  %v3785_v61 = vsel %vm10056_vm1, %v8845_v0, %v3784_v5  ;;  %vm10057_vm3 = vmmov %vm10056_vm1  ;;  %v1784_v26 = vsel %vm10059_vm13, %v6127_v43, 0  ;;  %v6128_v0 = vld [vmem:[#allocation2 + $0x30] sm:$0xf] }
 0x219   : > { %2857 = vrot.lane.b32.xlu1 %v2824_v57, %s6224_s20  ;;  %v3792_v55 = vor.u32 %v3791_v38, %v3788_v2  ;;  %v3811_v56 = vshrl.u32 %v3637_v13, 16  ;;  %v3814_v63 = vshll.u32 %v3637_v13, 16  ;;  %vm10061_vm0 = vnez %v10060_v9  ;;  %vm10062_vm2 = vmmov %vm10056_vm1 }
 0x21a   : > { %v1785_v42 = vsel %vm10061_vm0, %v6128_v0, 0  ;;  %vm10064_vm14 = vnez %v10063_v19  ;;  %vm10066_vm4 = vnez %v10065_v51  ;;  %vm10068_vm1 = vmmov %vm10053_vm10  ;;  %v10084_v19 = vld [vmem:[#allocation23_spill] sm:$0xff] }
 0x21b   : > { %3303 = vrot.lane.b32.xlu0 %v8870_v59, %s6226_s15  ;;  %v3813_v52 = vrot.slane %v3811_v56, 3  ;;  %v3816_v53 = vrot.slane %v3814_v63, 4  ;;  %v3238_v17 = vpop.permute.xlu0 %3237  ;;  %v3793_v1 = vsel %vm10055_vm12, %v8798_v44, %v3792_v55  ;;  %v8974_v44 = vor.u32 %v3808_v37, %v3805_v3  ;;  %vm10067_vm12 = vmmov %vm10050_vm7  ;;  %v10073_v63 = vld [vmem:[#allocation11_spill] sm:$0xff] }
 0x21c   : > { %4364 = vmatprep.mubr.bf16.mxu1 %v3793_v1  ;;  %v8964_v58 = vpop.permute.xlu1 %2958  ;;  %v5319_v27 = vcombine.low %v1784_v26, %v1785_v42  ;;  %v1786_v49 = vsel %vm10064_vm14, %v6129_v7, 0  ;;  %v1787_v33 = vsel %vm10066_vm4, %v6130_v60, 0  ;;  %vm10071_vm13 = vmmov %vm10068_vm1  ;;  %v10079_v26 = vld [vmem:[#allocation45_spill] sm:$0xff]  ;;  %v10086_v60 = vld [vmem:[#allocation22_spill] sm:$0xff] }
 0x21d   : > { %2974 = vrot.lane.b32.xlu1 %v5380_v11, %s6226_s15  ;;  %v8966_v32 = vor.u32 %v3816_v53, %v3813_v52  ;;  %4365 = vmatmul.mubr.bf16.gmra.mxu1 %v3785_v61  ;;  %v3810_v62 = vsel %vm10062_vm2, %v3784_v5, %v8974_v44  ;;  %v5320_v57 = vcombine.low %v1786_v49, %v1787_v33  ;;  %v10069_v11 = vld [vmem:[#allocation6_spill] sm:$0xff]  ;;  %vm10072_vm0 = vmmov %vm10054_vm8 }
 0x21e   : > { %v3439_v30 = vsel %vm10050_vm7, %v5319_v27, %v2685_v24  ;;  %vm10078_vm4 = vmmov %vm10068_vm1  ;;  %v6132_v49 = vld [vmem:[#allocation2 + $0x40] sm:$0xf] }
 0x21f   : > { %v8968_v59 = vpop.permute.xlu0 %3235  ;;  %v3818_v41 = vsel %vm10057_vm3, %v3792_v55, %v8966_v32  ;;  %v3485_v40 = vsel %vm10053_vm10, %v3439_v30, %v8868_v6  ;;  %v3442_v2 = vsel %vm10067_vm12, %v5320_v57, %v2687_v28  ;;  %vm10070_vm3 = vmmov %vm10050_vm7  ;;  %v10082_v30 = vld [vmem:[#allocation20_spill] sm:$0xff] }
 0x220   : > { %4372 = vmatprep.mubr.bf16.mxu1 %v3818_v41  ;;  %v8972_v54 = vpop.permute.xlu1 %2956  ;;  %v3520_v24 = vsel %vm10054_vm8, %v3485_v40, %v8839_v8  ;;  %v3487_v10 = vsel %vm10068_vm1, %v3442_v2, %v8891_v23  ;;  %v3560_v6 = vsel %vm10070_vm3, %v10069_v11, %v8884_v29  ;;  %vm10074_vm2 = vmmov %vm10070_vm3  ;;  %v10076_v29 = vld [vmem:[#allocation41_spill] sm:$0xff]  ;;  %vm10087_vm3 = vnez %v10086_v60 }
 0x221   : > { %v3828_v16 = vshrl.u32 %v3520_v24, 16  ;;  %v3831_v48 = vshll.u32 %v3520_v24, 16  ;;  %v3605_v5 = vsel %vm10071_vm13, %v3560_v6, %v8909_v31  ;;  %v3522_v8 = vsel %vm10072_vm0, %v3487_v10, %v8919_v12  ;;  %vm10075_vm7 = vmmov %vm10072_vm0  ;;  %v10092_v6 = vld [vmem:[#allocation28_spill] sm:$0xff] }
 0x222   : > { %v3853_v37 = vshrl.u32 %v3522_v8, 16  ;;  %vm10077_vm14 = vmmov %vm10074_vm2  ;;  %v3856_v21 = vshll.u32 %v3522_v8, 16  ;;  %v1789_v51 = vsel %vm10087_vm3, %v6132_v49, 0  ;;  %v10103_v49 = vld [vmem:[#allocation39_spill] sm:$0xff] }
 0x223   : > { %v3123_v15 = vpop.permute.xlu0 %3122  ;;  %v3830_v28 = vrot.slane %v3828_v16, 3  ;;  %v3833_v56 = vrot.slane %v3831_v48, 4  ;;  %vm10080_vm10 = vmmov %vm10074_vm2 }
 0x224   : > { %v8982_v22 = vpop.permute.xlu1 %2843  ;;  %v3569_v61 = vsel %vm10077_vm14, %v10076_v29, %v3123_v15  ;;  %vm10081_vm8 = vmmov %vm10072_vm0  ;;  %v6131_v15 = vld [vmem:[#allocation2 + $0x3c] sm:$0xf]  ;;  %vm10089_vm0 = vsmask.f32 4352  ;;  %v3855_v24 = vrot.slane %v3853_v37, 3  ;;  %v3858_v2 = vrot.slane %v3856_v21, 4 }
 0x225   : > { %4373 = vmatmul.mubr.bf16.gmra.mxu1 %v3810_v62  ;;  %v3834_v62 = vor.u32 %v3833_v56, %v3830_v28  ;;  %vm10083_vm12 = vmmov %vm10068_vm1  ;;  %vm10085_vm1 = vnez %v10084_v19  ;;  %v10095_v37 = vld [vmem:[#allocation37_spill] sm:$0xff] }
 0x226   : > { %v3611_v7 = vsel %vm10083_vm12, %v3569_v61, %v10082_v30  ;;  %vm10088_vm13 = vmmov %vm10078_vm4 }
 0x227   : > { %v3119_v35 = vpop.permute.xlu0 %3118  ;;  %vm10101_vm3 = vmmov %vm10089_vm0 }
 0x228   : > { %v8989_v4 = vpop.permute.xlu1 %2839  ;;  %v3563_v0 = vsel %vm10080_vm10, %v10079_v26, %v3119_v35 }
 0x229   : > { %v3607_v35 = vsel %vm10088_vm13, %v3563_v0, %v8968_v59  ;;  %vm10102_vm13 = vmmov %vm10089_vm0 }
 0x22b   : > { %v3121_v34 = vpop.permute.xlu0 %3120 }
 0x22c   : > { %v8993_v39 = vpop.permute.xlu1 %2841  ;;  %v3566_v52 = vsel %vm10074_vm2, %v10073_v63, %v3121_v34  ;;  %vm10090_vm2 = vmmov %vm10075_vm7 }
 0x22d   : > { %v3609_v31 = vsel %vm10078_vm4, %v3566_v52, %v3238_v17  ;;  %v1788_v17 = vsel %vm10085_vm1, %v6131_v15, 0  ;;  %vm10093_vm14 = vmmov %vm10090_vm2  ;;  %v3859_v52 = vor.u32 %v3858_v2, %v3855_v24 }
 0x22e   : > { %v3645_v59 = vsel %vm10093_vm14, %v3611_v7, %v10092_v6  ;;  %vm10094_vm4 = vmmov %vm10080_vm10  ;;  %vm10096_vm10 = vnez %v10095_v37  ;;  %v3936_v6 = vshrl.u32 %v8810_v14, 16 }
 0x22f   : > { %v3286_v38 = vpop.permute.xlu0 %3285  ;;  %v3914_v21 = vshll.u32 %v3645_v59, 16  ;;  %vm10100_vm1 = vmmov %vm10090_vm2  ;;  %v3860_v19 = vsel %vm10102_vm13, %v3834_v62, %v3859_v52 }
 0x230   : > { %v9000_v13 = vpop.permute.xlu1 %2692  ;;  %v3643_v9 = vsel %vm10081_vm8, %v3609_v31, %v3286_v38  ;;  %vm10097_vm8 = vmmov %vm10083_vm12  ;;  %v6134_v31 = vld [vmem:[#allocation2 + $0x44] sm:$0xf] }
 0x231   : > { %v3886_v33 = vshrl.u32 %v3643_v9, 16  ;;  %v3889_v40 = vshll.u32 %v3643_v9, 16  ;;  %vm10108_vm14 = vmmov %vm10094_vm4 }
 0x233   : > { %v3282_v55 = vpop.permute.xlu0 %3281  ;;  %v3888_v8 = vrot.slane %v3886_v33, 3  ;;  %v6136_v33 = vld [vmem:[#allocation2 + $0x50] sm:$0xf] }
 0x234   : > { %v3639_v23 = vsel %vm10075_vm7, %v3605_v5, %v3282_v55  ;;  %v9012_v53 = vpop.permute.xlu1 %2694  ;;  %vm10091_vm7 = vmmov %vm10089_vm0  ;;  %v5321_v5 = vcombine.low %v1788_v17, %v1789_v51  ;;  %v3891_v55 = vrot.slane %v3889_v40, 4  ;;  %v10106_v40 = vld [vmem:[#allocation34_spill] sm:$0xff] }
 0x235   : > { %v3836_v1 = vshrl.u32 %v3639_v23, 16  ;;  %v3839_v3 = vshll.u32 %v3639_v23, 16  ;;  %v3835_v16 = vsel %vm10091_vm7, %v8974_v44, %v3834_v62  ;;  %v3911_v44 = vshrl.u32 %v3645_v59, 16 }
 0x236   : > { %v3892_v26 = vor.u32 %v3891_v55, %v3888_v8  ;;  %vm10107_vm7 = vnez %v10106_v40  ;;  %v3939_v8 = vshll.u32 %v8810_v14, 16  ;;  %v10111_v55 = vld [vmem:[#allocation36_spill] sm:$0xff] }
 0x237   : > { %v3838_v41 = vrot.slane %v3836_v1, 3  ;;  %v3841_v12 = vrot.slane %v3839_v3, 4  ;;  %v9017_v43 = vpop.permute.xlu0 %3126  ;;  %v6133_v3 = vld [vmem:[#allocation2 + $0x4c] sm:$0xf] }
 0x238   : > { %v9022_v42 = vpop.permute.xlu1 %2845  ;;  %v1792_v29 = vsel %vm10096_vm10, %v6133_v3, 0  ;;  %vm10109_vm10 = vmmov %vm10097_vm8 }
 0x239   : > { %v3842_v27 = vor.u32 %v3841_v12, %v3838_v41  ;;  %v10098_v41 = vld [vmem:[#allocation38_spill] sm:$0xff] }
 0x23a   : > { %vm10099_vm12 = vnez %v10098_v41  ;;  %v10117_v41 = vld [vmem:[#allocation9_spill] sm:$0xff] }
 0x23b   : > { %v3284_v57 = vpop.permute.xlu0 %3283  ;;  %v3843_v34 = vsel %vm10089_vm0, %v8966_v32, %v3842_v27  ;;  %v1790_v12 = vsel %vm10099_vm12, %v6134_v31, 0  ;;  %vm10104_vm0 = vnez %v10103_v49  ;;  %vm10112_vm12 = vmmov %vm10094_vm4  ;;  %v3938_v31 = vrot.slane %v3936_v6, 3 }
 0x23c   : > { %v3641_v38 = vsel %vm10090_vm2, %v3607_v35, %v3284_v57  ;;  %4380 = vmatprep.mubr.bf16.mxu1 %v3843_v34  ;;  %v9037_v48 = vpop.permute.xlu1 %2962  ;;  %vm10105_vm2 = vmmov %vm10101_vm3  ;;  %v3913_v57 = vrot.slane %v3911_v44, 3  ;;  %v3916_v34 = vrot.slane %v3914_v21, 4  ;;  %v10137_v21 = vld [vmem:[#allocation27_spill] sm:$0xff] }
 0x23d   : > { %v3861_v10 = vshrl.u32 %v3641_v38, 16  ;;  %v3864_v11 = vshll.u32 %v3641_v38, 16  ;;  %4381 = vmatmul.mubr.bf16.gmra.mxu1 %v3835_v16 }
 0x23f   : > { %v3863_v32 = vrot.slane %v3861_v10, 3  ;;  %v3866_v28 = vrot.slane %v3864_v11, 4  ;;  %v3244_v56 = vpop.permute.xlu0 %3243 }
 0x240   : > { %v2689_v63 = vpop.permute.xlu1 %2688 }
 0x241   : > { %v3867_v23 = vor.u32 %v3866_v28, %v3863_v32  ;;  %v3445_v1 = vsel %vm10094_vm4, %v5321_v5, %v2689_v63  ;;  %v3575_v32 = vsel %vm10112_vm12, %v10111_v55, %v9017_v43 }
 0x242   : > { %v3489_v61 = vsel %vm10097_vm8, %v3445_v1, %v8989_v4  ;;  %v6135_v4 = vld [vmem:[#allocation2 + $0x48] sm:$0xf]  ;;  %vm10110_vm8 = vmmov %vm10105_vm2 }
 0x243   : > { %v3292_v0 = vpop.permute.xlu0 %3291  ;;  %v3524_v9 = vsel %vm10100_vm1, %v3489_v61, %v8972_v54  ;;  %v3868_v30 = vsel %vm10101_vm3, %v3842_v27, %v3867_v23  ;;  %v1791_v60 = vsel %vm10104_vm0, %v6135_v4, 0  ;;  %v3893_v51 = vsel %vm10105_vm2, %v3867_v23, %v3892_v26  ;;  %vm10113_vm3 = vmmov %vm10109_vm10 }
 0x244   : > { %v3878_v7 = vshrl.u32 %v3524_v9, 16  ;;  %v3881_v15 = vshll.u32 %v3524_v9, 16  ;;  %4388 = vmatprep.mubr.bf16.mxu1 %v3868_v30  ;;  %v9052_v17 = vpop.permute.xlu1 %2696  ;;  %v1793_v54 = vsel %vm10107_vm7, %v6136_v33, 0  ;;  %v5322_v2 = vcombine.low %v1790_v12, %v1791_v60  ;;  %vm10114_vm13 = vmmov %vm10113_vm3  ;;  %v6138_v12 = vld [vmem:[#allocation2 + $0x58] sm:$0xf] }
 0x245   : > { %4389 = vmatmul.mubr.bf16.gmra.mxu1 %v3860_v19  ;;  %v5323_v24 = vcombine.low %v1792_v29, %v1793_v54  ;;  %v3615_v1 = vsel %vm10114_vm13, %v3575_v32, %v3244_v56  ;;  %vm10116_vm0 = vmmov %vm10100_vm1  ;;  %v1795_v9 = vsel %vm8138_vm5, %v6138_v12, 0  ;;  %v10130_v32 = vld [vmem:[#allocation8_spill] sm:$0xff] }
 0x246   : > { %v3880_v35 = vrot.slane %v3878_v7, 3  ;;  %v3883_v27 = vrot.slane %v3881_v15, 4  ;;  %4396 = vmatprep.mubr.bf16.mxu1 %v3893_v51  ;;  %v3649_v43 = vsel %vm10116_vm0, %v3615_v1, %v3292_v0  ;;  %vm10118_vm7 = vmmov %vm10116_vm0 }
 0x247   : > { %v3129_v62 = vpop.permute.xlu0 %3128  ;;  %v3451_v10 = vsel %vm10108_vm14, %v5323_v24, %v9000_v13  ;;  %v3917_v13 = vor.u32 %v3916_v34, %v3913_v57  ;;  %v3961_v15 = vshrl.u32 %v3649_v43, 16  ;;  %v3964_v19 = vshll.u32 %v3649_v43, 16  ;;  %vm10121_vm14 = vmmov %vm10105_vm2  ;;  %v10124_v34 = vld [vmem:[#allocation29_spill] sm:$0xff] }
 0x248   : > { %v2691_v38 = vpop.permute.xlu1 %2690  ;;  %v3884_v16 = vor.u32 %v3883_v27, %v3880_v35  ;;  %v3493_v23 = vsel %vm10113_vm3, %v3451_v10, %v8982_v22  ;;  %v3941_v22 = vrot.slane %v3939_v8, 4  ;;  %vm10123_vm5 = vmmov %vm10116_vm0 }
 0x249   : > { %v3448_v11 = vsel %vm10094_vm4, %v5322_v2, %v2691_v38  ;;  %v3918_v29 = vsel %vm10105_vm2, %v3892_v26, %v3917_v13  ;;  %v3528_v56 = vsel %vm10118_vm7, %v3493_v23, %v10117_v41  ;;  %v3963_v27 = vrot.slane %v3961_v15, 3 }
 0x24a   : > { %v3491_v59 = vsel %vm10109_vm10, %v3448_v11, %v8993_v39  ;;  %v3885_v5 = vsel %vm10110_vm8, %v3859_v52, %v3884_v16  ;;  %v6137_v52 = vld [vmem:[#allocation2 + $0x54] sm:$0xf]  ;;  %v3928_v49 = vshrl.u32 %v3528_v56, 16  ;;  %v3931_v26 = vshll.u32 %v3528_v56, 16  ;;  %vm10125_vm10 = vmmov %vm10112_vm12  ;;  %v6139_v11 = vld [vmem:[#allocation2 + $0x60] sm:$0xf] }
 0x24b   : > { %v3246_v28 = vpop.permute.xlu0 %3245  ;;  %v3526_v63 = vsel %vm10100_vm1, %v3491_v59, %v8964_v58  ;;  %v1794_v37 = vsel %vm8098_vm15, %v6137_v52, 0  ;;  %vm10120_vm15 = vmmov %vm10094_vm4  ;;  %v3942_v33 = vor.u32 %v3941_v22, %v3938_v31  ;;  %v3966_v57 = vrot.slane %v3964_v19, 4  ;;  %v6141_v52 = vld [vmem:[#allocation2 + $0x64] sm:$0xf]  ;;  %v6142_v31 = vld [vmem:[#allocation2 + $0x68] sm:$0xf] }
 0x24c   : > { %v3903_v44 = vshrl.u32 %v3526_v63, 16  ;;  %v3906_v39 = vshll.u32 %v3526_v63, 16  ;;  %v9075_v3 = vpop.permute.xlu1 %2847  ;;  %v5324_v7 = vcombine.low %v1794_v37, %v1795_v9  ;;  %vm10122_vm4 = vmmov %vm10113_vm3  ;;  %v3578_v24 = vsel %vm10125_vm10, %v10124_v34, %v3129_v62  ;;  %v6140_v62 = vld [vmem:[#allocation2 + $0x5c] sm:$0xf]  ;;  %v10134_v22 = vld [vmem:[#allocation10_spill] sm:$0xff] }
 0x24d   : > { %4397 = vmatmul.mubr.bf16.gmra.mxu1 %v3885_v5  ;;  %vm10126_vm8 = vmmov %vm10113_vm3  ;;  %v3933_v10 = vrot.slane %v3931_v26, 4  ;;  %v3967_v55 = vor.u32 %v3966_v57, %v3963_v27  ;;  %vm10131_vm3 = vnez %v10130_v32  ;;  %v1798_v37 = vsel %vm8432_vm11, %v6141_v52, 0 }
 0x24e   : > { %v3905_v58 = vrot.slane %v3903_v44, 3  ;;  %v3908_v61 = vrot.slane %v3906_v39, 4  ;;  %4404 = vmatprep.mubr.bf16.mxu1 %v3918_v29  ;;  %v3454_v60 = vsel %vm10120_vm15, %v5324_v7, %v9012_v53  ;;  %v3617_v38 = vsel %vm10126_vm8, %v3578_v24, %v3246_v28  ;;  %vm10127_vm12 = vmmov %vm10105_vm2  ;;  %v6089_v44 = vld [vmem:[%s9356_s5 + $0x8] sm:$0xff]   ;;  %v6090_v39 = vld [vmem:[%s9356_s5] sm:$0xff]  }
 0x24f   : > { %v3294_v30 = vpop.permute.xlu0 %3293  ;;  %v3495_v40 = vsel %vm10122_vm4, %v3454_v60, %v9022_v42  ;;  %v3943_v53 = vsel %vm10127_vm12, %v3917_v13, %v3942_v33  ;;  %v1797_v42 = vsel %vm8283_vm9, %v6139_v11, 0  ;;  %vm10129_vm1 = vmmov %vm10116_vm0  ;;  %v1796_v28 = vsel %vm10131_vm3, %v6140_v62, 0  ;;  %5942 = vmatprep.subr.bf16.mxu0 %v6089_v44 }
 0x250   : > { %v2965_v0 = vpop.permute.xlu1 %2964  ;;  %v3909_v4 = vor.u32 %v3908_v61, %v3905_v58  ;;  %v3530_v35 = vsel %vm10123_vm5, %v3495_v40, %v9037_v48  ;;  %v3651_v59 = vsel %vm10129_vm1, %v3617_v38, %v3294_v30  ;;  %v5325_v23 = vcombine.low %v1796_v28, %v1797_v42  ;;  %vm10133_vm9 = vmmov %vm10125_vm10  ;;  %5943 = vmatpush3.bf16.msra.mxu0 %v6089_v44 }
 0x251   : > { %v3953_v48 = vshrl.u32 %v3530_v35, 16  ;;  %v3956_v5 = vshll.u32 %v3530_v35, 16  ;;  %v3986_v13 = vshrl.u32 %v3651_v59, 16  ;;  %v3989_v1 = vshll.u32 %v3651_v59, 16  ;;  %vm10136_vm0 = vmmov %vm10122_vm4  ;;  %5944 = vmatprep.subr.bf16.mxu0 %v6090_v39 }
 0x252   : > { %v3910_v51 = vsel %vm10121_vm14, %v3884_v16, %v3909_v4  ;;  %v3930_v16 = vrot.slane %v3928_v49, 3  ;;  %v3457_v61 = vsel %vm10133_vm9, %v5325_v23, %v9052_v17  ;;  %vm10135_vm13 = vnez %v10134_v22  ;;  %vm10138_vm2 = vmmov %vm10133_vm9 }
 0x253   : > { %v3131_v54 = vpop.permute.xlu0 %3130  ;;  %v3955_v29 = vrot.slane %v3953_v48, 3  ;;  %v3958_v58 = vrot.slane %v3956_v5, 4  ;;  %v1799_v41 = vsel %vm10135_vm13, %v6142_v31, 0  ;;  %v3497_v12 = vsel %vm10136_vm0, %v3457_v61, %v9075_v3  ;;  %vm10139_vm7 = vmmov %vm10127_vm12 }
 0x254   : > { %v2699_v2 = vpop.permute.xlu1 %2698  ;;  %v3934_v43 = vor.u32 %v3933_v10, %v3930_v16  ;;  %v3581_v9 = vsel %vm10138_vm2, %v10137_v21, %v3131_v54  ;;  %vm10140_vm11 = vmmov %vm10139_vm7  ;;  %v3988_v19 = vrot.slane %v3986_v13, 3  ;;  %v3991_v17 = vrot.slane %v3989_v1, 4  ;;  %5945 = vmatpush3.bf16.msra.mxu0 %v6090_v39 }
 0x255   : > { %4405 = vmatmul.mubr.bf16.gmra.mxu1 %v3910_v51  ;;  %v3968_v15 = vsel %vm10140_vm11, %v3942_v33, %v3967_v55  ;;  %vm10141_vm15 = vmmov %vm10129_vm1  ;;  %v5326_v3 = vcombine.low %v1798_v37, %v1799_v41  ;;  %v3959_v40 = vor.u32 %v3958_v58, %v3955_v29 }
 0x256   : > { %4412 = vmatprep.mubr.bf16.mxu1 %v3943_v53  ;;  %v3935_v30 = vsel %vm10139_vm7, %v3909_v4, %v3934_v43  ;;  %v3532_v49 = vsel %vm10141_vm15, %v3497_v12, %v2965_v0  ;;  %vm10142_vm14 = vmmov %vm10136_vm0  ;;  %v3992_v33 = vor.u32 %v3991_v17, %v3988_v19 }
 0x257   : > { %v3248_v8 = vpop.permute.xlu0 %3247  ;;  %vm10143_vm4 = vmmov %vm10129_vm1  ;;  %v3978_v54 = vshrl.u32 %v3532_v49, 16  ;;  %v3981_v4 = vshll.u32 %v3532_v49, 16 }
 0x258   : > { %v2850_v63 = vpop.permute.xlu1 %2849  ;;  %v3619_v26 = vsel %vm10142_vm14, %v3581_v9, %v3248_v8  ;;  %vm10144_vm5 = vmmov %vm10138_vm2 }
 0x259   : > { %v3460_v27 = vsel %vm10144_vm5, %v5326_v3, %v2699_v2  ;;  %vm10145_vm10 = vmmov %vm10136_vm0  ;;  %v3980_v53 = vrot.slane %v3978_v54, 3  ;;  %v3983_v16 = vrot.slane %v3981_v4, 4 }
 0x25a   : > { %v3499_v0 = vsel %vm10145_vm10, %v3460_v27, %v2850_v63  ;;  %vm10146_vm8 = vmmov %vm10129_vm1 }
 0x25b   : > { %v3296_v56 = vpop.permute.xlu0 %3295  ;;  %vm10147_vm12 = vmmov %vm10139_vm7  ;;  %v3984_v62 = vor.u32 %v3983_v16, %v3980_v53 }
 0x25c   : > { %v2967_v7 = vpop.permute.xlu1 %2966  ;;  %v3653_v60 = vsel %vm10143_vm4, %v3619_v26, %v3296_v56  ;;  %v3960_v10 = vsel %vm10147_vm12, %v3934_v43, %v3959_v40  ;;  %vm10148_vm1 = vmmov %vm10139_vm7 }
 0x25d   : > { %4413 = vmatmul.mubr.bf16.gmra.mxu1 %v3935_v30  ;;  %v4011_v57 = vshrl.u32 %v3653_v60, 16  ;;  %v4014_v34 = vshll.u32 %v3653_v60, 16  ;;  %v3534_v24 = vsel %vm10146_vm8, %v3499_v0, %v2967_v7  ;;  %v3993_v59 = vsel %vm10148_vm1, %v3967_v55, %v3992_v33  ;;  %vm10149_vm3 = vmmov %vm10138_vm2 }
 0x25e   : > { %4420 = vmatprep.mubr.bf16.mxu1 %v3968_v15  ;;  %v4003_v48 = vshrl.u32 %v3534_v24, 16  ;;  %v4006_v5 = vshll.u32 %v3534_v24, 16  ;;  %vm10150_vm9 = vmmov %vm10136_vm0 }
 0x25f   : > { %v3133_v51 = vpop.permute.xlu0 %3132  ;;  %v4013_v6 = vrot.slane %v4011_v57, 3  ;;  %v4016_v42 = vrot.slane %v4014_v34, 4  ;;  %vm10151_vm13 = vmmov %vm10143_vm4 }
 0x260   : > { %v2701_v35 = vpop.permute.xlu1 %2700  ;;  %v4005_v13 = vrot.slane %v4003_v48, 3  ;;  %v4008_v1 = vrot.slane %v4006_v5, 4  ;;  %vm10152_vm0 = vmmov %vm10148_vm1 }
 0x261   : > { %v3463_v2 = vsel %vm10149_vm3, %v8911_v25, %v2701_v35  ;;  %v4017_v63 = vor.u32 %v4016_v42, %v4013_v6  ;;  %v3985_v37 = vsel %vm10152_vm0, %v3959_v40, %v3984_v62  ;;  %vm10153_vm2 = vmmov %vm10152_vm0 }
 0x262   : > { %v4009_v29 = vor.u32 %v4008_v1, %v4005_v13  ;;  %vm10154_vm7 = vmmov %vm10152_vm0 }
 0x263   : > { %v3250_v38 = vpop.permute.xlu0 %3249  ;;  %v4018_v25 = vsel %vm10153_vm2, %v3992_v33, %v4017_v63  ;;  %vm10155_vm11 = vmmov %vm10149_vm3 }
 0x264   : > { %v2852_v11 = vpop.permute.xlu1 %2851  ;;  %v3584_v41 = vsel %vm10155_vm11, %v8483_v36, %v3133_v51  ;;  %vm10156_vm15 = vmmov %vm10150_vm9 }
 0x265   : > { %4421 = vmatmul.mubr.bf16.gmra.mxu1 %v3960_v10  ;;  %v3501_v32 = vsel %vm10150_vm9, %v3463_v2, %v2852_v11  ;;  %v3621_v56 = vsel %vm10156_vm15, %v3584_v41, %v3250_v38  ;;  %vm10157_vm14 = vmmov %vm10149_vm3 }
 0x266   : > { %4428 = vmatprep.mubr.bf16.mxu1 %v3993_v59  ;;  %vm10158_vm5 = vmmov %vm10150_vm9 }
 0x267   : > { %v3135_v8 = vpop.permute.xlu0 %3134  ;;  %vm10159_vm10 = vmmov %vm10152_vm0 }
 0x268   : > { %v2969_v28 = vpop.permute.xlu1 %2968  ;;  %v4010_v7 = vsel %vm10159_vm10, %v3984_v62, %v4009_v29  ;;  %vm10160_vm8 = vmmov %vm10143_vm4 }
 0x269   : > { %v3536_v23 = vsel %vm10151_vm13, %v3501_v32, %v2969_v28  ;;  %vm10161_vm12 = vmmov %vm10149_vm3 }
 0x26a   : > { %v4028_v44 = vshrl.u32 %v3536_v23, 16  ;;  %v4031_v39 = vshll.u32 %v3536_v23, 16  ;;  %v3587_v35 = vsel %vm10161_vm12, %v8792_v18, %v3135_v8  ;;  %vm10162_vm1 = vmmov %vm10158_vm5 }
 0x26b   : > { %v3252_v52 = vpop.permute.xlu0 %3251  ;;  %vm10163_vm3 = vmmov %vm10152_vm0 }
 0x26c   : > { %v4030_v55 = vrot.slane %v4028_v44, 3  ;;  %v4033_v14 = vrot.slane %v4031_v39, 4  ;;  %v2703_v43 = vpop.permute.xlu1 %2702  ;;  %v3623_v27 = vsel %vm10162_vm1, %v3587_v35, %v3252_v52  ;;  %vm10164_vm9 = vmmov %vm10143_vm4  ;;  %v9174_v35 = vld [vmem:[%s9355_s4] ss:$0 sm:$0xff] }
 0x26d   : > { %4429 = vmatmul.mubr.bf16.gmra.mxu1 %v3985_v37  ;;  %v3466_v12 = vsel %vm10157_vm14, %v8921_v45, %v2703_v43  ;;  %vm10165_vm13 = vmmov %vm10152_vm0  ;;  %v6143_v37 = vld [vmem:[#allocation2 + $0x84] sm:$0xf] }
 0x26e   : > { %v4034_v58 = vor.u32 %v4033_v14, %v4030_v55  ;;  %4436 = vmatprep.mubr.bf16.mxu1 %v4018_v25  ;;  %vm10166_vm0 = vmmov %vm10155_vm11 }
 0x26f   : > { %v3137_v61 = vpop.permute.xlu0 %3136  ;;  %vm10167_vm2 = vmmov %vm10162_vm1 }
 0x270   : > { %v4035_v22 = vsel %vm10154_vm7, %v4009_v29, %v4034_v58  ;;  %v3590_v10 = vsel %vm10166_vm0, %v8866_v20, %v3137_v61  ;;  %vm10168_vm7 = vmmov %vm10143_vm4 }
 0x271   : > { %v2854_v31 = vpop.permute.xlu1 %2853  ;;  %vm10169_vm11 = vmmov %vm10166_vm0 }
 0x272   : > { %v3503_v30 = vsel %vm10158_vm5, %v3466_v12, %v2854_v31  ;;  %vm10170_vm15 = vmmov %vm10162_vm1 }
 0x273   : > { %v3298_v21 = vpop.permute.xlu0 %3297  ;;  %vm10171_vm14 = vmmov %vm10143_vm4 }
 0x274   : > { %v3655_v9 = vsel %vm10143_vm4, %v3621_v56, %v3298_v21  ;;  %vm10172_vm4 = vmmov %vm10163_vm3 }
 0x275   : > { %v2971_v15 = vpop.permute.xlu1 %2970  ;;  %v4036_v19 = vshrl.u32 %v3655_v9, 16  ;;  %v4039_v17 = vshll.u32 %v3655_v9, 16  ;;  %4437 = vmatmul.mubr.bf16.gmra.mxu1 %v4010_v7  ;;  %vm10173_vm5 = vmmov %vm10163_vm3 }
 0x276   : > { %v3538_v49 = vsel %vm10160_vm8, %v3503_v30, %v2971_v15  ;;  %vm10174_vm10 = vmmov %vm10166_vm0 }
 0x277   : > { %v4053_v26 = vshrl.u32 %v3538_v49, 16  ;;  %v4056_v36 = vshll.u32 %v3538_v49, 16  ;;  %v4038_v60 = vrot.slane %v4036_v19, 3  ;;  %v4041_v3 = vrot.slane %v4039_v17, 4  ;;  %vm10175_vm8 = vmmov %vm10163_vm3 }
 0x278   : > { %vm10176_vm12 = vmmov %vm10162_vm1 }
 0x279   : > { %v3254_v51 = vpop.permute.xlu0 %3253  ;;  %v4055_v40 = vrot.slane %v4053_v26, 3  ;;  %v4058_v45 = vrot.slane %v4056_v36, 4  ;;  %v4042_v4 = vor.u32 %v4041_v3, %v4038_v60  ;;  %vm10177_vm1 = vmmov %vm10166_vm0 }
 0x27a   : > { %v3625_v18 = vsel %vm10167_vm2, %v3590_v10, %v3254_v51  ;;  %vm10182_vm0 = vmmov %vm10172_vm4 }
 0x27b   : > { %v2856_v54 = vpop.permute.xlu1 %2855  ;;  %v4059_v33 = vor.u32 %v4058_v45, %v4055_v40  ;;  %v4043_v34 = vsel %vm10163_vm3, %v4017_v63, %v4042_v4  ;;  %vm10178_vm3 = vmmov %vm10168_vm7  ;;  %v5912_v45 = vpop.f32.mrf.mxu0 }
 0x27c   : > { %4444 = vmatprep.mubr.bf16.mxu1 %v4043_v34 }
 0x27d   : > { %v3300_v57 = vpop.permute.xlu0 %3299  ;;  %v4060_v38 = vsel %vm10165_vm13, %v4034_v58, %v4059_v33  ;;  %4445 = vmatmul.mubr.bf16.gmra.mxu1 %v4035_v22  ;;  %vm10181_vm13 = vmmov %vm10172_vm4 }
 0x27e   : > { %v3657_v0 = vsel %vm10164_vm9, %v3623_v27, %v3300_v57  ;;  %vm10180_vm9 = vmmov %vm10178_vm3 }
 0x27f   : > { %v2973_v24 = vpop.permute.xlu1 %2972  ;;  %v4061_v53 = vshrl.u32 %v3657_v0, 16  ;;  %v4064_v16 = vshll.u32 %v3657_v0, 16 }
 0x281   : > { %v4063_v11 = vrot.slane %v4061_v53, 3  ;;  %v4066_v6 = vrot.slane %v4064_v16, 4  ;;  %v3302_v42 = vpop.permute.xlu0 %3301 }
 0x282   : > { %v3659_v59 = vsel %vm10168_vm7, %v3625_v18, %v3302_v42  ;;  %vm10184_vm7 = vmmov %vm10177_vm1 }
 0x283   : > { %v2705_v48 = vpop.permute.xlu1 %2704  ;;  %v4067_v5 = vor.u32 %v4066_v6, %v4063_v11  ;;  %v4086_v2 = vshrl.u32 %v3659_v59, 16  ;;  %v4089_v8 = vshll.u32 %v3659_v59, 16 }
 0x284   : > { %v3469_v62 = vsel %vm10169_vm11, %v8932_v50, %v2705_v48  ;;  %v1806_v50 = vsel %vm1773_vm6, %v6143_v37, 0  ;;  %vm10179_vm6 = vmmov %vm10167_vm2 }
 0x285   : > { %v3505_v32 = vsel %vm10170_vm15, %v3469_v62, %v2856_v54  ;;  %v4088_v28 = vrot.slane %v4086_v2, 3  ;;  %v4091_v63 = vrot.slane %v4089_v8, 4  ;;  %v3139_v23 = vpop.permute.xlu0 %3138  ;;  %v4068_v13 = vsel %vm10172_vm4, %v4042_v4, %v4067_v5  ;;  %v4511_v4 = vpop.f32.mrf.mxu0  ;;  %vm10183_vm2 = vmmov %vm10177_vm1 }
 0x286   : > { %v3540_v20 = vsel %vm10171_vm14, %v3505_v32, %v2973_v24  ;;  %4452 = vmatprep.mubr.bf16.mxu1 %v4068_v13  ;;  %v5330_v61 = vcombine.low %v1806_v50, %v1806_v50  ;;  %v3593_v31 = vsel %vm10174_vm10, %v8841_v47, %v3139_v23  ;;  %vm10185_vm11 = vmmov %vm10177_vm1 }
 0x287   : > { %v4078_v1 = vshrl.u32 %v3540_v20, 16  ;;  %v4081_v44 = vshll.u32 %v3540_v20, 16  ;;  %v2707_v39 = vpop.permute.xlu1 %2706  ;;  %v4092_v52 = vor.u32 %v4091_v63, %v4088_v28  ;;  %4453 = vmatmul.mubr.bf16.gmra.mxu1 %v4060_v38  ;;  %v5913_v0 = vpop.f32.mrf.mxu0  ;;  %vm10186_vm15 = vmmov %vm10177_vm1 }
 0x288   : > { %v3472_v56 = vsel %vm10177_vm1, %v5330_v61, %v2707_v39  ;;  %vm10187_vm14 = vmmov %vm10177_vm1 }
 0x289   : > { %v4080_v55 = vrot.slane %v4078_v1, 3  ;;  %v4083_v14 = vrot.slane %v4081_v44, 4  ;;  %v3256_v43 = vpop.permute.xlu0 %3255  ;;  %v4093_v25 = vsel %vm10173_vm5, %v4067_v5, %v4092_v52  ;;  %v4514_v18 = vpop.f32.mrf.mxu0  ;;  %vm10188_vm4 = vmmov %vm10177_vm1 }
 0x28a   : > { %4460 = vmatprep.mubr.bf16.mxu1 %v4093_v25  ;;  %v3627_v41 = vsel %vm10176_vm12, %v3593_v31, %v3256_v43  ;;  %vm10189_vm5 = vmmov %vm10177_vm1 }
 0x28b   : > { %v2858_v29 = vpop.permute.xlu1 %2857  ;;  %v4084_v58 = vor.u32 %v4083_v14, %v4080_v55  ;;  %v5916_v44 = vpop.f32.mrf.mxu0  ;;  %vm10190_vm10 = vmmov %vm10177_vm1 }
 0x28c   : > { %v3507_v21 = vsel %vm10179_vm6, %v3472_v56, %v2858_v29  ;;  %vm10192_vm12 = vmmov %vm10177_vm1 }
 0x28d   : > { %v4085_v22 = vsel %vm10175_vm8, %v4059_v33, %v4084_v58  ;;  %v3304_v12 = vpop.permute.xlu0 %3303  ;;  %vm10191_vm8 = vmmov %vm10177_vm1 }
 0x28e   : > { %v3661_v46 = vsel %vm10178_vm3, %v3627_v41, %v3304_v12  ;;  %vm10193_vm3 = vmmov %vm10177_vm1 }
 0x28f   : > { %v2975_v9 = vpop.permute.xlu1 %2974  ;;  %v4111_v30 = vshrl.u32 %v3661_v46, 16  ;;  %v4114_v7 = vshll.u32 %v3661_v46, 16  ;;  %4461 = vmatmul.mubr.bf16.gmra.mxu1 %v4085_v22  ;;  %vm10194_vm6 = vmmov %vm10177_vm1 }
 0x290   : > { %v3542_v15 = vsel %vm10180_vm9, %v3507_v21, %v2975_v9  ;;  %vm10195_vm9 = vmmov %vm10177_vm1 }
 0x291   : > { %v4103_v19 = vshrl.u32 %v3542_v15, 16  ;;  %v4106_v17 = vshll.u32 %v3542_v15, 16  ;;  %v4113_v47 = vrot.slane %v4111_v30, 3  ;;  %v4116_v49 = vrot.slane %v4114_v7, 4 }
 0x293   : > { %v4105_v26 = vrot.slane %v4103_v19, 3  ;;  %v4108_v36 = vrot.slane %v4106_v17, 4  ;;  %v4117_v60 = vor.u32 %v4116_v49, %v4113_v47 }
 0x295   : > { %v4109_v3 = vor.u32 %v4108_v36, %v4105_v26  ;;  %v4118_v51 = vsel %vm10181_vm13, %v4092_v52, %v4117_v60  ;;  %v4527_v52 = vpop.f32.mrf.mxu0  ;;  %vm10196_vm13 = vmmov %vm10177_vm1 }
 0x296   : > { %4468 = vmatprep.mubr.bf16.mxu1 %v4118_v51 }
 0x297   : > { %v4110_v40 = vsel %vm10182_vm0, %v4084_v58, %v4109_v3  ;;  %v5917_v43 = vpop.f32.mrf.mxu0  ;;  %vm10197_vm0 = vmmov %vm10177_vm1 }
 0x298   : > { %4469 = vmatmul.mubr.bf16.gmra.mxu1 %v4110_v40 }
 0x299   : > { %v4530_v22 = vpop.f32.mrf.mxu0 }
 0x29b   : > { %v5920_v3 = vpop.f32.mrf.mxu0 }
 0x29d   : > { %v4543_v40 = vpop.f32.mrf.mxu0 }
 0x2c6   : > { %v5726_v54 = vpop.f32.mrf.mxu1 }
 0x2c8   : > { %v5727_v33 = vpop.f32.mrf.mxu1 }
 0x2c9   : > { %v5728_v27 = vadd.f32 %v5727_v33, %v5726_v54 }
 0x2ca   : > { %v5729_v57 = vpop.f32.mrf.mxu1 }
 0x2cb   : > { %v4351_v34 = vadd.f32 %v5728_v27, %v9174_v35  ;;  %v5921_v27 = vpop.f32.mrf.mxu0 }
 0x2cc   : > { %v5730_v24 = vpop.f32.mrf.mxu1 }
 0x2cd   : > { %v5731_v38 = vadd.f32 %v5730_v24, %v5729_v57  ;;  %v4512_v16 = vadd.f32 %v4511_v4, %v4351_v34 }
 0x2ce   : > { %v5732_v53 = vpop.f32.mrf.mxu1 }
 0x2cf   : > { %v4354_v10 = vadd.f32 %v5731_v38, %v9174_v35  ;;  %v4638_v48 = vmax.f32 %v4512_v16, 0.0 }
 0x2d0   : > { %v5733_v11 = vpop.f32.mrf.mxu1 }
 0x2d1   : > { %v4515_v6 = vadd.f32 %v4514_v18, %v4354_v10  ;;  %v5734_v42 = vadd.f32 %v5733_v11, %v5732_v53  ;;  %v4546_v53 = vpop.f32.mrf.mxu0 }
 0x2d2   : > { %v5735_v59 = vpop.f32.mrf.mxu1 }
 0x2d3   : > { %v4639_v5 = vmax.f32 %v4515_v6, 0.0  ;;  %v4359_v2 = vadd.f32 %v5734_v42, %v9174_v35 }
 0x2d4   : > { %v5736_v8 = vpop.f32.mrf.mxu1 }
 0x2d5   : > { %v4670_v62 = vpack.c.bf16 %v4639_v5, %v4638_v48  ;;  %v5737_v32 = vadd.f32 %v5736_v8, %v5735_v59  ;;  %v4520_v28 = vadd.f32 %v5912_v45, %v4359_v2  ;;  %v5924_v48 = vpop.f32.mrf.mxu0 }
 0x2d7   : > { %v4362_v63 = vadd.f32 %v5737_v32, %v9174_v35  ;;  %5946 = vmatprep.mubr.msk.bf16.mxu0 %vm10183_vm2, %v4670_v62  ;;  %v4640_v20 = vmax.f32 %v4520_v28, 0.0 }
 0x2d9   : > { %v4523_v23 = vadd.f32 %v5913_v0, %v4362_v63  ;;  %v4559_v63 = vpop.f32.mrf.mxu0 }
 0x2db   : > { %v4641_v13 = vmax.f32 %v4523_v23, 0.0 }
 0x2dd   : > { %v4671_v1 = vpack.c.bf16 %v4641_v13, %v4640_v20  ;;  %v5738_v39 = vpop.f32.mrf.mxu1 }
 0x2df   : > { %5947 = vmatmul.mubr.msk.bf16.vlgmr.msra.gmra.mxu0 %vm10184_vm7, %v4671_v1  ;;  %v5739_v55 = vpop.f32.mrf.mxu1 }
 0x2e0   : > { %v5740_v14 = vadd.f32 %v5739_v55, %v5738_v39  ;;  %v5925_v55 = vpop.f32.mrf.mxu0 }
 0x2e1   : > { %v5741_v37 = vpop.f32.mrf.mxu1 }
 0x2e2   : > { %v4367_v50 = vadd.f32 %v5740_v14, %v9174_v35 }
 0x2e3   : > { %v5742_v25 = vpop.f32.mrf.mxu1 }
 0x2e4   : > { %v5743_v29 = vadd.f32 %v5742_v25, %v5741_v37  ;;  %v4528_v61 = vadd.f32 %v4527_v52, %v4367_v50 }
 0x2e5   : > { %v5744_v58 = vpop.f32.mrf.mxu1 }
 0x2e6   : > { %v4370_v31 = vadd.f32 %v5743_v29, %v9174_v35  ;;  %v4642_v21 = vmax.f32 %v4528_v61, 0.0 }
 0x2e7   : > { %v5745_v41 = vpop.f32.mrf.mxu1 }
 0x2e8   : > { %v4531_v56 = vadd.f32 %v4530_v22, %v4370_v31  ;;  %v5746_v12 = vadd.f32 %v5745_v41, %v5744_v58  ;;  %v4562_v58 = vpop.f32.mrf.mxu0 }
 0x2e9   : > { %v5747_v46 = vpop.f32.mrf.mxu1 }
 0x2ea   : > { %v4643_v9 = vmax.f32 %v4531_v56, 0.0  ;;  %v4375_v30 = vadd.f32 %v5746_v12, %v9174_v35 }
 0x2eb   : > { %v5748_v7 = vpop.f32.mrf.mxu1 }
 0x2ec   : > { %v4672_v15 = vpack.c.bf16 %v4643_v9, %v4642_v21  ;;  %v5749_v19 = vadd.f32 %v5748_v7, %v5747_v46  ;;  %v4536_v17 = vadd.f32 %v5916_v44, %v4375_v30  ;;  %v5928_v21 = vpop.f32.mrf.mxu0 }
 0x2ee   : > { %v4378_v47 = vadd.f32 %v5749_v19, %v9174_v35  ;;  %5950 = vmatprep.mubr.msk.bf16.mxu0 %vm10185_vm11, %v4672_v15  ;;  %v4644_v26 = vmax.f32 %v4536_v17, 0.0 }
 0x2f0   : > { %v4539_v49 = vadd.f32 %v5917_v43, %v4378_v47  ;;  %v4575_v47 = vpop.f32.mrf.mxu0 }
 0x2f2   : > { %v4645_v36 = vmax.f32 %v4539_v49, 0.0 }
 0x2f4   : > { %v4673_v60 = vpack.c.bf16 %v4645_v36, %v4644_v26 }
 0x2f6   : > { %5951 = vmatmul.mubr.msk.bf16.gmra.mxu0 %vm10186_vm15, %v4673_v60 }
 0x2fd   : > { %v5750_v51 = vpop.f32.mrf.mxu1 }
 0x2ff   : > { %v5751_v45 = vpop.f32.mrf.mxu1 }
 0x300   : > { %v5752_v54 = vadd.f32 %v5751_v45, %v5750_v51  ;;  %v5929_v45 = vpop.f32.mrf.mxu0 }
 0x301   : > { %v5753_v4 = vpop.f32.mrf.mxu1 }
 0x302   : > { %v4383_v33 = vadd.f32 %v5752_v54, %v9174_v35 }
 0x303   : > { %v5754_v57 = vpop.f32.mrf.mxu1 }
 0x304   : > { %v5755_v34 = vadd.f32 %v5754_v57, %v5753_v4  ;;  %v4544_v24 = vadd.f32 %v4543_v40, %v4383_v33 }
 0x305   : > { %v5756_v0 = vpop.f32.mrf.mxu1 }
 0x306   : > { %v4386_v38 = vadd.f32 %v5755_v34, %v9174_v35  ;;  %v4646_v6 = vmax.f32 %v4544_v24, 0.0 }
 0x307   : > { %v5757_v16 = vpop.f32.mrf.mxu1 }
 0x308   : > { %v4547_v10 = vadd.f32 %v4546_v53, %v4386_v38  ;;  %v5758_v18 = vadd.f32 %v5757_v16, %v5756_v0  ;;  %v4578_v0 = vpop.f32.mrf.mxu0 }
 0x309   : > { %v5759_v11 = vpop.f32.mrf.mxu1 }
 0x30a   : > { %v4647_v42 = vmax.f32 %v4547_v10, 0.0  ;;  %v4391_v59 = vadd.f32 %v5758_v18, %v9174_v35 }
 0x30b   : > { %v5760_v5 = vpop.f32.mrf.mxu1 }
 0x30c   : > { %v4674_v2 = vpack.c.bf16 %v4647_v42, %v4646_v6  ;;  %v5761_v8 = vadd.f32 %v5760_v5, %v5759_v11  ;;  %v4552_v32 = vadd.f32 %v5920_v3, %v4391_v59  ;;  %v5932_v6 = vpop.f32.mrf.mxu0 }
 0x30d   : > { %v5762_v62 = vpop.f32.mrf.mxu1 }
 0x30e   : > { %v4394_v28 = vadd.f32 %v5761_v8, %v9174_v35  ;;  %5954 = vmatprep.mubr.msk.bf16.mxu0 %vm10187_vm14, %v4674_v2  ;;  %v4648_v44 = vmax.f32 %v4552_v32, 0.0 }
 0x30f   : > { %v5763_v23 = vpop.f32.mrf.mxu1 }
 0x310   : > { %v4555_v20 = vadd.f32 %v5921_v27, %v4394_v28  ;;  %v5764_v13 = vadd.f32 %v5763_v23, %v5762_v62  ;;  %v4591_v62 = vpop.f32.mrf.mxu0 }
 0x311   : > { %v5765_v1 = vpop.f32.mrf.mxu1 }
 0x312   : > { %v4649_v39 = vmax.f32 %v4555_v20, 0.0  ;;  %v4399_v52 = vadd.f32 %v5764_v13, %v9174_v35 }
 0x313   : > { %v5766_v14 = vpop.f32.mrf.mxu1 }
 0x314   : > { %v4675_v37 = vpack.c.bf16 %v4649_v39, %v4648_v44  ;;  %v5767_v50 = vadd.f32 %v5766_v14, %v5765_v1  ;;  %v4560_v25 = vadd.f32 %v4559_v63, %v4399_v52  ;;  %v5933_v44 = vpop.f32.mrf.mxu0 }
 0x315   : > { %v5768_v43 = vpop.f32.mrf.mxu1 }
 0x316   : > { %v4402_v29 = vadd.f32 %v5767_v50, %v9174_v35  ;;  %5955 = vmatmul.mubr.msk.bf16.gmra.mxu0 %vm10188_vm4, %v4675_v37  ;;  %v4650_v56 = vmax.f32 %v4560_v25, 0.0 }
 0x317   : > { %v5769_v61 = vpop.f32.mrf.mxu1 }
 0x318   : > { %v4563_v31 = vadd.f32 %v4562_v58, %v4402_v29  ;;  %v5770_v22 = vadd.f32 %v5769_v61, %v5768_v43  ;;  %v4594_v43 = vpop.f32.mrf.mxu0 }
 0x319   : > { %v5771_v41 = vpop.f32.mrf.mxu1 }
 0x31a   : > { %v4651_v12 = vmax.f32 %v4563_v31, 0.0  ;;  %v4407_v46 = vadd.f32 %v5770_v22, %v9174_v35 }
 0x31b   : > { %v5772_v9 = vpop.f32.mrf.mxu1 }
 0x31c   : > { %v4676_v30 = vpack.c.bf16 %v4651_v12, %v4650_v56  ;;  %v5773_v7 = vadd.f32 %v5772_v9, %v5771_v41  ;;  %v4568_v19 = vadd.f32 %v5924_v48, %v4407_v46  ;;  %v5936_v56 = vpop.f32.mrf.mxu0 }
 0x31d   : > { %v5774_v15 = vpop.f32.mrf.mxu1 }
 0x31e   : > { %v4410_v17 = vadd.f32 %v5773_v7, %v9174_v35  ;;  %5958 = vmatprep.mubr.msk.bf16.mxu0 %vm10189_vm5, %v4676_v30  ;;  %v4652_v3 = vmax.f32 %v4568_v19, 0.0 }
 0x31f   : > { %v5775_v49 = vpop.f32.mrf.mxu1 }
 0x320   : > { %v4571_v26 = vadd.f32 %v5925_v55, %v4410_v17  ;;  %v5776_v36 = vadd.f32 %v5775_v49, %v5774_v15  ;;  %v4607_v15 = vpop.f32.mrf.mxu0 }
 0x321   : > { %v5777_v60 = vpop.f32.mrf.mxu1 }
 0x322   : > { %v4653_v51 = vmax.f32 %v4571_v26, 0.0  ;;  %v4415_v40 = vadd.f32 %v5776_v36, %v9174_v35 }
 0x323   : > { %v5778_v54 = vpop.f32.mrf.mxu1 }
 0x324   : > { %v4677_v4 = vpack.c.bf16 %v4653_v51, %v4652_v3  ;;  %v5779_v33 = vadd.f32 %v5778_v54, %v5777_v60  ;;  %v4576_v57 = vadd.f32 %v4575_v47, %v4415_v40  ;;  %v5937_v3 = vpop.f32.mrf.mxu0 }
 0x325   : > { %v5780_v27 = vpop.f32.mrf.mxu1 }
 0x326   : > { %v4418_v34 = vadd.f32 %v5779_v33, %v9174_v35  ;;  %5959 = vmatmul.mubr.msk.bf16.gmra.mxu0 %vm10190_vm10, %v4677_v4  ;;  %v4654_v10 = vmax.f32 %v4576_v57, 0.0 }
 0x327   : > { %v5781_v24 = vpop.f32.mrf.mxu1 }
 0x328   : > { %v4579_v38 = vadd.f32 %v4578_v0, %v4418_v34  ;;  %v5782_v53 = vadd.f32 %v5781_v24, %v5780_v27  ;;  %v4610_v27 = vpop.f32.mrf.mxu0 }
 0x329   : > { %v5783_v16 = vpop.f32.mrf.mxu1 }
 0x32a   : > { %v4655_v18 = vmax.f32 %v4579_v38, 0.0  ;;  %v4423_v11 = vadd.f32 %v5782_v53, %v9174_v35 }
 0x32b   : > { %v5784_v42 = vpop.f32.mrf.mxu1 }
 0x32c   : > { %v4678_v59 = vpack.c.bf16 %v4655_v18, %v4654_v10  ;;  %v5785_v48 = vadd.f32 %v5784_v42, %v5783_v16  ;;  %v4584_v2 = vadd.f32 %v5928_v21, %v4423_v11  ;;  %v5940_v10 = vpop.f32.mrf.mxu0 }
 0x32d   : > { %v5786_v5 = vpop.f32.mrf.mxu1 }
 0x32e   : > { %v4426_v8 = vadd.f32 %v5785_v48, %v9174_v35  ;;  %5962 = vmatprep.mubr.msk.bf16.mxu0 %vm10191_vm8, %v4678_v59  ;;  %v4656_v20 = vmax.f32 %v4584_v2, 0.0 }
 0x32f   : > { %v5787_v32 = vpop.f32.mrf.mxu1 }
 0x330   : > { %v4587_v28 = vadd.f32 %v5929_v45, %v4426_v8  ;;  %v5788_v63 = vadd.f32 %v5787_v32, %v5786_v5  ;;  %v4623_v5 = vpop.f32.mrf.mxu0 }
 0x331   : > { %v5789_v23 = vpop.f32.mrf.mxu1 }
 0x332   : > { %v4657_v13 = vmax.f32 %v4587_v28, 0.0  ;;  %v4431_v1 = vadd.f32 %v5788_v63, %v9174_v35 }
 0x333   : > { %v5790_v39 = vpop.f32.mrf.mxu1 }
 0x334   : > { %v4679_v52 = vpack.c.bf16 %v4657_v13, %v4656_v20  ;;  %v5791_v55 = vadd.f32 %v5790_v39, %v5789_v23  ;;  %v4592_v37 = vadd.f32 %v4591_v62, %v4431_v1  ;;  %v5941_v20 = vpop.f32.mrf.mxu0 }
 0x335   : > { %v5792_v14 = vpop.f32.mrf.mxu1 }
 0x336   : > { %v4434_v50 = vadd.f32 %v5791_v55, %v9174_v35  ;;  %5963 = vmatmul.mubr.msk.bf16.gmra.mxu0 %vm10192_vm12, %v4679_v52  ;;  %v4658_v31 = vmax.f32 %v4592_v37, 0.0 }
 0x337   : > { %v5793_v25 = vpop.f32.mrf.mxu1 }
 0x338   : > { %v4595_v29 = vadd.f32 %v4594_v43, %v4434_v50  ;;  %v5794_v58 = vadd.f32 %v5793_v25, %v5792_v14  ;;  %v4626_v14 = vpop.f32.mrf.mxu0 }
 0x339   : > { %v5795_v61 = vpop.f32.mrf.mxu1 }
 0x33a   : > { %v4659_v22 = vmax.f32 %v4595_v29, 0.0  ;;  %v4439_v41 = vadd.f32 %v5794_v58, %v9174_v35 }
 0x33b   : > { %v5796_v12 = vpop.f32.mrf.mxu1 }
 0x33c   : > { %v4680_v46 = vpack.c.bf16 %v4659_v22, %v4658_v31  ;;  %v5797_v21 = vadd.f32 %v5796_v12, %v5795_v61  ;;  %v4600_v30 = vadd.f32 %v5932_v6, %v4439_v41 }
 0x33d   : > { %v5798_v9 = vpop.f32.mrf.mxu1 }
 0x33e   : > { %v4442_v7 = vadd.f32 %v5797_v21, %v9174_v35  ;;  %5966 = vmatprep.mubr.msk.bf16.mxu0 %vm10177_vm1, %v4680_v46  ;;  %v4660_v26 = vmax.f32 %v4600_v30, 0.0 }
 0x33f   : > { %v5799_v19 = vpop.f32.mrf.mxu1 }
 0x340   : > { %v4603_v17 = vadd.f32 %v5933_v44, %v4442_v7  ;;  %v5800_v47 = vadd.f32 %v5799_v19, %v5798_v9  ;;  %v9227_v7 = vld [vmem:[%s9357_s6] ss:$0 sm:$0xff] }
 0x341   : > { %v5801_v49 = vpop.f32.mrf.mxu1 }
 0x342   : > { %v4661_v36 = vmax.f32 %v4603_v17, 0.0  ;;  %v4447_v60 = vadd.f32 %v5800_v47, %v9174_v35  ;;  %v6144_v17 = vld [vmem:[%s6331_s23 + $0x8] sm:$0xff]  }
 0x343   : > { %v5802_v51 = vpop.f32.mrf.mxu1 }
 0x344   : > { %v4681_v40 = vpack.c.bf16 %v4661_v36, %v4660_v26  ;;  %v5803_v45 = vadd.f32 %v5802_v51, %v5801_v49  ;;  %v4608_v4 = vadd.f32 %v4607_v15, %v4447_v60  ;;  %v6145_v49 = vld [vmem:[%s6331_s23] sm:$0xff]   ;;  %v4921_v60 = vunpack.c.h.bf16 %v6144_v17 }
 0x345   : > { %v4918_v26 = vunpack.c.l.bf16 %v6145_v49  ;;  %v4919_v51 = vunpack.c.h.bf16 %v6145_v49 }
 0x346   : > { %v4450_v33 = vadd.f32 %v5803_v45, %v9174_v35  ;;  %5967 = vmatmul.mubr.msk.bf16.gmra.mxu0 %vm10193_vm3, %v4681_v40  ;;  %v4662_v38 = vmax.f32 %v4608_v4, 0.0 }
 0x347   : > { %v5804_v54 = vpop.f32.mrf.mxu1 }
 0x348   : > { %v4611_v34 = vadd.f32 %v4610_v27, %v4450_v33 }
 0x349   : > { %v5805_v57 = vpop.f32.mrf.mxu1 }
 0x34a   : > { %v5806_v0 = vadd.f32 %v5805_v57, %v5804_v54  ;;  %v4663_v53 = vmax.f32 %v4611_v34, 0.0 }
 0x34b   : > { %v5807_v24 = vpop.f32.mrf.mxu1 }
 0x34c   : > { %v4455_v16 = vadd.f32 %v5806_v0, %v9174_v35  ;;  %v4682_v11 = vpack.c.bf16 %v4663_v53, %v4662_v38 }
 0x34d   : > { %v5808_v18 = vpop.f32.mrf.mxu1 }
 0x34e   : > { %v5809_v6 = vadd.f32 %v5808_v18, %v5807_v24  ;;  %v4616_v59 = vadd.f32 %v5936_v56, %v4455_v16  ;;  %5970 = vmatprep.mubr.msk.bf16.mxu0 %vm10194_vm6, %v4682_v11  ;;  %v6146_v11 = vld [vmem:[%s6331_s23 + $0x18] sm:$0xff]  }
 0x34f   : > { %v5810_v42 = vpop.f32.mrf.mxu1 }
 0x350   : > { %v4458_v48 = vadd.f32 %v5809_v6, %v9174_v35  ;;  %v4664_v28 = vmax.f32 %v4616_v59, 0.0  ;;  %v4924_v6 = vunpack.c.l.bf16 %v6146_v11 }
 0x351   : > { %v5811_v2 = vpop.f32.mrf.mxu1 }
 0x352   : > { %v4619_v8 = vadd.f32 %v5937_v3, %v4458_v48  ;;  %v5812_v62 = vadd.f32 %v5811_v2, %v5810_v42  ;;  %v6147_v48 = vld [vmem:[%s6331_s23 + $0x10] sm:$0xff]   ;;  %v4925_v2 = vunpack.c.h.bf16 %v6146_v11 }
 0x353   : > { %v5813_v32 = vpop.f32.mrf.mxu1 }
 0x354   : > { %v4665_v63 = vmax.f32 %v4619_v8, 0.0  ;;  %v4463_v23 = vadd.f32 %v5812_v62, %v9174_v35 }
 0x355   : > { %v5814_v13 = vpop.f32.mrf.mxu1 }
 0x356   : > { %v4683_v1 = vpack.c.bf16 %v4665_v63, %v4664_v28  ;;  %v5815_v44 = vadd.f32 %v5814_v13, %v5813_v32  ;;  %v4624_v52 = vadd.f32 %v4623_v5, %v4463_v23  ;;  %v4922_v5 = vunpack.c.l.bf16 %v6147_v48 }
 0x357   : > { %v4923_v28 = vunpack.c.h.bf16 %v6147_v48 }
 0x358   : > { %v5816_v39 = vpop.f32.mrf.mxu1  ;;  %v4466_v55 = vadd.f32 %v5815_v44, %v9174_v35  ;;  %5971 = vmatmul.mubr.msk.bf16.gmra.mxu0 %vm10195_vm9, %v4683_v1  ;;  %v4666_v29 = vmax.f32 %v4624_v52, 0.0 }
 0x35a   : > { %v5817_v37 = vpop.f32.mrf.mxu1  ;;  %v4627_v50 = vadd.f32 %v4626_v14, %v4466_v55 }
 0x35b   : > { %v5818_v43 = vadd.f32 %v5817_v37, %v5816_v39 }
 0x35c   : > { %v5819_v25 = vpop.f32.mrf.mxu1  ;;  %v4667_v58 = vmax.f32 %v4627_v50, 0.0 }
 0x35d   : > { %v4471_v61 = vadd.f32 %v5818_v43, %v9174_v35 }
 0x35e   : > { %v5820_v31 = vpop.f32.mrf.mxu1  ;;  %v4684_v22 = vpack.c.bf16 %v4667_v58, %v4666_v29 }
 0x35f   : > { %v5821_v41 = vadd.f32 %v5820_v31, %v5819_v25  ;;  %v4632_v56 = vadd.f32 %v5940_v10, %v4471_v61  ;;  %v6148_v25 = vld [vmem:[%s6331_s23 + $0x28] sm:$0xff]   ;;  %v6149_v31 = vld [vmem:[%s6331_s23 + $0x20] sm:$0xff]  }
 0x360   : > { %5974 = vmatprep.mubr.msk.bf16.mxu0 %vm10196_vm13, %v4684_v22  ;;  %v4928_v29 = vunpack.c.l.bf16 %v6148_v25  ;;  %v4926_v22 = vunpack.c.l.bf16 %v6149_v31 }
 0x361   : > { %v4474_v12 = vadd.f32 %v5821_v41, %v9174_v35  ;;  %v4668_v21 = vmax.f32 %v4632_v56, 0.0  ;;  %v4920_v35 = vunpack.c.l.bf16 %v6144_v17  ;;  %v4929_v41 = vunpack.c.h.bf16 %v6148_v25 }
 0x363   : > { %v4635_v46 = vadd.f32 %v5941_v20, %v4474_v12 }
 0x365   : > { %v4669_v9 = vmax.f32 %v4635_v46, 0.0 }
 0x367   : > { %v4685_v30 = vpack.c.bf16 %v4669_v9, %v4668_v21  ;;  %v4927_v21 = vunpack.c.h.bf16 %v6149_v31 }
 0x369   : > { %5975 = vmatmul.mubr.msk.bf16.gmra.mxu0 %vm10197_vm0, %v4685_v30 }
 0x39f   : > { %v5948_v15 = vpop.f32.mrf.mxu0 }
 0x3a0   : > { %v4800_v19 = vadd.f32 %v5948_v15, %v9227_v7 }
 0x3a1   : > { %v4791_v47 = vpop.f32.mrf.mxu0 }
 0x3a2   : > { %v4792_v36 = vadd.f32 %v9227_v7, %v4791_v47  ;;  %v4952_v40 = vadd.f32 %v4920_v35, %v4800_v19 }
 0x3a3   : > { %v5949_v3 = vpop.f32.mrf.mxu0 }
 0x3a4   : > { %v4803_v45 = vadd.f32 %v5949_v3, %v9227_v7  ;;  %v4950_v4 = vadd.f32 %v4918_v26, %v4792_v36  ;;  %v4984_v57 = vmax.f32 %v4952_v40, 0.0  ;;  %v6150_v40 = vld [vmem:[%s6331_s23 + $0x38] sm:$0xff]  }
 0x3a5   : > { %v4794_v54 = vpop.f32.mrf.mxu0 }
 0x3a6   : > { %v4953_v33 = vadd.f32 %v4921_v60, %v4803_v45  ;;  %v4795_v27 = vadd.f32 %v9227_v7, %v4794_v54  ;;  %v4982_v24 = vmax.f32 %v4950_v4, 0.0  ;;  %v4932_v45 = vunpack.c.l.bf16 %v6150_v40 }
 0x3a8   : > { %v4985_v34 = vmax.f32 %v4953_v33, 0.0  ;;  %v4951_v0 = vadd.f32 %v4919_v51, %v4795_v27  ;;  %v6151_v33 = vld [vmem:[%s6331_s23 + $0x30] sm:$0xff]  }
 0x3a9   : > { %v4930_v27 = vunpack.c.l.bf16 %v6151_v33 }
 0x3aa   : > { %v5599_v38 = vpack.c.bf16 %v4985_v34, %v4984_v57  ;;  %v4983_v53 = vmax.f32 %v4951_v0, 0.0  ;;  %v4933_v57 = vunpack.c.h.bf16 %v6150_v40 }
 0x3ac   : > { %5671 = vst [vmem:[%s9238_s18 + $0x8] sm:$0xff] %v5599_v38   ;;  %v5594_v16 = vpack.c.bf16 %v4983_v53, %v4982_v24  ;;  %v4931_v38 = vunpack.c.h.bf16 %v6151_v33 }
 0x3ae   : > { %5595 = vst [vmem:[%s9238_s18] sm:$0xff] %v5594_v16  }
 0x3b6   : > { %v5952_v10 = vpop.f32.mrf.mxu0 }
 0x3b7   : > { %v4816_v18 = vadd.f32 %v5952_v10, %v9227_v7 }
 0x3b8   : > { %v4807_v42 = vpop.f32.mrf.mxu0 }
 0x3b9   : > { %v4808_v59 = vadd.f32 %v9227_v7, %v4807_v42  ;;  %v4956_v62 = vadd.f32 %v4924_v6, %v4816_v18 }
 0x3ba   : > { %v5953_v8 = vpop.f32.mrf.mxu0 }
 0x3bb   : > { %v4819_v32 = vadd.f32 %v5953_v8, %v9227_v7  ;;  %v4954_v23 = vadd.f32 %v4922_v5, %v4808_v59  ;;  %v4988_v1 = vmax.f32 %v4956_v62, 0.0 }
 0x3bc   : > { %v4810_v63 = vpop.f32.mrf.mxu0 }
 0x3bd   : > { %v4957_v20 = vadd.f32 %v4925_v2, %v4819_v32  ;;  %v4811_v13 = vadd.f32 %v9227_v7, %v4810_v63  ;;  %v4986_v52 = vmax.f32 %v4954_v23, 0.0  ;;  %v6152_v32 = vld [vmem:[%s6331_s23 + $0x48] sm:$0xff]   ;;  %v6153_v23 = vld [vmem:[%s6331_s23 + $0x40] sm:$0xff]  }
 0x3bf   : > { %v4989_v44 = vmax.f32 %v4957_v20, 0.0  ;;  %v4955_v39 = vadd.f32 %v4923_v28, %v4811_v13  ;;  %v4936_v28 = vunpack.c.l.bf16 %v6152_v32  ;;  %v4934_v20 = vunpack.c.l.bf16 %v6153_v23 }
 0x3c1   : > { %v5609_v55 = vpack.c.bf16 %v4989_v44, %v4988_v1  ;;  %v4987_v14 = vmax.f32 %v4955_v39, 0.0  ;;  %v4937_v1 = vunpack.c.h.bf16 %v6152_v32  ;;  %v4935_v39 = vunpack.c.h.bf16 %v6153_v23 }
 0x3c3   : > { %5673 = vst [vmem:[%s9238_s18 + $0x18] sm:$0xff] %v5609_v55   ;;  %v5604_v37 = vpack.c.bf16 %v4987_v14, %v4986_v52 }
 0x3c5   : > { %5672 = vst [vmem:[%s9238_s18 + $0x10] sm:$0xff] %v5604_v37  }
 0x3d6   : > { %v5956_v50 = vpop.f32.mrf.mxu0 }
 0x3d7   : > { %v4832_v43 = vadd.f32 %v5956_v50, %v9227_v7 }
 0x3d8   : > { %v4823_v58 = vpop.f32.mrf.mxu0 }
 0x3d9   : > { %v4824_v61 = vadd.f32 %v9227_v7, %v4823_v58  ;;  %v4960_v12 = vadd.f32 %v4928_v29, %v4832_v43 }
 0x3da   : > { %v5957_v56 = vpop.f32.mrf.mxu0 }
 0x3db   : > { %v4835_v46 = vadd.f32 %v5957_v56, %v9227_v7  ;;  %v4958_v30 = vadd.f32 %v4926_v22, %v4824_v61  ;;  %v4992_v17 = vmax.f32 %v4960_v12, 0.0 }
 0x3dc   : > { %v4826_v9 = vpop.f32.mrf.mxu0 }
 0x3dd   : > { %v4961_v15 = vadd.f32 %v4929_v41, %v4835_v46  ;;  %v4827_v19 = vadd.f32 %v9227_v7, %v4826_v9  ;;  %v4990_v49 = vmax.f32 %v4958_v30, 0.0  ;;  %v6154_v46 = vld [vmem:[%s6331_s23 + $0x58] sm:$0xff]  }
 0x3df   : > { %v4993_v35 = vmax.f32 %v4961_v15, 0.0  ;;  %v4959_v47 = vadd.f32 %v4927_v21, %v4827_v19  ;;  %v4940_v21 = vunpack.c.l.bf16 %v6154_v46  ;;  %v6155_v15 = vld [vmem:[%s6331_s23 + $0x50] sm:$0xff]  }
 0x3e0   : > { %v4938_v19 = vunpack.c.l.bf16 %v6155_v15 }
 0x3e1   : > { %v5619_v26 = vpack.c.bf16 %v4993_v35, %v4992_v17  ;;  %v4991_v36 = vmax.f32 %v4959_v47, 0.0  ;;  %v4941_v17 = vunpack.c.h.bf16 %v6154_v46 }
 0x3e3   : > { %5675 = vst [vmem:[%s9238_s18 + $0x28] sm:$0xff] %v5619_v26   ;;  %v5614_v60 = vpack.c.bf16 %v4991_v36, %v4990_v49  ;;  %v4939_v26 = vunpack.c.h.bf16 %v6155_v15 }
 0x3e5   : > { %5674 = vst [vmem:[%s9238_s18 + $0x20] sm:$0xff] %v5614_v60  }
 0x3e6   : > { %v5960_v3 = vpop.f32.mrf.mxu0 }
 0x3e7   : > { %v4848_v51 = vadd.f32 %v5960_v3, %v9227_v7 }
 0x3e8   : > { %v4839_v54 = vpop.f32.mrf.mxu0 }
 0x3e9   : > { %v4840_v4 = vadd.f32 %v9227_v7, %v4839_v54  ;;  %v4964_v0 = vadd.f32 %v4932_v45, %v4848_v51 }
 0x3ea   : > { %v5961_v34 = vpop.f32.mrf.mxu0 }
 0x3eb   : > { %v4851_v24 = vadd.f32 %v5961_v34, %v9227_v7  ;;  %v4962_v16 = vadd.f32 %v4930_v27, %v4840_v4  ;;  %v4996_v11 = vmax.f32 %v4964_v0, 0.0 }
 0x3ec   : > { %v4842_v53 = vpop.f32.mrf.mxu0 }
 0x3ed   : > { %v4965_v10 = vadd.f32 %v4933_v57, %v4851_v24  ;;  %v4843_v18 = vadd.f32 %v9227_v7, %v4842_v53  ;;  %v4994_v59 = vmax.f32 %v4962_v16, 0.0  ;;  %v6156_v24 = vld [vmem:[%s6331_s23 + $0x68] sm:$0xff]  }
 0x3ef   : > { %v4997_v6 = vmax.f32 %v4965_v10, 0.0  ;;  %v4963_v42 = vadd.f32 %v4931_v38, %v4843_v18  ;;  %v4944_v38 = vunpack.c.l.bf16 %v6156_v24  ;;  %v6157_v10 = vld [vmem:[%s6331_s23 + $0x60] sm:$0xff]  }
 0x3f0   : > { %v4942_v18 = vunpack.c.l.bf16 %v6157_v10 }
 0x3f1   : > { %v5629_v48 = vpack.c.bf16 %v4997_v6, %v4996_v11  ;;  %v4995_v5 = vmax.f32 %v4963_v42, 0.0  ;;  %v4945_v11 = vunpack.c.h.bf16 %v6156_v24 }
 0x3f3   : > { %5677 = vst [vmem:[%s9238_s18 + $0x38] sm:$0xff] %v5629_v48   ;;  %v5624_v2 = vpack.c.bf16 %v4995_v5, %v4994_v59  ;;  %v4943_v48 = vunpack.c.h.bf16 %v6157_v10 }
 0x3f5   : > { %5676 = vst [vmem:[%s9238_s18 + $0x30] sm:$0xff] %v5624_v2  }
 0x3f6   : > { %v5964_v8 = vpop.f32.mrf.mxu0 }
 0x3f7   : > { %v4864_v62 = vadd.f32 %v5964_v8, %v9227_v7 }
 0x3f8   : > { %v4855_v63 = vpop.f32.mrf.mxu0 }
 0x3f9   : > { %v4856_v13 = vadd.f32 %v9227_v7, %v4855_v63  ;;  %v4968_v52 = vadd.f32 %v4936_v28, %v4864_v62 }
 0x3fa   : > { %v5965_v44 = vpop.f32.mrf.mxu0 }
 0x3fb   : > { %v4867_v55 = vadd.f32 %v5965_v44, %v9227_v7  ;;  %v4966_v37 = vadd.f32 %v4934_v20, %v4856_v13  ;;  %v5000_v25 = vmax.f32 %v4968_v52, 0.0  ;;  %v6158_v52 = vld [vmem:[%s6331_s23 + $0x78] sm:$0xff]  }
 0x3fc   : > { %v4858_v14 = vpop.f32.mrf.mxu0 }
 0x3fd   : > { %v4969_v50 = vadd.f32 %v4937_v1, %v4867_v55  ;;  %v4859_v43 = vadd.f32 %v9227_v7, %v4858_v14  ;;  %v4998_v61 = vmax.f32 %v4966_v37, 0.0  ;;  %v4948_v55 = vunpack.c.l.bf16 %v6158_v52 }
 0x3ff   : > { %v5001_v29 = vmax.f32 %v4969_v50, 0.0  ;;  %v4967_v58 = vadd.f32 %v4935_v39, %v4859_v43  ;;  %v6159_v50 = vld [vmem:[%s6331_s23 + $0x70] sm:$0xff]   ;;  %s5590_s23 = sshll.u32 %s6290_s28, 11  ;;  %s6160_s28 = scalar_lea.vmem %s9304_s19, 2048 }
 0x400   : > { %v4946_v43 = vunpack.c.l.bf16 %v6159_v50  ;;  %s9301_s22 = scalar_lea.hbm %s9358_s7, %s5590_s23  ;;  %p6161_p11 = scmp.ne.s32.totalorder %s9304_s19, %s6160_s28 }
 0x401   : > { %v5639_v31 = vpack.c.bf16 %v5001_v29, %v5000_v25  ;;  %v4999_v22 = vmax.f32 %v4967_v58, 0.0  ;;  %v4949_v25 = vunpack.c.h.bf16 %v6158_v52  ;;  %p6168_p1 = scmp.lt.s32.totalorder %s6166_s13, %s6160_s28 }
 0x402   : > { %p6162_p12 = pnand %p6161_p11, %p6307_p5 }
 0x403   : > { %5679 = vst [vmem:[%s9238_s18 + $0x48] sm:$0xff] %v5639_v31   ;;  %v5634_v41 = vpack.c.bf16 %v4999_v22, %v4998_v61  ;;  %v4947_v31 = vunpack.c.h.bf16 %v6159_v50  ;;  %p6169_p2 = por %p6168_p1, %p6167_p0 }
 0x404   : > { %p6163_p13 = pneg %p6162_p12 }
 0x405   : > { %5678 = vst [vmem:[%s9238_s18 + $0x40] sm:$0xff] %v5634_v41  }
 0x406   : > { %v5968_v56 = vpop.f32.mrf.mxu0  ;;  %p6170_p3 = pnand %p6169_p2, %p6163_p13 }
 0x407   : > { %v4880_v12 = vadd.f32 %v5968_v56, %v9227_v7 }
 0x408   : > { %v4871_v9 = vpop.f32.mrf.mxu0 }
 0x409   : > { %v4872_v30 = vadd.f32 %v9227_v7, %v4871_v9  ;;  %v4972_v47 = vadd.f32 %v4940_v21, %v4880_v12 }
 0x40a   : > { %v5969_v35 = vpop.f32.mrf.mxu0 }
 0x40b   : > { %v4883_v49 = vadd.f32 %v5969_v35, %v9227_v7  ;;  %v4970_v60 = vadd.f32 %v4938_v19, %v4872_v30  ;;  %v5004_v40 = vmax.f32 %v4972_v47, 0.0 }
 0x40c   : > { %v4874_v36 = vpop.f32.mrf.mxu0 }
 0x40d   : > { %v4973_v3 = vadd.f32 %v4941_v17, %v4883_v49  ;;  %v4875_v51 = vadd.f32 %v9227_v7, %v4874_v36  ;;  %v5002_v4 = vmax.f32 %v4970_v60, 0.0 }
 0x40f   : > { %v5005_v45 = vmax.f32 %v4973_v3, 0.0  ;;  %v4971_v54 = vadd.f32 %v4939_v26, %v4875_v51 }
 0x411   : > { %v5649_v33 = vpack.c.bf16 %v5005_v45, %v5004_v40  ;;  %v5003_v27 = vmax.f32 %v4971_v54, 0.0 }
 0x413   : > { %5681 = vst [vmem:[%s9238_s18 + $0x58] sm:$0xff] %v5649_v33   ;;  %v5644_v57 = vpack.c.bf16 %v5003_v27, %v5002_v4 }
 0x415   : > { %5680 = vst [vmem:[%s9238_s18 + $0x50] sm:$0xff] %v5644_v57  }
 0x418   : > { %v5972_v34 = vpop.f32.mrf.mxu0 }
 0x419   : > { %v4896_v0 = vadd.f32 %v5972_v34, %v9227_v7 }
 0x41a   : > { %v4887_v53 = vpop.f32.mrf.mxu0 }
 0x41b   : > { %v4888_v16 = vadd.f32 %v9227_v7, %v4887_v53  ;;  %v4976_v42 = vadd.f32 %v4944_v38, %v4896_v0 }
 0x41c   : > { %v5973_v6 = vpop.f32.mrf.mxu0 }
 0x41d   : > { %v4899_v59 = vadd.f32 %v5973_v6, %v9227_v7  ;;  %v4974_v2 = vadd.f32 %v4942_v18, %v4888_v16  ;;  %v5008_v32 = vmax.f32 %v4976_v42, 0.0 }
 0x41e   : > { %v4890_v5 = vpop.f32.mrf.mxu0 }
 0x41f   : > { %v4977_v8 = vadd.f32 %v4945_v11, %v4899_v59  ;;  %v4891_v62 = vadd.f32 %v9227_v7, %v4890_v5  ;;  %v5006_v23 = vmax.f32 %v4974_v2, 0.0 }
 0x421   : > { %v5009_v28 = vmax.f32 %v4977_v8, 0.0  ;;  %v4975_v63 = vadd.f32 %v4943_v48, %v4891_v62 }
 0x423   : > { %v5659_v20 = vpack.c.bf16 %v5009_v28, %v5008_v32  ;;  %v5007_v13 = vmax.f32 %v4975_v63, 0.0 }
 0x425   : > { %5683 = vst [vmem:[%s9238_s18 + $0x68] sm:$0xff] %v5659_v20   ;;  %v5654_v1 = vpack.c.bf16 %v5007_v13, %v5006_v23 }
 0x427   : > { %5682 = vst [vmem:[%s9238_s18 + $0x60] sm:$0xff] %v5654_v1  }
 0x429   : > { %v5976_v44 = vpop.f32.mrf.mxu0 }
 0x42a   : > { %v4912_v39 = vadd.f32 %v5976_v44, %v9227_v7 }
 0x42b   : > { %v4903_v14 = vpop.f32.mrf.mxu0 }
 0x42c   : > { %v4904_v37 = vadd.f32 %v9227_v7, %v4903_v14  ;;  %v4980_v58 = vadd.f32 %v4948_v55, %v4912_v39 }
 0x42d   : > { %v5977_v29 = vpop.f32.mrf.mxu0 }
 0x42e   : > { %v4915_v61 = vadd.f32 %v5977_v29, %v9227_v7  ;;  %v4978_v41 = vadd.f32 %v4946_v43, %v4904_v37  ;;  %v5012_v46 = vmax.f32 %v4980_v58, 0.0 }
 0x42f   : > { %v4906_v22 = vpop.f32.mrf.mxu0 }
 0x430   : > { %v4981_v56 = vadd.f32 %v4949_v25, %v4915_v61  ;;  %v4907_v12 = vadd.f32 %v9227_v7, %v4906_v22  ;;  %v5010_v30 = vmax.f32 %v4978_v41, 0.0 }
 0x432   : > { %v5013_v21 = vmax.f32 %v4981_v56, 0.0  ;;  %v4979_v9 = vadd.f32 %v4947_v31, %v4907_v12 }
 0x434   : > { %v5669_v15 = vpack.c.bf16 %v5013_v21, %v5012_v46  ;;  %v5011_v19 = vmax.f32 %v4979_v9, 0.0 }
 0x436   : > { %5685 = vst [vmem:[%s9238_s18 + $0x78] sm:$0xff] %v5669_v15   ;;  %v5664_v17 = vpack.c.bf16 %v5011_v19, %v5010_v30 }
 0x438   : > { %5684 = vst [vmem:[%s9238_s18 + $0x70] sm:$0xff] %v5664_v17  }
 0x439   : > { %6173 = shalt.err (!%p6170_p3)
}
 0x43a   : > { %s6174_s14 = scalar_lea.hbm %s9301_s22, 2048  ;;  %s6178_s18 = scalar_lea.hbm %s9358_s7, 4096 }
 0x43b   : > { %p6175_p4 = scmp.ne.s32.totalorder %s9301_s22, %s6174_s14  ;;  %p6179_p9 = scmp.lt.s32.totalorder %s9301_s22, %s9358_s7 }
 0x43c   : > { %p6180_p10 = scmp.lt.s32.totalorder %s6178_s18, %s6174_s14 }
 0x43d   : > { %p6176_p7 = pnand %p6175_p4, %p6307_p5 }
 0x43e   : > { %p6181_p11 = por %p6180_p10, %p6179_p9 }
 0x43f   : > { %p6177_p8 = pneg %p6176_p7 }
 0x441   : > { %p6182_p12 = pnand %p6181_p11, %p6177_p8 }
 0x443   : > { %6185 = shalt.err (!%p6182_p12)
}
 0x444   : > { %s6228_s15 = smov 4  }
 0x445   : > { %5994 = dma.vmem_to_hbm [thread:$0]  (%p6307_p5), %s9304_s19, 2048, %s9301_s22, %s9309_s29, %s6224_s20, %s6224_s20, %s6228_s15  }
 0x446 PF: > { %p6000_p13 = scmp.ge.s32.totalorder %s6220_s27, 2  ;;  %s5203_s28 = sand.u32 1, %s6208_s24  }
 0x447   : > { %s5204_s8 = scalar_lea.sflag [#allocation4], %s5203_s28 }
 0x448   : > { %p5997_p0 = pnand %p6000_p13, %p6311_p6 }
 0x44a   : > { %p5998_p1 = pneg %p5997_p0 }
 0x44c   : > { %6203 = dma.done.wait (%p5998_p1), %s5204_s8, 2048  }
 0x44d   : > { %6205 = vsyncadd (%p5998_p1), %s5204_s8, 4294965248  ;;  %p17_p2 = scmp.ge.s32.totalorder %s6294_s30, 4   ;;  %s10198_s24 = smov %s6212_s25 }
 0x44e   : > { %s10199_s25 = smov %s6216_s26  ;;  %s10200_s26 = smov %s6305_s10 }
 0x44f   : > { %s10201_s27 = smov %s6294_s30  ;;  %19 = sbr.rel (!%p17_p2) target bundleno = 3 (0x3), region = 83 }
 0x454   :  { %5209 = vsyncpa [#allocation4], 1 }
 0x455   :  { %5211 = vsyncpa [#allocation4 + $0x1], 1 }

</bundles_post_ra>
